<compile_context>
chip_gen: v5e
topology: v5e:2x2
jax: 0.10.0
libtpu: 0.0.40
codegen_flags: <defaults>
</compile_context>

<pallas_src>
import math
import functools

import jax
import jax.numpy as jnp
from jax.experimental import pallas as pl
from jax.experimental.pallas import tpu as pltpu

F32 = jnp.float32
BF16 = jnp.bfloat16


# ----------------------------- helpers --------------------------------------

def _round_up(n, m):
    return ((n + m - 1) // m) * m


def _choose_tn(n, s_pad, row_target=512):
    """Sequences per grid step: 8-aligned, ~row_target rows per matmul,
    capped so the (padded) grid keeps >= 2 steps for megacore."""
    tn = max(8, ((row_target // max(s_pad, 1)) // 8) * 8)
    half = max(8, _round_up(-(-n // 2), 8))          # ceil(n/2), 8-aligned
    return min(tn, half)


def _layer_norm(x, g, b, eps=1e-5):
    mu = jnp.mean(x, axis=-1, keepdims=True)
    xc = x - mu
    var = jnp.mean(xc * xc, axis=-1, keepdims=True)
    return xc * jax.lax.rsqrt(var + eps) * g + b


# ----------------------------- fused kernel ---------------------------------

def _fused_forecast_kernel(num_heads, s_real, time_len, apply_norm,
                           xp_ref, emb_w_ref, emb_b_ref, pe_ref,
                           ln1g_ref, ln1b_ref, wqkv_ref, bqkv_ref,
                           wo_ref, bo_ref, ln2g_ref, ln2b_ref,
                           w1_ref, b1_ref, w2_ref, b2_ref,
                           head_w_ref, head_b_ref, out_ref):
    xp = xp_ref[...]                                  # (TN, S_pad, P) f32
    TN, S_pad, P = xp.shape
    D = emb_w_ref.shape[1]
    H = num_heads
    hd = D // H
    n_layers = wqkv_ref.shape[0]
    R = TN * S_pad
    scale = 1.0 / math.sqrt(hd)

    # ---- non-stationary instance norm over time (padded patches are zero,
    #      so sums over the padded view divided by the real length are exact) --
    if apply_norm:
        inv_l = 1.0 / float(time_len)
        s1 = jnp.sum(jnp.sum(xp, axis=2), axis=1, keepdims=True)        # (TN,1)
        s2 = jnp.sum(jnp.sum(xp * xp, axis=2), axis=1, keepdims=True)   # (TN,1)
        mean = s1 * inv_l
        var = s2 * inv_l - mean * mean
        std = jnp.sqrt(var + 1e-5)
        xn = (xp - mean[:, :, None]) / std[:, :, None]
    else:
        mean = jnp.zeros((TN, 1), F32)
        std = jnp.ones((TN, 1), F32)
        xn = xp

    # ---- PatchEmbedding (Linear P->D, bf16 MXU) + PositionalEncoding ----
    emb = jnp.dot(xn.reshape(R, P).astype(BF16), emb_w_ref[...],
                  preferred_element_type=jnp.float32) + emb_b_ref[...]
    x2 = (emb.reshape(TN, S_pad, D) + pe_ref[...]).reshape(R, D)        # (R, D) f32

    # key-padding mask: padded patches must not receive attention weight
    kidx = jax.lax.broadcasted_iota(jnp.int32, (1, S_pad), 1)
    kmask = jnp.where(kidx < s_real, 0.0, -1e30).astype(F32)            # (1, S_pad)

    # ---- pre-norm encoder stack (no causal mask: forecast uses is_mask=False) --
    def layer(l, x2):
        hn = _layer_norm(x2, ln1g_ref[l], ln1b_ref[l]).astype(BF16)
        qkv = jnp.dot(hn, wqkv_ref[l],
                      preferred_element_type=jnp.float32) + bqkv_ref[l]  # (R, 3D)
        q3 = qkv[:, :D].reshape(TN, S_pad, D).astype(BF16)
        k3 = qkv[:, D:2 * D].reshape(TN, S_pad, D).astype(BF16)
        v3 = qkv[:, 2 * D:].reshape(TN, S_pad, D).astype(BF16)

        ctx_heads = []
        for hh in range(H):                           # static head unroll
            lo = hh * hd
            qh = q3[:, :, lo:lo + hd]
            kh = k3[:, :, lo:lo + hd]
            vh = v3[:, :, lo:lo + hd]
            sc = jnp.einsum('bqd,bkd->bqk', qh, kh,
                            preferred_element_type=jnp.float32) * scale + kmask
            sc = sc - jnp.max(sc, axis=-1, keepdims=True)
            p = jnp.exp(sc)
            p = p * pl.reciprocal(jnp.sum(p, axis=-1, keepdims=True), approx=True)
            ctx_heads.append(jnp.einsum('bqk,bkd->bqd', p.astype(BF16), vh,
                                        preferred_element_type=jnp.float32))
        # single full-K output projection (no per-head K=hd fragments)
        ctx = jnp.concatenate(ctx_heads, axis=-1).reshape(R, D)
        attn = jnp.dot(ctx.astype(BF16), wo_ref[l],
                       preferred_element_type=jnp.float32) + bo_ref[l]
        x2 = x2 + attn

        h2 = _layer_norm(x2, ln2g_ref[l], ln2b_ref[l]).astype(BF16)
        f = jnp.dot(h2, w1_ref[l], preferred_element_type=jnp.float32) + b1_ref[l]
        f = jnp.maximum(f, 0.0).astype(BF16)
        f = jnp.dot(f, w2_ref[l], preferred_element_type=jnp.float32) + b2_ref[l]
        return x2 + f

    x2 = jax.lax.fori_loop(0, n_layers, layer, x2)

    # ---- FlattenHead (contraction tiled over patches; padded patches hit
    #      zero-padded head weights) + de-normalization ----
    x3 = x2.reshape(TN, S_pad, D)
    pred_pad = head_w_ref.shape[2]
    acc = jnp.zeros((TN, pred_pad), F32) + head_b_ref[...]
    for s in range(S_pad):                            # static unroll, small
        acc = acc + jnp.dot(x3[:, s, :].astype(BF16), head_w_ref[s],
                            preferred_element_type=jnp.float32)
    out_ref[...] = acc * std + mean


def fused_forecast(x_patch, weights, *, num_heads, s_real, time_len,
                   apply_norm, tn, pred_pad):
    N_pad, S_pad, P = x_patch.shape
    kern = functools.partial(_fused_forecast_kernel,
                             num_heads, s_real, time_len, apply_norm)

    def full_spec(a):
        nd = a.ndim
        return pl.BlockSpec(a.shape, lambda i, _nd=nd: (0,) * _nd)

    in_specs = ([pl.BlockSpec((tn, S_pad, P), lambda i: (i, 0, 0))]
                + [full_spec(a) for a in weights])

    return pl.pallas_call(
        kern,
        out_shape=jax.ShapeDtypeStruct((N_pad, pred_pad), F32),
        grid=(N_pad // tn,),
        in_specs=in_specs,
        out_specs=pl.BlockSpec((tn, pred_pad), lambda i: (i, 0)),
        compiler_params=pltpu.CompilerParams(
            dimension_semantics=("parallel",),
            vmem_limit_bytes=48 * 1024 * 1024),
    )(x_patch, *weights)


# ----------------------------- params ---------------------------------------

def sinusoidal_pe(seq_len, d_model):
    pos = jnp.arange(seq_len, dtype=F32)[:, None]
    div = jnp.exp(jnp.arange(0, d_model, 2, dtype=F32)
                  * (-math.log(10000.0) / d_model))
    pe = jnp.zeros((seq_len, d_model), F32)
    pe = pe.at[:, 0::2].set(jnp.sin(pos * div))
    pe = pe.at[:, 1::2].set(jnp.cos(pos * div))
    return pe


def init_params(key, *, patch_len, d_model, d_ff, n_layers, seq_len, pred_len):
    k_emb, k_qkv, k_o, k_1, k_2, k_head = jax.random.split(key, 6)

    def w(k, shape):
        return jax.random.normal(k, shape, F32) * 0.02

    stack = {
        'ln1_g': jnp.ones((n_layers, 1, d_model), F32),
        'ln1_b': jnp.zeros((n_layers, 1, d_model), F32),
        'wqkv': w(k_qkv, (n_layers, d_model, 3 * d_model)),   # fused Q/K/V
        'bqkv': jnp.zeros((n_layers, 1, 3 * d_model), F32),
        'wo': w(k_o, (n_layers, d_model, d_model)),
        'bo': jnp.zeros((n_layers, 1, d_model), F32),
        'ln2_g': jnp.ones((n_layers, 1, d_model), F32),
        'ln2_b': jnp.zeros((n_layers, 1, d_model), F32),
        'w1': w(k_1, (n_layers, d_model, d_ff)),
        'b1': jnp.zeros((n_layers, 1, d_ff), F32),
        'w2': w(k_2, (n_layers, d_ff, d_model)),
        'b2': jnp.zeros((n_layers, 1, d_model), F32),
    }
    return {
        'emb_w': w(k_emb, (patch_len, d_model)),
        'emb_b': jnp.zeros((1, d_model), F32),
        'pe': sinusoidal_pe(seq_len, d_model),
        'head_w': w(k_head, (seq_len * d_model, pred_len)),
        'head_b': jnp.zeros((1, pred_len), F32),
        'stack': stack,
    }


def pack_params(params, seq_len, s_pad, pred_len, pred_pad):
    """Pad (S -> S_pad, pred -> pred_pad) and cast matmul weights to bf16."""
    st = params['stack']
    d_model = params['emb_w'].shape[1]

    def bf(a):
        return a.astype(BF16)

    pe = jnp.pad(params['pe'], ((0, s_pad - seq_len), (0, 0)))
    hw = params['head_w'].reshape(seq_len, d_model, pred_len)
    hw = jnp.pad(hw, ((0, s_pad - seq_len), (0, 0), (0, pred_pad - pred_len)))
    hb = jnp.pad(params['head_b'], ((0, 0), (0, pred_pad - pred_len)))

    return [bf(params['emb_w']), params['emb_b'], pe,
            st['ln1_g'], st['ln1_b'], bf(st['wqkv']), st['bqkv'],
            bf(st['wo']), st['bo'], st['ln2_g'], st['ln2_b'],
            bf(st['w1']), st['b1'], bf(st['w2']), st['b2'],
            bf(hw), hb]


# ----------------------------- model glue -----------------------------------

def model_forward(x, params, cfg):
    """TimeDART forecast (finetune) forward: [B, L, C] -> [B, pred_len, C]."""
    B, L, C = x.shape
    P, stride = cfg['patch_len'], cfg['stride']
    D, S, pred = cfg['d_model'], cfg['seq_len'], cfg['pred_len']
    N = B * C

    # ChannelIndependence: [B, L, C] -> [B*C, L] (time on lanes)
    xci = jnp.transpose(x, (0, 2, 1)).reshape(N, L)

    non_overlap = (stride == P and S * P == L)
    if non_overlap:
        xp = xci.reshape(N, S, P)            # free view; norm fused in-kernel
        apply_norm = True
        mean = std = None
    else:
        # TODO(synk): overlapping patches duplicate time steps, so the in-kernel
        # sum/L norm is invalid; normalize + gather outside for this case.
        mean = jnp.mean(xci, axis=1, keepdims=True)
        xc = xci - mean
        std = jnp.sqrt(jnp.mean(xc * xc, axis=1, keepdims=True) + 1e-5)
        idx = jnp.arange(S)[:, None] * stride + jnp.arange(P)[None, :]
        xp = (xc / std)[:, idx]
        apply_norm = False

    s_pad = _round_up(max(S, 1), 8)          # sublane-aligned patch count
    pred_pad = _round_up(pred, 128)          # lane-dense output stores
    tn = _choose_tn(N, s_pad)
    n_pad = max(2 * tn, _round_up(N, tn))    # >= 2 grid steps, 8-aligned blocks
    xp = jnp.pad(xp, ((0, n_pad - N), (0, s_pad - S), (0, 0)))

    weights = pack_params(params, S, s_pad, pred, pred_pad)
    y = fused_forecast(xp, weights, num_heads=cfg['n_heads'], s_real=S,
                       time_len=L, apply_norm=apply_norm, tn=tn,
                       pred_pad=pred_pad)                    # (n_pad, pred_pad)

    y = y[:N, :pred]
    if not apply_norm:
        y = y * std + mean                   # de-normalize (fallback path only)
    y = jnp.transpose(y.reshape(B, C, pred), (0, 2, 1))      # (B, pred, C)

    # forward() for finetune returns dec_out[:, -pred_len:, :]
    return y[:, -pred:, :]


# ----------------------------- demo ------------------------------------------

if __name__ == "__main__":
    B, C, L = 2, 4, 16                       # batch, num_features, input_len
    patch_len, stride = 4, 4
    d_model, n_heads, d_ff, e_layers = 32, 4, 64, 2
    pred_len = 8
    seq_len = (L - patch_len) // stride + 1

    cfg = dict(seq_len=seq_len, patch_len=patch_len, stride=stride,
               d_model=d_model, n_heads=n_heads, pred_len=pred_len)

    key = jax.random.PRNGKey(0)
    kx, kp = jax.random.split(key)
    batch_x = jax.random.normal(kx, (B, L, C), F32)
    params = init_params(kp, patch_len=patch_len, d_model=d_model, d_ff=d_ff,
                         n_layers=e_layers, seq_len=seq_len, pred_len=pred_len)

    fwd = jax.jit(functools.partial(model_forward, cfg=cfg))
    out = fwd(batch_x, params)
    out = jax.block_until_ready(out)
    assert out.shape == (B, pred_len, C), out.shape
    assert bool(jnp.all(jnp.isfinite(out)))
    print("KERNEL_OK")
</pallas_src>

<mosaic_0001>
module attributes {stable_mosaic.version = 11 : i64} {
  func.func @_fused_forecast_kernel(%arg0: i32, %arg1: memref<8x8x4xf32, #tpu.memory_space<vmem>>, %arg2: memref<4x32xbf16, #tpu.memory_space<vmem>>, %arg3: memref<1x32xf32, #tpu.memory_space<vmem>>, %arg4: memref<8x32xf32, #tpu.memory_space<vmem>>, %arg5: memref<2x1x32xf32, #tpu.memory_space<vmem>>, %arg6: memref<2x1x32xf32, #tpu.memory_space<vmem>>, %arg7: memref<2x32x96xbf16, #tpu.memory_space<vmem>>, %arg8: memref<2x1x96xf32, #tpu.memory_space<vmem>>, %arg9: memref<2x32x32xbf16, #tpu.memory_space<vmem>>, %arg10: memref<2x1x32xf32, #tpu.memory_space<vmem>>, %arg11: memref<2x1x32xf32, #tpu.memory_space<vmem>>, %arg12: memref<2x1x32xf32, #tpu.memory_space<vmem>>, %arg13: memref<2x32x64xbf16, #tpu.memory_space<vmem>>, %arg14: memref<2x1x64xf32, #tpu.memory_space<vmem>>, %arg15: memref<2x64x32xbf16, #tpu.memory_space<vmem>>, %arg16: memref<2x1x32xf32, #tpu.memory_space<vmem>>, %arg17: memref<8x32x128xbf16, #tpu.memory_space<vmem>>, %arg18: memref<1x128xf32, #tpu.memory_space<vmem>>, %arg19: memref<8x128xf32, #tpu.memory_space<vmem>>) attributes {dimension_semantics = [#tpu.dimension_semantics<parallel>], iteration_bounds = array<i64: 2>, scalar_prefetch = 0 : i64, scratch_operands = 0 : i64, tpu.core_type = #tpu.core_type<tc>, window_params = [{transform_indices = @transform_0, window_bounds = array<i64: 8, 8, 4>}, {pipeline_mode = #tpu.pipeline_mode<synchronous>, transform_indices = @transform_1, window_bounds = array<i64: 4, 32>}, {pipeline_mode = #tpu.pipeline_mode<synchronous>, transform_indices = @transform_2, window_bounds = array<i64: 1, 32>}, {pipeline_mode = #tpu.pipeline_mode<synchronous>, transform_indices = @transform_3, window_bounds = array<i64: 8, 32>}, {pipeline_mode = #tpu.pipeline_mode<synchronous>, transform_indices = @transform_4, window_bounds = array<i64: 2, 1, 32>}, {pipeline_mode = #tpu.pipeline_mode<synchronous>, transform_indices = @transform_5, window_bounds = array<i64: 2, 1, 32>}, {pipeline_mode = #tpu.pipeline_mode<synchronous>, transform_indices = @transform_6, window_bounds = array<i64: 2, 32, 96>}, {pipeline_mode = #tpu.pipeline_mode<synchronous>, transform_indices = @transform_7, window_bounds = array<i64: 2, 1, 96>}, {pipeline_mode = #tpu.pipeline_mode<synchronous>, transform_indices = @transform_8, window_bounds = array<i64: 2, 32, 32>}, {pipeline_mode = #tpu.pipeline_mode<synchronous>, transform_indices = @transform_9, window_bounds = array<i64: 2, 1, 32>}, {pipeline_mode = #tpu.pipeline_mode<synchronous>, transform_indices = @transform_10, window_bounds = array<i64: 2, 1, 32>}, {pipeline_mode = #tpu.pipeline_mode<synchronous>, transform_indices = @transform_11, window_bounds = array<i64: 2, 1, 32>}, {pipeline_mode = #tpu.pipeline_mode<synchronous>, transform_indices = @transform_12, window_bounds = array<i64: 2, 32, 64>}, {pipeline_mode = #tpu.pipeline_mode<synchronous>, transform_indices = @transform_13, window_bounds = array<i64: 2, 1, 64>}, {pipeline_mode = #tpu.pipeline_mode<synchronous>, transform_indices = @transform_14, window_bounds = array<i64: 2, 64, 32>}, {pipeline_mode = #tpu.pipeline_mode<synchronous>, transform_indices = @transform_15, window_bounds = array<i64: 2, 1, 32>}, {pipeline_mode = #tpu.pipeline_mode<synchronous>, transform_indices = @transform_16, window_bounds = array<i64: 8, 32, 128>}, {pipeline_mode = #tpu.pipeline_mode<synchronous>, transform_indices = @transform_17, window_bounds = array<i64: 1, 128>}, {transform_indices = @transform_18, window_bounds = array<i64: 8, 128>}]} {
    %c0 = arith.constant 0 : index
    %c0_0 = arith.constant 0 : index
    %c0_1 = arith.constant 0 : index
    %0 = vector.load %arg1[%c0, %c0_0, %c0_1] : memref<8x8x4xf32, #tpu.memory_space<vmem>>, vector<8x8x4xf32>
    %cst = arith.constant dense<0.000000e+00> : vector<8x8xf32>
    %1 = vector.multi_reduction <add>, %0, %cst [2] : vector<8x8x4xf32> to vector<8x8xf32>
    %cst_2 = arith.constant dense<0.000000e+00> : vector<8xf32>
    %2 = vector.multi_reduction <add>, %1, %cst_2 [1] : vector<8x8xf32> to vector<8xf32>
    %3 = vector.shape_cast %2 : vector<8xf32> to vector<8x1xf32>
    %4 = arith.mulf %0, %0 : vector<8x8x4xf32>
    %cst_3 = arith.constant dense<0.000000e+00> : vector<8x8xf32>
    %5 = vector.multi_reduction <add>, %4, %cst_3 [2] : vector<8x8x4xf32> to vector<8x8xf32>
    %cst_4 = arith.constant dense<0.000000e+00> : vector<8xf32>
    %6 = vector.multi_reduction <add>, %5, %cst_4 [1] : vector<8x8xf32> to vector<8xf32>
    %7 = vector.shape_cast %6 : vector<8xf32> to vector<8x1xf32>
    %cst_5 = arith.constant 6.250000e-02 : f32
    %8 = vector.broadcast %cst_5 : f32 to vector<8x1xf32>
    %9 = arith.mulf %3, %8 : vector<8x1xf32>
    %cst_6 = arith.constant 6.250000e-02 : f32
    %10 = vector.broadcast %cst_6 : f32 to vector<8x1xf32>
    %11 = arith.mulf %7, %10 : vector<8x1xf32>
    %12 = arith.mulf %9, %9 : vector<8x1xf32>
    %13 = arith.subf %11, %12 : vector<8x1xf32>
    %cst_7 = arith.constant 9.99999974E-6 : f32
    %14 = vector.broadcast %cst_7 : f32 to vector<8x1xf32>
    %15 = arith.addf %13, %14 : vector<8x1xf32>
    %16 = math.sqrt %15 : vector<8x1xf32>
    %17 = vector.shape_cast %9 : vector<8x1xf32> to vector<8x1x1xf32>
    %18 = vector.broadcast %17 : vector<8x1x1xf32> to vector<8x8x4xf32>
    %19 = arith.subf %0, %18 : vector<8x8x4xf32>
    %20 = vector.shape_cast %16 : vector<8x1xf32> to vector<8x1x1xf32>
    %21 = vector.broadcast %20 : vector<8x1x1xf32> to vector<8x8x4xf32>
    %22 = arith.divf %19, %21 : vector<8x8x4xf32>
    %23 = vector.shape_cast %22 : vector<8x8x4xf32> to vector<64x4xf32>
    %24 = arith.truncf %23 : vector<64x4xf32> to vector<64x4xbf16>
    %c0_8 = arith.constant 0 : index
    %c0_9 = arith.constant 0 : index
    %25 = vector.load %arg2[%c0_8, %c0_9] : memref<4x32xbf16, #tpu.memory_space<vmem>>, vector<4x32xbf16>
    %cst_10 = arith.constant dense<0.000000e+00> : vector<64x32xf32>
    %26 = tpu.matmul %24, %25, %cst_10 {dimension_numbers = #tpu.dot_dimension_numbers<[1], [0], [0], [1], [0, 0, 1, 1], [], []>} : vector<64x4xbf16>, vector<4x32xbf16>, vector<64x32xf32> -> vector<64x32xf32>
    %c0_11 = arith.constant 0 : index
    %c0_12 = arith.constant 0 : index
    %27 = vector.load %arg3[%c0_11, %c0_12] : memref<1x32xf32, #tpu.memory_space<vmem>>, vector<1x32xf32>
    %28 = vector.broadcast %27 : vector<1x32xf32> to vector<64x32xf32>
    %29 = arith.addf %26, %28 : vector<64x32xf32>
    %30 = vector.shape_cast %29 : vector<64x32xf32> to vector<8x8x32xf32>
    %c0_13 = arith.constant 0 : index
    %c0_14 = arith.constant 0 : index
    %31 = vector.load %arg4[%c0_13, %c0_14] : memref<8x32xf32, #tpu.memory_space<vmem>>, vector<8x32xf32>
    %32 = vector.shape_cast %31 : vector<8x32xf32> to vector<1x8x32xf32>
    %33 = vector.broadcast %32 : vector<1x8x32xf32> to vector<8x8x32xf32>
    %34 = arith.addf %30, %33 : vector<8x8x32xf32>
    %35 = vector.shape_cast %34 : vector<8x8x32xf32> to vector<64x32xf32>
    %36 = tpu.iota {dimensions = array<i32: 1>} : vector<1x8xi32>
    %c4_i32 = arith.constant 4 : i32
    %37 = vector.broadcast %c4_i32 : i32 to vector<1x8xi32>
    %38 = arith.cmpi slt, %36, %37 : vector<1x8xi32>
    %cst_15 = arith.constant 0.000000e+00 : f32
    %cst_16 = arith.constant -1.000000e+30 : f32
    %39 = vector.broadcast %cst_15 : f32 to vector<1x8xf32>
    %40 = vector.broadcast %cst_16 : f32 to vector<1x8xf32>
    %41 = arith.select %38, %39, %40 : vector<1x8xi1>, vector<1x8xf32>
    %c0_i32 = arith.constant 0 : i32
    %c2_i32 = arith.constant 2 : i32
    %42 = arith.addi %c0_i32, %c2_i32 : i32
    %c1_i32 = arith.constant 1 : i32
    %43 = scf.for %arg20 = %c0_i32 to %42 step %c1_i32 iter_args(%arg21 = %35) -> (vector<64x32xf32>)  : i32 {
      %110 = arith.index_cast %arg20 : i32 to index
      %c0_48 = arith.constant 0 : index
      %c0_49 = arith.constant 0 : index
      %111 = vector.load %arg5[%110, %c0_48, %c0_49] : memref<2x1x32xf32, #tpu.memory_space<vmem>>, vector<1x1x32xf32>
      %112 = vector.shape_cast %111 : vector<1x1x32xf32> to vector<1x32xf32>
      %113 = arith.index_cast %arg20 : i32 to index
      %c0_50 = arith.constant 0 : index
      %c0_51 = arith.constant 0 : index
      %114 = vector.load %arg6[%113, %c0_50, %c0_51] : memref<2x1x32xf32, #tpu.memory_space<vmem>>, vector<1x1x32xf32>
      %115 = vector.shape_cast %114 : vector<1x1x32xf32> to vector<1x32xf32>
      %cst_52 = arith.constant dense<0.000000e+00> : vector<64xf32>
      %116 = vector.multi_reduction <add>, %arg21, %cst_52 [1] : vector<64x32xf32> to vector<64xf32>
      %117 = vector.shape_cast %116 : vector<64xf32> to vector<64x1xf32>
      %cst_53 = arith.constant 3.200000e+01 : f32
      %118 = vector.broadcast %cst_53 : f32 to vector<64x1xf32>
      %119 = arith.divf %117, %118 : vector<64x1xf32>
      %120 = vector.broadcast %119 : vector<64x1xf32> to vector<64x32xf32>
      %121 = arith.subf %arg21, %120 : vector<64x32xf32>
      %122 = arith.mulf %121, %121 : vector<64x32xf32>
      %cst_54 = arith.constant dense<0.000000e+00> : vector<64xf32>
      %123 = vector.multi_reduction <add>, %122, %cst_54 [1] : vector<64x32xf32> to vector<64xf32>
      %124 = vector.shape_cast %123 : vector<64xf32> to vector<64x1xf32>
      %cst_55 = arith.constant 3.200000e+01 : f32
      %125 = vector.broadcast %cst_55 : f32 to vector<64x1xf32>
      %126 = arith.divf %124, %125 : vector<64x1xf32>
      %cst_56 = arith.constant 9.99999974E-6 : f32
      %127 = vector.broadcast %cst_56 : f32 to vector<64x1xf32>
      %128 = arith.addf %126, %127 : vector<64x1xf32>
      %129 = math.rsqrt %128 : vector<64x1xf32>
      %130 = vector.broadcast %129 : vector<64x1xf32> to vector<64x32xf32>
      %131 = arith.mulf %121, %130 : vector<64x32xf32>
      %132 = vector.broadcast %112 : vector<1x32xf32> to vector<64x32xf32>
      %133 = arith.mulf %131, %132 : vector<64x32xf32>
      %134 = vector.broadcast %115 : vector<1x32xf32> to vector<64x32xf32>
      %135 = arith.addf %133, %134 : vector<64x32xf32>
      %136 = arith.truncf %135 : vector<64x32xf32> to vector<64x32xbf16>
      %137 = arith.index_cast %arg20 : i32 to index
      %c0_57 = arith.constant 0 : index
      %c0_58 = arith.constant 0 : index
      %138 = vector.load %arg7[%137, %c0_57, %c0_58] : memref<2x32x96xbf16, #tpu.memory_space<vmem>>, vector<1x32x96xbf16>
      %139 = vector.shape_cast %138 : vector<1x32x96xbf16> to vector<32x96xbf16>
      %cst_59 = arith.constant dense<0.000000e+00> : vector<64x96xf32>
      %140 = tpu.matmul %136, %139, %cst_59 {dimension_numbers = #tpu.dot_dimension_numbers<[1], [0], [0], [1], [0, 0, 1, 1], [], []>} : vector<64x32xbf16>, vector<32x96xbf16>, vector<64x96xf32> -> vector<64x96xf32>
      %141 = arith.index_cast %arg20 : i32 to index
      %c0_60 = arith.constant 0 : index
      %c0_61 = arith.constant 0 : index
      %142 = vector.load %arg8[%141, %c0_60, %c0_61] : memref<2x1x96xf32, #tpu.memory_space<vmem>>, vector<1x1x96xf32>
      %143 = vector.shape_cast %142 : vector<1x1x96xf32> to vector<1x96xf32>
      %144 = vector.broadcast %143 : vector<1x96xf32> to vector<64x96xf32>
      %145 = arith.addf %140, %144 : vector<64x96xf32>
      %146 = vector.extract_strided_slice %145 {offsets = [0, 0], sizes = [64, 32], strides = [1, 1]} : vector<64x96xf32> to vector<64x32xf32>
      %147 = vector.shape_cast %146 : vector<64x32xf32> to vector<8x8x32xf32>
      %148 = arith.truncf %147 : vector<8x8x32xf32> to vector<8x8x32xbf16>
      %149 = vector.extract_strided_slice %145 {offsets = [0, 32], sizes = [64, 32], strides = [1, 1]} : vector<64x96xf32> to vector<64x32xf32>
      %150 = vector.shape_cast %149 : vector<64x32xf32> to vector<8x8x32xf32>
      %151 = arith.truncf %150 : vector<8x8x32xf32> to vector<8x8x32xbf16>
      %152 = vector.extract_strided_slice %145 {offsets = [0, 64], sizes = [64, 32], strides = [1, 1]} : vector<64x96xf32> to vector<64x32xf32>
      %153 = vector.shape_cast %152 : vector<64x32xf32> to vector<8x8x32xf32>
      %154 = arith.truncf %153 : vector<8x8x32xf32> to vector<8x8x32xbf16>
      %155 = vector.extract_strided_slice %148 {offsets = [0, 0, 0], sizes = [8, 8, 8], strides = [1, 1, 1]} : vector<8x8x32xbf16> to vector<8x8x8xbf16>
      %156 = vector.extract_strided_slice %151 {offsets = [0, 0, 0], sizes = [8, 8, 8], strides = [1, 1, 1]} : vector<8x8x32xbf16> to vector<8x8x8xbf16>
      %157 = vector.extract_strided_slice %154 {offsets = [0, 0, 0], sizes = [8, 8, 8], strides = [1, 1, 1]} : vector<8x8x32xbf16> to vector<8x8x8xbf16>
      "tpu.trace_start"() <{level = 10 : i32, message = "bqd,bkd->bqk"}> : () -> ()
      %cst_62 = arith.constant dense<0.000000e+00> : vector<8x8x8xf32>
      %158 = tpu.matmul %155, %156, %cst_62 {dimension_numbers = #tpu.dot_dimension_numbers<[2], [2], [1], [1], [0, 0, 0, 1, 1, 1], [0], [0]>} : vector<8x8x8xbf16>, vector<8x8x8xbf16>, vector<8x8x8xf32> -> vector<8x8x8xf32>
      "tpu.trace_stop"() : () -> ()
      %cst_63 = arith.constant 0.353553385 : f32
      %159 = vector.broadcast %cst_63 : f32 to vector<8x8x8xf32>
      %160 = arith.mulf %158, %159 : vector<8x8x8xf32>
      %161 = vector.shape_cast %41 : vector<1x8xf32> to vector<1x1x8xf32>
      %162 = vector.broadcast %161 : vector<1x1x8xf32> to vector<8x8x8xf32>
      %163 = arith.addf %160, %162 : vector<8x8x8xf32>
      %cst_64 = arith.constant dense<0xFF800000> : vector<8x8xf32>
      %164 = vector.multi_reduction <maximumf>, %163, %cst_64 [2] : vector<8x8x8xf32> to vector<8x8xf32>
      %165 = vector.shape_cast %164 : vector<8x8xf32> to vector<8x8x1xf32>
      %166 = vector.broadcast %165 : vector<8x8x1xf32> to vector<8x8x8xf32>
      %167 = arith.subf %163, %166 : vector<8x8x8xf32>
      %168 = math.exp %167 : vector<8x8x8xf32>
      %cst_65 = arith.constant dense<0.000000e+00> : vector<8x8xf32>
      %169 = vector.multi_reduction <add>, %168, %cst_65 [2] : vector<8x8x8xf32> to vector<8x8xf32>
      %170 = vector.shape_cast %169 : vector<8x8xf32> to vector<8x8x1xf32>
      %171 = tpu.reciprocal %170 {approx = true} : vector<8x8x1xf32> -> vector<8x8x1xf32>
      %172 = vector.broadcast %171 : vector<8x8x1xf32> to vector<8x8x8xf32>
      %173 = arith.mulf %168, %172 : vector<8x8x8xf32>
      %174 = arith.truncf %173 : vector<8x8x8xf32> to vector<8x8x8xbf16>
      "tpu.trace_start"() <{level = 10 : i32, message = "bqk,bkd->bqd"}> : () -> ()
      %cst_66 = arith.constant dense<0.000000e+00> : vector<8x8x8xf32>
      %175 = tpu.matmul %174, %157, %cst_66 {dimension_numbers = #tpu.dot_dimension_numbers<[2], [1], [1], [2], [0, 0, 0, 1, 1, 2], [0], [0]>} : vector<8x8x8xbf16>, vector<8x8x8xbf16>, vector<8x8x8xf32> -> vector<8x8x8xf32>
      "tpu.trace_stop"() : () -> ()
      %176 = vector.extract_strided_slice %148 {offsets = [0, 0, 8], sizes = [8, 8, 8], strides = [1, 1, 1]} : vector<8x8x32xbf16> to vector<8x8x8xbf16>
      %177 = vector.extract_strided_slice %151 {offsets = [0, 0, 8], sizes = [8, 8, 8], strides = [1, 1, 1]} : vector<8x8x32xbf16> to vector<8x8x8xbf16>
      %178 = vector.extract_strided_slice %154 {offsets = [0, 0, 8], sizes = [8, 8, 8], strides = [1, 1, 1]} : vector<8x8x32xbf16> to vector<8x8x8xbf16>
      "tpu.trace_start"() <{level = 10 : i32, message = "bqd,bkd->bqk"}> : () -> ()
      %cst_67 = arith.constant dense<0.000000e+00> : vector<8x8x8xf32>
      %179 = tpu.matmul %176, %177, %cst_67 {dimension_numbers = #tpu.dot_dimension_numbers<[2], [2], [1], [1], [0, 0, 0, 1, 1, 1], [0], [0]>} : vector<8x8x8xbf16>, vector<8x8x8xbf16>, vector<8x8x8xf32> -> vector<8x8x8xf32>
      "tpu.trace_stop"() : () -> ()
      %cst_68 = arith.constant 0.353553385 : f32
      %180 = vector.broadcast %cst_68 : f32 to vector<8x8x8xf32>
      %181 = arith.mulf %179, %180 : vector<8x8x8xf32>
      %182 = vector.shape_cast %41 : vector<1x8xf32> to vector<1x1x8xf32>
      %183 = vector.broadcast %182 : vector<1x1x8xf32> to vector<8x8x8xf32>
      %184 = arith.addf %181, %183 : vector<8x8x8xf32>
      %cst_69 = arith.constant dense<0xFF800000> : vector<8x8xf32>
      %185 = vector.multi_reduction <maximumf>, %184, %cst_69 [2] : vector<8x8x8xf32> to vector<8x8xf32>
      %186 = vector.shape_cast %185 : vector<8x8xf32> to vector<8x8x1xf32>
      %187 = vector.broadcast %186 : vector<8x8x1xf32> to vector<8x8x8xf32>
      %188 = arith.subf %184, %187 : vector<8x8x8xf32>
      %189 = math.exp %188 : vector<8x8x8xf32>
      %cst_70 = arith.constant dense<0.000000e+00> : vector<8x8xf32>
      %190 = vector.multi_reduction <add>, %189, %cst_70 [2] : vector<8x8x8xf32> to vector<8x8xf32>
      %191 = vector.shape_cast %190 : vector<8x8xf32> to vector<8x8x1xf32>
      %192 = tpu.reciprocal %191 {approx = true} : vector<8x8x1xf32> -> vector<8x8x1xf32>
      %193 = vector.broadcast %192 : vector<8x8x1xf32> to vector<8x8x8xf32>
      %194 = arith.mulf %189, %193 : vector<8x8x8xf32>
      %195 = arith.truncf %194 : vector<8x8x8xf32> to vector<8x8x8xbf16>
      "tpu.trace_start"() <{level = 10 : i32, message = "bqk,bkd->bqd"}> : () -> ()
      %cst_71 = arith.constant dense<0.000000e+00> : vector<8x8x8xf32>
      %196 = tpu.matmul %195, %178, %cst_71 {dimension_numbers = #tpu.dot_dimension_numbers<[2], [1], [1], [2], [0, 0, 0, 1, 1, 2], [0], [0]>} : vector<8x8x8xbf16>, vector<8x8x8xbf16>, vector<8x8x8xf32> -> vector<8x8x8xf32>
      "tpu.trace_stop"() : () -> ()
      %197 = vector.extract_strided_slice %148 {offsets = [0, 0, 16], sizes = [8, 8, 8], strides = [1, 1, 1]} : vector<8x8x32xbf16> to vector<8x8x8xbf16>
      %198 = vector.extract_strided_slice %151 {offsets = [0, 0, 16], sizes = [8, 8, 8], strides = [1, 1, 1]} : vector<8x8x32xbf16> to vector<8x8x8xbf16>
      %199 = vector.extract_strided_slice %154 {offsets = [0, 0, 16], sizes = [8, 8, 8], strides = [1, 1, 1]} : vector<8x8x32xbf16> to vector<8x8x8xbf16>
      "tpu.trace_start"() <{level = 10 : i32, message = "bqd,bkd->bqk"}> : () -> ()
      %cst_72 = arith.constant dense<0.000000e+00> : vector<8x8x8xf32>
      %200 = tpu.matmul %197, %198, %cst_72 {dimension_numbers = #tpu.dot_dimension_numbers<[2], [2], [1], [1], [0, 0, 0, 1, 1, 1], [0], [0]>} : vector<8x8x8xbf16>, vector<8x8x8xbf16>, vector<8x8x8xf32> -> vector<8x8x8xf32>
      "tpu.trace_stop"() : () -> ()
      %cst_73 = arith.constant 0.353553385 : f32
      %201 = vector.broadcast %cst_73 : f32 to vector<8x8x8xf32>
      %202 = arith.mulf %200, %201 : vector<8x8x8xf32>
      %203 = vector.shape_cast %41 : vector<1x8xf32> to vector<1x1x8xf32>
      %204 = vector.broadcast %203 : vector<1x1x8xf32> to vector<8x8x8xf32>
      %205 = arith.addf %202, %204 : vector<8x8x8xf32>
      %cst_74 = arith.constant dense<0xFF800000> : vector<8x8xf32>
      %206 = vector.multi_reduction <maximumf>, %205, %cst_74 [2] : vector<8x8x8xf32> to vector<8x8xf32>
      %207 = vector.shape_cast %206 : vector<8x8xf32> to vector<8x8x1xf32>
      %208 = vector.broadcast %207 : vector<8x8x1xf32> to vector<8x8x8xf32>
      %209 = arith.subf %205, %208 : vector<8x8x8xf32>
      %210 = math.exp %209 : vector<8x8x8xf32>
      %cst_75 = arith.constant dense<0.000000e+00> : vector<8x8xf32>
      %211 = vector.multi_reduction <add>, %210, %cst_75 [2] : vector<8x8x8xf32> to vector<8x8xf32>
      %212 = vector.shape_cast %211 : vector<8x8xf32> to vector<8x8x1xf32>
      %213 = tpu.reciprocal %212 {approx = true} : vector<8x8x1xf32> -> vector<8x8x1xf32>
      %214 = vector.broadcast %213 : vector<8x8x1xf32> to vector<8x8x8xf32>
      %215 = arith.mulf %210, %214 : vector<8x8x8xf32>
      %216 = arith.truncf %215 : vector<8x8x8xf32> to vector<8x8x8xbf16>
      "tpu.trace_start"() <{level = 10 : i32, message = "bqk,bkd->bqd"}> : () -> ()
      %cst_76 = arith.constant dense<0.000000e+00> : vector<8x8x8xf32>
      %217 = tpu.matmul %216, %199, %cst_76 {dimension_numbers = #tpu.dot_dimension_numbers<[2], [1], [1], [2], [0, 0, 0, 1, 1, 2], [0], [0]>} : vector<8x8x8xbf16>, vector<8x8x8xbf16>, vector<8x8x8xf32> -> vector<8x8x8xf32>
      "tpu.trace_stop"() : () -> ()
      %218 = vector.extract_strided_slice %148 {offsets = [0, 0, 24], sizes = [8, 8, 8], strides = [1, 1, 1]} : vector<8x8x32xbf16> to vector<8x8x8xbf16>
      %219 = vector.extract_strided_slice %151 {offsets = [0, 0, 24], sizes = [8, 8, 8], strides = [1, 1, 1]} : vector<8x8x32xbf16> to vector<8x8x8xbf16>
      %220 = vector.extract_strided_slice %154 {offsets = [0, 0, 24], sizes = [8, 8, 8], strides = [1, 1, 1]} : vector<8x8x32xbf16> to vector<8x8x8xbf16>
      "tpu.trace_start"() <{level = 10 : i32, message = "bqd,bkd->bqk"}> : () -> ()
      %cst_77 = arith.constant dense<0.000000e+00> : vector<8x8x8xf32>
      %221 = tpu.matmul %218, %219, %cst_77 {dimension_numbers = #tpu.dot_dimension_numbers<[2], [2], [1], [1], [0, 0, 0, 1, 1, 1], [0], [0]>} : vector<8x8x8xbf16>, vector<8x8x8xbf16>, vector<8x8x8xf32> -> vector<8x8x8xf32>
      "tpu.trace_stop"() : () -> ()
      %cst_78 = arith.constant 0.353553385 : f32
      %222 = vector.broadcast %cst_78 : f32 to vector<8x8x8xf32>
      %223 = arith.mulf %221, %222 : vector<8x8x8xf32>
      %224 = vector.shape_cast %41 : vector<1x8xf32> to vector<1x1x8xf32>
      %225 = vector.broadcast %224 : vector<1x1x8xf32> to vector<8x8x8xf32>
      %226 = arith.addf %223, %225 : vector<8x8x8xf32>
      %cst_79 = arith.constant dense<0xFF800000> : vector<8x8xf32>
      %227 = vector.multi_reduction <maximumf>, %226, %cst_79 [2] : vector<8x8x8xf32> to vector<8x8xf32>
      %228 = vector.shape_cast %227 : vector<8x8xf32> to vector<8x8x1xf32>
      %229 = vector.broadcast %228 : vector<8x8x1xf32> to vector<8x8x8xf32>
      %230 = arith.subf %226, %229 : vector<8x8x8xf32>
      %231 = math.exp %230 : vector<8x8x8xf32>
      %cst_80 = arith.constant dense<0.000000e+00> : vector<8x8xf32>
      %232 = vector.multi_reduction <add>, %231, %cst_80 [2] : vector<8x8x8xf32> to vector<8x8xf32>
      %233 = vector.shape_cast %232 : vector<8x8xf32> to vector<8x8x1xf32>
      %234 = tpu.reciprocal %233 {approx = true} : vector<8x8x1xf32> -> vector<8x8x1xf32>
      %235 = vector.broadcast %234 : vector<8x8x1xf32> to vector<8x8x8xf32>
      %236 = arith.mulf %231, %235 : vector<8x8x8xf32>
      %237 = arith.truncf %236 : vector<8x8x8xf32> to vector<8x8x8xbf16>
      "tpu.trace_start"() <{level = 10 : i32, message = "bqk,bkd->bqd"}> : () -> ()
      %cst_81 = arith.constant dense<0.000000e+00> : vector<8x8x8xf32>
      %238 = tpu.matmul %237, %220, %cst_81 {dimension_numbers = #tpu.dot_dimension_numbers<[2], [1], [1], [2], [0, 0, 0, 1, 1, 2], [0], [0]>} : vector<8x8x8xbf16>, vector<8x8x8xbf16>, vector<8x8x8xf32> -> vector<8x8x8xf32>
      "tpu.trace_stop"() : () -> ()
      %239 = tpu.concatenate %175, %196, %217, %238 in 2 : vector<8x8x8xf32>, vector<8x8x8xf32>, vector<8x8x8xf32>, vector<8x8x8xf32> -> vector<8x8x32xf32>
      %240 = vector.shape_cast %239 : vector<8x8x32xf32> to vector<64x32xf32>
      %241 = arith.truncf %240 : vector<64x32xf32> to vector<64x32xbf16>
      %242 = arith.index_cast %arg20 : i32 to index
      %c0_82 = arith.constant 0 : index
      %c0_83 = arith.constant 0 : index
      %243 = vector.load %arg9[%242, %c0_82, %c0_83] : memref<2x32x32xbf16, #tpu.memory_space<vmem>>, vector<1x32x32xbf16>
      %244 = vector.shape_cast %243 : vector<1x32x32xbf16> to vector<32x32xbf16>
      %cst_84 = arith.constant dense<0.000000e+00> : vector<64x32xf32>
      %245 = tpu.matmul %241, %244, %cst_84 {dimension_numbers = #tpu.dot_dimension_numbers<[1], [0], [0], [1], [0, 0, 1, 1], [], []>} : vector<64x32xbf16>, vector<32x32xbf16>, vector<64x32xf32> -> vector<64x32xf32>
      %246 = arith.index_cast %arg20 : i32 to index
      %c0_85 = arith.constant 0 : index
      %c0_86 = arith.constant 0 : index
      %247 = vector.load %arg10[%246, %c0_85, %c0_86] : memref<2x1x32xf32, #tpu.memory_space<vmem>>, vector<1x1x32xf32>
      %248 = vector.shape_cast %247 : vector<1x1x32xf32> to vector<1x32xf32>
      %249 = vector.broadcast %248 : vector<1x32xf32> to vector<64x32xf32>
      %250 = arith.addf %245, %249 : vector<64x32xf32>
      %251 = arith.addf %arg21, %250 : vector<64x32xf32>
      %252 = arith.index_cast %arg20 : i32 to index
      %c0_87 = arith.constant 0 : index
      %c0_88 = arith.constant 0 : index
      %253 = vector.load %arg11[%252, %c0_87, %c0_88] : memref<2x1x32xf32, #tpu.memory_space<vmem>>, vector<1x1x32xf32>
      %254 = vector.shape_cast %253 : vector<1x1x32xf32> to vector<1x32xf32>
      %255 = arith.index_cast %arg20 : i32 to index
      %c0_89 = arith.constant 0 : index
      %c0_90 = arith.constant 0 : index
      %256 = vector.load %arg12[%255, %c0_89, %c0_90] : memref<2x1x32xf32, #tpu.memory_space<vmem>>, vector<1x1x32xf32>
      %257 = vector.shape_cast %256 : vector<1x1x32xf32> to vector<1x32xf32>
      %cst_91 = arith.constant dense<0.000000e+00> : vector<64xf32>
      %258 = vector.multi_reduction <add>, %251, %cst_91 [1] : vector<64x32xf32> to vector<64xf32>
      %259 = vector.shape_cast %258 : vector<64xf32> to vector<64x1xf32>
      %cst_92 = arith.constant 3.200000e+01 : f32
      %260 = vector.broadcast %cst_92 : f32 to vector<64x1xf32>
      %261 = arith.divf %259, %260 : vector<64x1xf32>
      %262 = vector.broadcast %261 : vector<64x1xf32> to vector<64x32xf32>
      %263 = arith.subf %251, %262 : vector<64x32xf32>
      %264 = arith.mulf %263, %263 : vector<64x32xf32>
      %cst_93 = arith.constant dense<0.000000e+00> : vector<64xf32>
      %265 = vector.multi_reduction <add>, %264, %cst_93 [1] : vector<64x32xf32> to vector<64xf32>
      %266 = vector.shape_cast %265 : vector<64xf32> to vector<64x1xf32>
      %cst_94 = arith.constant 3.200000e+01 : f32
      %267 = vector.broadcast %cst_94 : f32 to vector<64x1xf32>
      %268 = arith.divf %266, %267 : vector<64x1xf32>
      %cst_95 = arith.constant 9.99999974E-6 : f32
      %269 = vector.broadcast %cst_95 : f32 to vector<64x1xf32>
      %270 = arith.addf %268, %269 : vector<64x1xf32>
      %271 = math.rsqrt %270 : vector<64x1xf32>
      %272 = vector.broadcast %271 : vector<64x1xf32> to vector<64x32xf32>
      %273 = arith.mulf %263, %272 : vector<64x32xf32>
      %274 = vector.broadcast %254 : vector<1x32xf32> to vector<64x32xf32>
      %275 = arith.mulf %273, %274 : vector<64x32xf32>
      %276 = vector.broadcast %257 : vector<1x32xf32> to vector<64x32xf32>
      %277 = arith.addf %275, %276 : vector<64x32xf32>
      %278 = arith.truncf %277 : vector<64x32xf32> to vector<64x32xbf16>
      %279 = arith.index_cast %arg20 : i32 to index
      %c0_96 = arith.constant 0 : index
      %c0_97 = arith.constant 0 : index
      %280 = vector.load %arg13[%279, %c0_96, %c0_97] : memref<2x32x64xbf16, #tpu.memory_space<vmem>>, vector<1x32x64xbf16>
      %281 = vector.shape_cast %280 : vector<1x32x64xbf16> to vector<32x64xbf16>
      %cst_98 = arith.constant dense<0.000000e+00> : vector<64x64xf32>
      %282 = tpu.matmul %278, %281, %cst_98 {dimension_numbers = #tpu.dot_dimension_numbers<[1], [0], [0], [1], [0, 0, 1, 1], [], []>} : vector<64x32xbf16>, vector<32x64xbf16>, vector<64x64xf32> -> vector<64x64xf32>
      %283 = arith.index_cast %arg20 : i32 to index
      %c0_99 = arith.constant 0 : index
      %c0_100 = arith.constant 0 : index
      %284 = vector.load %arg14[%283, %c0_99, %c0_100] : memref<2x1x64xf32, #tpu.memory_space<vmem>>, vector<1x1x64xf32>
      %285 = vector.shape_cast %284 : vector<1x1x64xf32> to vector<1x64xf32>
      %286 = vector.broadcast %285 : vector<1x64xf32> to vector<64x64xf32>
      %287 = arith.addf %282, %286 : vector<64x64xf32>
      %cst_101 = arith.constant 0.000000e+00 : f32
      %288 = vector.broadcast %cst_101 : f32 to vector<64x64xf32>
      %289 = arith.maximumf %287, %288 : vector<64x64xf32>
      %290 = arith.truncf %289 : vector<64x64xf32> to vector<64x64xbf16>
      %291 = arith.index_cast %arg20 : i32 to index
      %c0_102 = arith.constant 0 : index
      %c0_103 = arith.constant 0 : index
      %292 = vector.load %arg15[%291, %c0_102, %c0_103] : memref<2x64x32xbf16, #tpu.memory_space<vmem>>, vector<1x64x32xbf16>
      %293 = vector.shape_cast %292 : vector<1x64x32xbf16> to vector<64x32xbf16>
      %cst_104 = arith.constant dense<0.000000e+00> : vector<64x32xf32>
      %294 = tpu.matmul %290, %293, %cst_104 {dimension_numbers = #tpu.dot_dimension_numbers<[1], [0], [0], [1], [0, 0, 1, 1], [], []>} : vector<64x64xbf16>, vector<64x32xbf16>, vector<64x32xf32> -> vector<64x32xf32>
      %295 = arith.index_cast %arg20 : i32 to index
      %c0_105 = arith.constant 0 : index
      %c0_106 = arith.constant 0 : index
      %296 = vector.load %arg16[%295, %c0_105, %c0_106] : memref<2x1x32xf32, #tpu.memory_space<vmem>>, vector<1x1x32xf32>
      %297 = vector.shape_cast %296 : vector<1x1x32xf32> to vector<1x32xf32>
      %298 = vector.broadcast %297 : vector<1x32xf32> to vector<64x32xf32>
      %299 = arith.addf %294, %298 : vector<64x32xf32>
      %300 = arith.addf %251, %299 : vector<64x32xf32>
      scf.yield %300 : vector<64x32xf32>
    }
    %c2_i32_17 = arith.constant 2 : i32
    %44 = vector.shape_cast %43 : vector<64x32xf32> to vector<8x8x32xf32>
    %cst_18 = arith.constant 0.000000e+00 : f32
    %45 = vector.broadcast %cst_18 : f32 to vector<8x128xf32>
    %c0_19 = arith.constant 0 : index
    %c0_20 = arith.constant 0 : index
    %46 = vector.load %arg18[%c0_19, %c0_20] : memref<1x128xf32, #tpu.memory_space<vmem>>, vector<1x128xf32>
    %47 = vector.broadcast %46 : vector<1x128xf32> to vector<8x128xf32>
    %48 = arith.addf %45, %47 : vector<8x128xf32>
    %49 = vector.extract_strided_slice %44 {offsets = [0, 0, 0], sizes = [8, 1, 32], strides = [1, 1, 1]} : vector<8x8x32xf32> to vector<8x1x32xf32>
    %50 = vector.shape_cast %49 : vector<8x1x32xf32> to vector<8x32xf32>
    %51 = arith.truncf %50 : vector<8x32xf32> to vector<8x32xbf16>
    %c0_21 = arith.constant 0 : index
    %c0_22 = arith.constant 0 : index
    %c0_23 = arith.constant 0 : index
    %52 = vector.load %arg17[%c0_21, %c0_22, %c0_23] : memref<8x32x128xbf16, #tpu.memory_space<vmem>>, vector<1x32x128xbf16>
    %53 = vector.shape_cast %52 : vector<1x32x128xbf16> to vector<32x128xbf16>
    %cst_24 = arith.constant dense<0.000000e+00> : vector<8x128xf32>
    %54 = tpu.matmul %51, %53, %cst_24 {dimension_numbers = #tpu.dot_dimension_numbers<[1], [0], [0], [1], [0, 0, 1, 1], [], []>} : vector<8x32xbf16>, vector<32x128xbf16>, vector<8x128xf32> -> vector<8x128xf32>
    %55 = arith.addf %48, %54 : vector<8x128xf32>
    %56 = vector.extract_strided_slice %44 {offsets = [0, 1, 0], sizes = [8, 1, 32], strides = [1, 1, 1]} : vector<8x8x32xf32> to vector<8x1x32xf32>
    %57 = vector.shape_cast %56 : vector<8x1x32xf32> to vector<8x32xf32>
    %58 = arith.truncf %57 : vector<8x32xf32> to vector<8x32xbf16>
    %c1 = arith.constant 1 : index
    %c0_25 = arith.constant 0 : index
    %c0_26 = arith.constant 0 : index
    %59 = vector.load %arg17[%c1, %c0_25, %c0_26] : memref<8x32x128xbf16, #tpu.memory_space<vmem>>, vector<1x32x128xbf16>
    %60 = vector.shape_cast %59 : vector<1x32x128xbf16> to vector<32x128xbf16>
    %cst_27 = arith.constant dense<0.000000e+00> : vector<8x128xf32>
    %61 = tpu.matmul %58, %60, %cst_27 {dimension_numbers = #tpu.dot_dimension_numbers<[1], [0], [0], [1], [0, 0, 1, 1], [], []>} : vector<8x32xbf16>, vector<32x128xbf16>, vector<8x128xf32> -> vector<8x128xf32>
    %62 = arith.addf %55, %61 : vector<8x128xf32>
    %63 = vector.extract_strided_slice %44 {offsets = [0, 2, 0], sizes = [8, 1, 32], strides = [1, 1, 1]} : vector<8x8x32xf32> to vector<8x1x32xf32>
    %64 = vector.shape_cast %63 : vector<8x1x32xf32> to vector<8x32xf32>
    %65 = arith.truncf %64 : vector<8x32xf32> to vector<8x32xbf16>
    %c2 = arith.constant 2 : index
    %c0_28 = arith.constant 0 : index
    %c0_29 = arith.constant 0 : index
    %66 = vector.load %arg17[%c2, %c0_28, %c0_29] : memref<8x32x128xbf16, #tpu.memory_space<vmem>>, vector<1x32x128xbf16>
    %67 = vector.shape_cast %66 : vector<1x32x128xbf16> to vector<32x128xbf16>
    %cst_30 = arith.constant dense<0.000000e+00> : vector<8x128xf32>
    %68 = tpu.matmul %65, %67, %cst_30 {dimension_numbers = #tpu.dot_dimension_numbers<[1], [0], [0], [1], [0, 0, 1, 1], [], []>} : vector<8x32xbf16>, vector<32x128xbf16>, vector<8x128xf32> -> vector<8x128xf32>
    %69 = arith.addf %62, %68 : vector<8x128xf32>
    %70 = vector.extract_strided_slice %44 {offsets = [0, 3, 0], sizes = [8, 1, 32], strides = [1, 1, 1]} : vector<8x8x32xf32> to vector<8x1x32xf32>
    %71 = vector.shape_cast %70 : vector<8x1x32xf32> to vector<8x32xf32>
    %72 = arith.truncf %71 : vector<8x32xf32> to vector<8x32xbf16>
    %c3 = arith.constant 3 : index
    %c0_31 = arith.constant 0 : index
    %c0_32 = arith.constant 0 : index
    %73 = vector.load %arg17[%c3, %c0_31, %c0_32] : memref<8x32x128xbf16, #tpu.memory_space<vmem>>, vector<1x32x128xbf16>
    %74 = vector.shape_cast %73 : vector<1x32x128xbf16> to vector<32x128xbf16>
    %cst_33 = arith.constant dense<0.000000e+00> : vector<8x128xf32>
    %75 = tpu.matmul %72, %74, %cst_33 {dimension_numbers = #tpu.dot_dimension_numbers<[1], [0], [0], [1], [0, 0, 1, 1], [], []>} : vector<8x32xbf16>, vector<32x128xbf16>, vector<8x128xf32> -> vector<8x128xf32>
    %76 = arith.addf %69, %75 : vector<8x128xf32>
    %77 = vector.extract_strided_slice %44 {offsets = [0, 4, 0], sizes = [8, 1, 32], strides = [1, 1, 1]} : vector<8x8x32xf32> to vector<8x1x32xf32>
    %78 = vector.shape_cast %77 : vector<8x1x32xf32> to vector<8x32xf32>
    %79 = arith.truncf %78 : vector<8x32xf32> to vector<8x32xbf16>
    %c4 = arith.constant 4 : index
    %c0_34 = arith.constant 0 : index
    %c0_35 = arith.constant 0 : index
    %80 = vector.load %arg17[%c4, %c0_34, %c0_35] : memref<8x32x128xbf16, #tpu.memory_space<vmem>>, vector<1x32x128xbf16>
    %81 = vector.shape_cast %80 : vector<1x32x128xbf16> to vector<32x128xbf16>
    %cst_36 = arith.constant dense<0.000000e+00> : vector<8x128xf32>
    %82 = tpu.matmul %79, %81, %cst_36 {dimension_numbers = #tpu.dot_dimension_numbers<[1], [0], [0], [1], [0, 0, 1, 1], [], []>} : vector<8x32xbf16>, vector<32x128xbf16>, vector<8x128xf32> -> vector<8x128xf32>
    %83 = arith.addf %76, %82 : vector<8x128xf32>
    %84 = vector.extract_strided_slice %44 {offsets = [0, 5, 0], sizes = [8, 1, 32], strides = [1, 1, 1]} : vector<8x8x32xf32> to vector<8x1x32xf32>
    %85 = vector.shape_cast %84 : vector<8x1x32xf32> to vector<8x32xf32>
    %86 = arith.truncf %85 : vector<8x32xf32> to vector<8x32xbf16>
    %c5 = arith.constant 5 : index
    %c0_37 = arith.constant 0 : index
    %c0_38 = arith.constant 0 : index
    %87 = vector.load %arg17[%c5, %c0_37, %c0_38] : memref<8x32x128xbf16, #tpu.memory_space<vmem>>, vector<1x32x128xbf16>
    %88 = vector.shape_cast %87 : vector<1x32x128xbf16> to vector<32x128xbf16>
    %cst_39 = arith.constant dense<0.000000e+00> : vector<8x128xf32>
    %89 = tpu.matmul %86, %88, %cst_39 {dimension_numbers = #tpu.dot_dimension_numbers<[1], [0], [0], [1], [0, 0, 1, 1], [], []>} : vector<8x32xbf16>, vector<32x128xbf16>, vector<8x128xf32> -> vector<8x128xf32>
    %90 = arith.addf %83, %89 : vector<8x128xf32>
    %91 = vector.extract_strided_slice %44 {offsets = [0, 6, 0], sizes = [8, 1, 32], strides = [1, 1, 1]} : vector<8x8x32xf32> to vector<8x1x32xf32>
    %92 = vector.shape_cast %91 : vector<8x1x32xf32> to vector<8x32xf32>
    %93 = arith.truncf %92 : vector<8x32xf32> to vector<8x32xbf16>
    %c6 = arith.constant 6 : index
    %c0_40 = arith.constant 0 : index
    %c0_41 = arith.constant 0 : index
    %94 = vector.load %arg17[%c6, %c0_40, %c0_41] : memref<8x32x128xbf16, #tpu.memory_space<vmem>>, vector<1x32x128xbf16>
    %95 = vector.shape_cast %94 : vector<1x32x128xbf16> to vector<32x128xbf16>
    %cst_42 = arith.constant dense<0.000000e+00> : vector<8x128xf32>
    %96 = tpu.matmul %93, %95, %cst_42 {dimension_numbers = #tpu.dot_dimension_numbers<[1], [0], [0], [1], [0, 0, 1, 1], [], []>} : vector<8x32xbf16>, vector<32x128xbf16>, vector<8x128xf32> -> vector<8x128xf32>
    %97 = arith.addf %90, %96 : vector<8x128xf32>
    %98 = vector.extract_strided_slice %44 {offsets = [0, 7, 0], sizes = [8, 1, 32], strides = [1, 1, 1]} : vector<8x8x32xf32> to vector<8x1x32xf32>
    %99 = vector.shape_cast %98 : vector<8x1x32xf32> to vector<8x32xf32>
    %100 = arith.truncf %99 : vector<8x32xf32> to vector<8x32xbf16>
    %c7 = arith.constant 7 : index
    %c0_43 = arith.constant 0 : index
    %c0_44 = arith.constant 0 : index
    %101 = vector.load %arg17[%c7, %c0_43, %c0_44] : memref<8x32x128xbf16, #tpu.memory_space<vmem>>, vector<1x32x128xbf16>
    %102 = vector.shape_cast %101 : vector<1x32x128xbf16> to vector<32x128xbf16>
    %cst_45 = arith.constant dense<0.000000e+00> : vector<8x128xf32>
    %103 = tpu.matmul %100, %102, %cst_45 {dimension_numbers = #tpu.dot_dimension_numbers<[1], [0], [0], [1], [0, 0, 1, 1], [], []>} : vector<8x32xbf16>, vector<32x128xbf16>, vector<8x128xf32> -> vector<8x128xf32>
    %104 = arith.addf %97, %103 : vector<8x128xf32>
    %105 = vector.broadcast %16 : vector<8x1xf32> to vector<8x128xf32>
    %106 = arith.mulf %104, %105 : vector<8x128xf32>
    %107 = vector.broadcast %9 : vector<8x1xf32> to vector<8x128xf32>
    %108 = arith.addf %106, %107 : vector<8x128xf32>
    %c0_46 = arith.constant 0 : index
    %c0_47 = arith.constant 0 : index
    %109 = vector.load %arg19[%c0_46, %c0_47] : memref<8x128xf32, #tpu.memory_space<vmem>>, vector<8x128xf32>
    tpu.vector_store %arg19[%c0_46, %c0_47], %108 {strides = array<i32>} : memref<8x128xf32, #tpu.memory_space<vmem>>, vector<8x128xf32>,
    return
  }
  func.func @transform_0(%arg0: i32) -> (i32, i32, i32) {
    %c0_i32 = arith.constant 0 : i32
    %c0_i32_0 = arith.constant 0 : i32
    %c0_i32_1 = arith.constant 0 : i32
    return %arg0, %c0_i32, %c0_i32_0 : i32, i32, i32
  }
  func.func @transform_1(%arg0: i32) -> (i32, i32) {
    %c0_i32 = arith.constant 0 : i32
    %c0_i32_0 = arith.constant 0 : i32
    %c0_i32_1 = arith.constant 0 : i32
    return %c0_i32, %c0_i32_0 : i32, i32
  }
  func.func @transform_2(%arg0: i32) -> (i32, i32) {
    %c0_i32 = arith.constant 0 : i32
    %c0_i32_0 = arith.constant 0 : i32
    %c0_i32_1 = arith.constant 0 : i32
    return %c0_i32, %c0_i32_0 : i32, i32
  }
  func.func @transform_3(%arg0: i32) -> (i32, i32) {
    %c0_i32 = arith.constant 0 : i32
    %c0_i32_0 = arith.constant 0 : i32
    %c0_i32_1 = arith.constant 0 : i32
    return %c0_i32, %c0_i32_0 : i32, i32
  }
  func.func @transform_4(%arg0: i32) -> (i32, i32, i32) {
    %c0_i32 = arith.constant 0 : i32
    %c0_i32_0 = arith.constant 0 : i32
    %c0_i32_1 = arith.constant 0 : i32
    %c0_i32_2 = arith.constant 0 : i32
    return %c0_i32, %c0_i32_0, %c0_i32_1 : i32, i32, i32
  }
  func.func @transform_5(%arg0: i32) -> (i32, i32, i32) {
    %c0_i32 = arith.constant 0 : i32
    %c0_i32_0 = arith.constant 0 : i32
    %c0_i32_1 = arith.constant 0 : i32
    %c0_i32_2 = arith.constant 0 : i32
    return %c0_i32, %c0_i32_0, %c0_i32_1 : i32, i32, i32
  }
  func.func @transform_6(%arg0: i32) -> (i32, i32, i32) {
    %c0_i32 = arith.constant 0 : i32
    %c0_i32_0 = arith.constant 0 : i32
    %c0_i32_1 = arith.constant 0 : i32
    %c0_i32_2 = arith.constant 0 : i32
    return %c0_i32, %c0_i32_0, %c0_i32_1 : i32, i32, i32
  }
  func.func @transform_7(%arg0: i32) -> (i32, i32, i32) {
    %c0_i32 = arith.constant 0 : i32
    %c0_i32_0 = arith.constant 0 : i32
    %c0_i32_1 = arith.constant 0 : i32
    %c0_i32_2 = arith.constant 0 : i32
    return %c0_i32, %c0_i32_0, %c0_i32_1 : i32, i32, i32
  }
  func.func @transform_8(%arg0: i32) -> (i32, i32, i32) {
    %c0_i32 = arith.constant 0 : i32
    %c0_i32_0 = arith.constant 0 : i32
    %c0_i32_1 = arith.constant 0 : i32
    %c0_i32_2 = arith.constant 0 : i32
    return %c0_i32, %c0_i32_0, %c0_i32_1 : i32, i32, i32
  }
  func.func @transform_9(%arg0: i32) -> (i32, i32, i32) {
    %c0_i32 = arith.constant 0 : i32
    %c0_i32_0 = arith.constant 0 : i32
    %c0_i32_1 = arith.constant 0 : i32
    %c0_i32_2 = arith.constant 0 : i32
    return %c0_i32, %c0_i32_0, %c0_i32_1 : i32, i32, i32
  }
  func.func @transform_10(%arg0: i32) -> (i32, i32, i32) {
    %c0_i32 = arith.constant 0 : i32
    %c0_i32_0 = arith.constant 0 : i32
    %c0_i32_1 = arith.constant 0 : i32
    %c0_i32_2 = arith.constant 0 : i32
    return %c0_i32, %c0_i32_0, %c0_i32_1 : i32, i32, i32
  }
  func.func @transform_11(%arg0: i32) -> (i32, i32, i32) {
    %c0_i32 = arith.constant 0 : i32
    %c0_i32_0 = arith.constant 0 : i32
    %c0_i32_1 = arith.constant 0 : i32
    %c0_i32_2 = arith.constant 0 : i32
    return %c0_i32, %c0_i32_0, %c0_i32_1 : i32, i32, i32
  }
  func.func @transform_12(%arg0: i32) -> (i32, i32, i32) {
    %c0_i32 = arith.constant 0 : i32
    %c0_i32_0 = arith.constant 0 : i32
    %c0_i32_1 = arith.constant 0 : i32
    %c0_i32_2 = arith.constant 0 : i32
    return %c0_i32, %c0_i32_0, %c0_i32_1 : i32, i32, i32
  }
  func.func @transform_13(%arg0: i32) -> (i32, i32, i32) {
    %c0_i32 = arith.constant 0 : i32
    %c0_i32_0 = arith.constant 0 : i32
    %c0_i32_1 = arith.constant 0 : i32
    %c0_i32_2 = arith.constant 0 : i32
    return %c0_i32, %c0_i32_0, %c0_i32_1 : i32, i32, i32
  }
  func.func @transform_14(%arg0: i32) -> (i32, i32, i32) {
    %c0_i32 = arith.constant 0 : i32
    %c0_i32_0 = arith.constant 0 : i32
    %c0_i32_1 = arith.constant 0 : i32
    %c0_i32_2 = arith.constant 0 : i32
    return %c0_i32, %c0_i32_0, %c0_i32_1 : i32, i32, i32
  }
  func.func @transform_15(%arg0: i32) -> (i32, i32, i32) {
    %c0_i32 = arith.constant 0 : i32
    %c0_i32_0 = arith.constant 0 : i32
    %c0_i32_1 = arith.constant 0 : i32
    %c0_i32_2 = arith.constant 0 : i32
    return %c0_i32, %c0_i32_0, %c0_i32_1 : i32, i32, i32
  }
  func.func @transform_16(%arg0: i32) -> (i32, i32, i32) {
    %c0_i32 = arith.constant 0 : i32
    %c0_i32_0 = arith.constant 0 : i32
    %c0_i32_1 = arith.constant 0 : i32
    %c0_i32_2 = arith.constant 0 : i32
    return %c0_i32, %c0_i32_0, %c0_i32_1 : i32, i32, i32
  }
  func.func @transform_17(%arg0: i32) -> (i32, i32) {
    %c0_i32 = arith.constant 0 : i32
    %c0_i32_0 = arith.constant 0 : i32
    %c0_i32_1 = arith.constant 0 : i32
    return %c0_i32, %c0_i32_0 : i32, i32
  }
  func.func @transform_18(%arg0: i32) -> (i32, i32) {
    %c0_i32 = arith.constant 0 : i32
    %c0_i32_0 = arith.constant 0 : i32
    return %arg0, %c0_i32 : i32, i32
  }
}

</mosaic_0001>

<bundles_post_ra>
// kernel: model_forward.1
= control target key start
LH: loop header
LB: loop body
LE: loop exit
PB: predicated region body
PF: predicated region fallthrough
CT: control target
= control target key end

     0   :  { %s5020_s27 = smov 0   ;;  %s6733_s0 = inlined_call_operand.vmem [shape: f32[16,8,4], index: 0, kind: input, shape index: {}]   ;;  %s6734_s1 = inlined_call_operand.vmem [shape: bf16[4,32], index: 1, kind: input, shape index: {}]   ;;  %s6735_s2 = inlined_call_operand.vmem [shape: f32[1,32], index: 2, kind: input, shape index: {}]   ;;  %s6736_s3 = inlined_call_operand.vmem [shape: f32[8,32], index: 3, kind: input, shape index: {}]   ;;  %s6737_s4 = inlined_call_operand.vmem [shape: f32[2,1,32], index: 4, kind: input, shape index: {}]   ;;  %s6738_s5 = inlined_call_operand.vmem [shape: f32[2,1,32], index: 5, kind: input, shape index: {}]   ;;  %s6739_s6 = inlined_call_operand.vmem [shape: bf16[2,32,96], index: 6, kind: input, shape index: {}]   ;;  %s6740_s7 = inlined_call_operand.vmem [shape: f32[2,1,96], index: 7, kind: input, shape index: {}]   ;;  %s6741_s8 = inlined_call_operand.vmem [shape: bf16[2,32,32], index: 8, kind: input, shape index: {}]   ;;  %s6742_s9 = inlined_call_operand.vmem [shape: f32[2,1,32], index: 9, kind: input, shape index: {}]   ;;  %s6743_s10 = inlined_call_operand.vmem [shape: f32[2,1,32], index: 10, kind: input, shape index: {}]   ;;  %s6744_s11 = inlined_call_operand.vmem [shape: f32[2,1,32], index: 11, kind: input, shape index: {}]   ;;  %s6745_s12 = inlined_call_operand.vmem [shape: bf16[2,32,64], index: 12, kind: input, shape index: {}]   ;;  %s6746_s13 = inlined_call_operand.vmem [shape: f32[2,1,64], index: 13, kind: input, shape index: {}]   ;;  %s6747_s14 = inlined_call_operand.vmem [shape: bf16[2,64,32], index: 14, kind: input, shape index: {}]   ;;  %s6748_s15 = inlined_call_operand.vmem [shape: f32[2,1,32], index: 15, kind: input, shape index: {}]   ;;  %s6749_s16 = inlined_call_operand.vmem [shape: bf16[8,32,128], index: 16, kind: input, shape index: {}]   ;;  %s6750_s17 = inlined_call_operand.vmem [shape: f32[1,128], index: 17, kind: input, shape index: {}]   ;;  %s6751_s18 = inlined_call_operand.vmem [shape: f32[16,128], index: 18, kind: output, shape index: {}]  }
   0x1   :  { %6761 = sst [smem:[#allocation2_spill]] %s6733_s0 }
   0x2   :  { %6762 = sst [smem:[#allocation3_spill]] %s6734_s1 }
   0x3   :  { %6763 = sst [smem:[#allocation4_spill]] %s6735_s2 }
   0x4 LB: > { %s5026_s28 = sadd.s32 4294967295, %s4871_s27   ;;  %p4212_p0 = scmp.ge.s32.totalorder %s4871_s27, 1  ;;  %s4871_s27 = sphi %s5020_s27, %s28_s27  }
   0x5   : > { %p513_p1 = scmp.lt.s32.totalorder %s4871_s27, 3 }
   0x7   : > { %p514_p2 = pnand %p4212_p0, %p513_p1 }
   0x8   : > { %s4213_s29 = sshll.u32 (!%p514_p2), %s5026_s28, 3  ;;  %s6764_s1 = sld [smem:[#allocation2_spill]] (!%p514_p2) }
   0x9   : > { %517 = sbr.rel (%p514_p2) target bundleno = 4053 (0xfd5), region = 92  ;;  %p567_p3 = scmp.lt.s32.totalorder (!%p514_p2), %s4213_s29, 15 }
   0xa   : > { %p572_p4 = scmp.lt.s32.totalorder (!%p514_p2), %s5026_s28, 1  ;;  %s6765_s26 = sld [smem:[#allocation3_spill]] (!%p514_p2) }
   0xe   : > { %s7016_s29 = smov (!%p567_p3, %s4213_s29), 15  ;;  %vm6760_vm0 = vcmask 31744   ;;  %v618_v38 = vlaneseq  ;;  %vm6758_vm1 = vcmask 1041409   ;;  %vm6757_vm2 = vcmask 1042434   ;;  %s7018_s28 = smov (!%p572_p4, %s5026_s28), 1 }
   0xf   : > { %s4214_s30 = sshll.u32 %s7016_s29, 3  ;;  %vm6756_vm3 = vcmask 1043459   ;;  %vm6755_vm4 = vcmask 1044484   ;;  %vm6754_vm5 = vcmask 1045509   ;;  %vm6753_vm6 = vcmask 1046534   ;;  %s4215_s21 = sshll.u32 %s7018_s28, 3 }
  0x10   : > { %s5034_s20 = scalar_lea.vmem %s6764_s1, %s4214_s30  ;;  %v5100_v41 = vand.u32 127, %v618_v38  ;;  %vm6752_vm7 = vcmask 1047559   ;;  %vm6759_vm8 = vcmask 64512   ;;  %s5139_s23 = scalar_lea.vmem %s6751_s18, %s4215_s21  ;;  %vm906_vm9 = vcmask 1041408  }
  0x11   : > { %v5037_v0 = vld [vmem:[%s5034_s20 + $0x10] sm:$0xff]  ;;  %v5040_v1 = vld [vmem:[%s5034_s20] sm:$0xff]  ;;  %v5049_v5 = vld [vmem:[%s5034_s20 + $0x8] sm:$0xff]  ;;  %s6783_s30 = sld [smem:[#allocation4_spill]]  ;;  %s5325_s1 = smov 0  }
  0x12   : > { %v592_v2 = vsel %vm6760_vm0, %v5037_v0, 0.0  ;;  %v586_v3 = vsel %vm6760_vm0, %v5040_v1, 0.0  ;;  %v647_v4 = vmul.f32 %v5040_v1, %v5040_v1  ;;  %v5053_v7 = vld [vmem:[%s5034_s20 + $0x18] sm:$0xff]  ;;  %v648_v8 = vmul.f32 %v5049_v5, %v5049_v5  ;;  %v5065_v13 = vld [vmem:[%s5034_s20 + $0x20] sm:$0xff]  ;;  %v5068_v14 = vld [vmem:[%s5034_s20 + $0x28] sm:$0xff] }
  0x13   : > { %593 = vadd.xlane.f32.xlu1 %v592_v2  ;;  %587 = vadd.xlane.f32.xlu0 %v586_v3  ;;  %v595_v9 = vsel %vm6760_vm0, %v5053_v7, 0.0  ;;  %v589_v10 = vsel %vm6760_vm0, %v5049_v5, 0.0  ;;  %v649_v12 = vmul.f32 %v5037_v0, %v5037_v0  ;;  %v598_v16 = vsel %vm6760_vm0, %v5065_v13, 0.0  ;;  %v5078_v19 = vld [vmem:[%s5034_s20 + $0x30] sm:$0xff]  ;;  %v5089_v25 = vld [vmem:[%s5034_s20 + $0x38] sm:$0xff] }
  0x14   : > { %v655_v6 = vsel %vm6760_vm0, %v647_v4, 0.0  ;;  %v658_v11 = vsel %vm6760_vm0, %v648_v8, 0.0  ;;  %v601_v17 = vsel %vm6760_vm0, %v5068_v14, 0.0  ;;  %v650_v18 = vmul.f32 %v5053_v7, %v5053_v7 }
  0x15   : > { %656 = vadd.xlane.f32.xlu2 %v655_v6  ;;  %v661_v15 = vsel %vm6760_vm0, %v649_v12, 0.0  ;;  %v651_v20 = vmul.f32 %v5065_v13, %v5065_v13  ;;  %v604_v21 = vsel %vm6760_vm0, %v5078_v19, 0.0  ;;  %v652_v24 = vmul.f32 %v5068_v14, %v5068_v14 }
  0x16   : > { %v664_v22 = vsel %vm6760_vm0, %v650_v18, 0.0  ;;  %v653_v26 = vmul.f32 %v5078_v19, %v5078_v19  ;;  %v607_v28 = vsel %vm6760_vm0, %v5089_v25, 0.0  ;;  %v654_v30 = vmul.f32 %v5089_v25, %v5089_v25 }
  0x17   : > { %v667_v23 = vsel %vm6760_vm0, %v651_v20, 0.0  ;;  %v670_v27 = vsel %vm6760_vm0, %v652_v24, 0.0 }
  0x18   : > { %v673_v29 = vsel %vm6760_vm0, %v653_v26, 0.0  ;;  %v676_v31 = vsel %vm6760_vm0, %v654_v30, 0.0 }
  0x1b   : > { %596 = vadd.xlane.f32.xlu1 %v595_v9  ;;  %590 = vadd.xlane.f32.xlu0 %v589_v10 }
  0x1d   : > { %659 = vadd.xlane.f32.xlu2 %v658_v11 }
  0x23   : > { %662 = vadd.xlane.f32.xlu1 %v661_v15  ;;  %599 = vadd.xlane.f32.xlu0 %v598_v16 }
  0x25   : > { %602 = vadd.xlane.f32.xlu2 %v601_v17 }
  0x2b   : > { %605 = vadd.xlane.f32.xlu1 %v604_v21  ;;  %665 = vadd.xlane.f32.xlu0 %v664_v22 }
  0x2d   : > { %668 = vadd.xlane.f32.xlu2 %v667_v23 }
  0x33   : > { %671 = vadd.xlane.f32.xlu1 %v670_v27  ;;  %608 = vadd.xlane.f32.xlu0 %v607_v28  ;;  %v889_v27 = vld [vmem:[%s6765_s26] sm:$0x3] }
  0x34   : > { %v908_v28 = vsel %vm906_vm9, %v889_v27, 0 }
  0x35   : > { %674 = vadd.xlane.f32.xlu2 %v673_v29  ;;  %917 = vmatpush.bf16.msra.mxu0 %v908_v28 }
  0x36   : > { %4478 = vmatpush.bf16.msra.mxu1 %v908_v28  ;;  %4479 = vmatpush.bf16.msra.mxu2 %v908_v28 }
  0x37   : > { %4480 = vmatpush.bf16.msra.mxu3 %v908_v28 }
  0x3b   : > { %677 = vadd.xlane.f32.xlu0 %v676_v31 }
  0x86   : > { %v594_v32 = vpop.xlane.xlu1 %593  ;;  %v588_v33 = vpop.xlane.xlu0 %587 }
  0x87   : > { %v620_v44 = vperm.slane %v588_v33, %v5100_v41  ;;  %v622_v46 = vperm.slane %v594_v32, %v5100_v41 }
  0x88   : > { %v657_v34 = vpop.xlane.xlu2 %656 }
  0x89   : > { %v687_v59 = vperm.slane %v657_v34, %v5100_v41 }
  0x8e   : > { %v597_v35 = vpop.xlane.xlu1 %596  ;;  %v591_v36 = vpop.xlane.xlu0 %590 }
  0x8f   : > { %v621_v43 = vperm.slane %v591_v36, %v5100_v41  ;;  %v623_v49 = vperm.slane %v597_v35, %v5100_v41 }
  0x90   : > { %v660_v37 = vpop.xlane.xlu2 %659 }
  0x91   : > { %v629_v45 = vsel %vm6758_vm1, %v621_v43, %v620_v44  ;;  %v688_v53 = vperm.slane %v660_v37, %v5100_v41 }
  0x92   : > { %v631_v50 = vsel %vm6757_vm2, %v622_v46, %v629_v45 }
  0x93   : > { %v633_v54 = vsel %vm6756_vm3, %v623_v49, %v631_v50  ;;  %v695_v63 = vsel %vm6758_vm1, %v688_v53, %v687_v59 }
  0x96   : > { %v663_v39 = vpop.xlane.xlu1 %662  ;;  %v600_v40 = vpop.xlane.xlu0 %599 }
  0x97   : > { %v624_v51 = vperm.slane %v600_v40, %v5100_v41  ;;  %v689_v56 = vperm.slane %v663_v39, %v5100_v41 }
  0x98   : > { %v603_v42 = vpop.xlane.xlu2 %602 }
  0x99   : > { %v625_v55 = vperm.slane %v603_v42, %v5100_v41  ;;  %v635_v57 = vsel %vm6755_vm4, %v624_v51, %v633_v54  ;;  %v696_v4 = vsel %vm6757_vm2, %v689_v56, %v695_v63 }
  0x9b   : > { %v637_v2 = vsel %vm6754_vm5, %v625_v55, %v635_v57 }
  0x9e   : > { %v606_v47 = vpop.xlane.xlu1 %605  ;;  %v666_v48 = vpop.xlane.xlu0 %665 }
  0x9f   : > { %v626_v58 = vperm.slane %v606_v47, %v5100_v41  ;;  %v690_v60 = vperm.slane %v666_v48, %v5100_v41 }
  0xa0   : > { %v669_v52 = vpop.xlane.xlu2 %668 }
  0xa1   : > { %v691_v6 = vperm.slane %v669_v52, %v5100_v41  ;;  %v639_v8 = vsel %vm6753_vm6, %v626_v58, %v637_v2  ;;  %v697_v9 = vsel %vm6756_vm3, %v690_v60, %v696_v4 }
  0xa3   : > { %v698_v16 = vsel %vm6755_vm4, %v691_v6, %v697_v9 }
  0xa6   : > { %v672_v61 = vpop.xlane.xlu1 %671  ;;  %v609_v62 = vpop.xlane.xlu0 %608 }
  0xa7   : > { %v627_v3 = vperm.slane %v609_v62, %v5100_v41  ;;  %v692_v10 = vperm.slane %v672_v61, %v5100_v41 }
  0xa8   : > { %v675_v11 = vpop.xlane.xlu2 %674 }
  0xa9   : > { %v641_v12 = vsel %vm6752_vm7, %v627_v3, %v639_v8  ;;  %v693_v17 = vperm.slane %v675_v11, %v5100_v41  ;;  %v699_v18 = vsel %vm6754_vm5, %v692_v10, %v698_v16 }
  0xaa   : > { %v644_v15 = vsel %vm6759_vm8, %v641_v12, 0.0 }
  0xab   : > { %645 = vadd.xlane.f32.xlu1 %v644_v15  ;;  %v700_v22 = vsel %vm6753_vm6, %v693_v17, %v699_v18 }
  0xae   : > { %v678_v20 = vpop.xlane.xlu0 %677 }
  0xaf   : > { %v694_v21 = vperm.slane %v678_v20, %v5100_v41 }
  0xb1   : > { %v701_v23 = vsel %vm6752_vm7, %v694_v21, %v700_v22 }
  0xb2   : > { %v703_v24 = vsel %vm6759_vm8, %v701_v23, 0.0 }
  0xb3   : > { %704 = vadd.xlane.f32.xlu2 %v703_v24 }
 0x11e   : > { %v646_v26 = vpop.xlane.xlu1 %645 }
 0x11f   : > { %v5144_v29 = vmul.f32 0.0625, %v646_v26 }
 0x121   : > { %v708_v31 = vmul.f32 %v5144_v29, %v5144_v29  ;;  %v724_v46 = vperm.slane %v5144_v29, 0  ;;  %v725_v47 = vperm.slane %v5144_v29, 1  ;;  %v726_v48 = vperm.slane %v5144_v29, 2 }
 0x122   : > { %v727_v51 = vperm.slane %v5144_v29, 3  ;;  %v728_v53 = vperm.slane %v5144_v29, 4  ;;  %v729_v54 = vperm.slane %v5144_v29, 5 }
 0x123   : > { %v5170_v56 = vsub.f32 %v5040_v1, %v724_v46  ;;  %v5173_v57 = vsub.f32 %v5049_v5, %v725_v47  ;;  %v5181_v60 = vsub.f32 %v5037_v0, %v726_v48 }
 0x124   : > { %v5184_v61 = vsub.f32 %v5053_v7, %v727_v51  ;;  %v5189_v5 = vsub.f32 %v5065_v13, %v728_v53  ;;  %v5192_v62 = vsub.f32 %v5068_v14, %v729_v54 }
 0x126   : > { %v705_v30 = vpop.xlane.xlu2 %704 }
 0x127   : > { %v707_v32 = vmul.f32 0.0625, %v705_v30 }
 0x129   : > { %v709_v33 = vsub.f32 %v707_v32, %v708_v31 }
 0x12b   : > { %v710_v34 = vadd.f32 1e-05, %v709_v33 }
 0x12d   : > { %4580 = vrsqrt.f32 %v710_v34  ;;  %vm718_vm10 = vcmp.eq.f32.partialorder %v710_v34, inf  ;;  %v721_v43 = vand.u32 2147483648, %v710_v34  ;;  %vm720_vm11 = vcmp.eq.f32.partialorder %v710_v34, 0.0 }
 0x133   : > { %v4581_v35 = vpop.eup %4580 }
 0x134   : > { %v712_v36 = vmul.f32 %v4581_v35, %v710_v34 }
 0x136   : > { %v713_v37 = vmul.f32 %v4581_v35, %v712_v36 }
 0x138   : > { %v714_v38 = vmul.f32 0.5, %v713_v37 }
 0x13a   : > { %v715_v39 = vsub.f32 1.5, %v714_v38 }
 0x13c   : > { %v716_v40 = vmul.f32 %v4581_v35, %v715_v39 }
 0x13e   : > { %v717_v42 = vmul.f32 %v716_v40, %v710_v34 }
 0x140   : > { %v719_v44 = vsel %vm718_vm10, %v710_v34, %v717_v42 }
 0x141   : > { %v5148_v45 = vsel %vm720_vm11, %v721_v43, %v719_v44 }
 0x142   : > { %v5154_v49 = vperm.slane %v5148_v45, 0  ;;  %v5157_v50 = vperm.slane %v5148_v45, 1  ;;  %v5161_v52 = vperm.slane %v5148_v45, 2  ;;  %v5167_v55 = vperm.slane %v5148_v45, 3 }
 0x143   : > { %v5177_v58 = vperm.slane %v5148_v45, 4  ;;  %v5195_v63 = vperm.slane %v5148_v45, 5  ;;  %v5205_v13 = vperm.slane %v5148_v45, 6  ;;  %v5210_v8 = vperm.slane %v5148_v45, 7 }
 0x144   : > { %4582 = vrcp.f32 %v5154_v49  ;;  %v776_v59 = vand.u32 2147483648, %v5154_v49  ;;  %v774_v1 = vand.u32 2147483647, %v5154_v49  ;;  %v789_v2 = vand.u32 2147483647, %v5157_v50 }
 0x145   : > { %4584 = vrcp.f32 %v5157_v50  ;;  %v791_v0 = vand.u32 2147483648, %v5157_v50  ;;  %v806_v7 = vand.u32 2147483648, %v5161_v52  ;;  %v804_v3 = vand.u32 2147483647, %v5161_v52 }
 0x146   : > { %4586 = vrcp.f32 %v5161_v52  ;;  %v821_v4 = vand.u32 2147483648, %v5167_v55  ;;  %vm770_vm12 = vweird.f32 %v5154_v49  ;;  %v777_v6 = vor.u32 1.1754944e-38, %v776_v59 }
 0x147   : > { %4588 = vrcp.f32 %v5167_v55  ;;  %vm785_vm13 = vweird.f32 %v5157_v50  ;;  %vm5213_vm14 = vcmp.eq.f32.partialorder %v774_v1, 8.507059e+37  ;;  %vm800_vm15 = vweird.f32 %v5161_v52 }
 0x148   : > { %4590 = vrcp.f32 %v5177_v58  ;;  %v819_v12 = vand.u32 2147483647, %v5167_v55  ;;  %vm5221_vm9 = vcmp.eq.f32.partialorder %v789_v2, 8.507059e+37  ;;  %v792_v18 = vor.u32 1.1754944e-38, %v791_v0 }
 0x149   : > { %4592 = vrcp.f32 %v5195_v63  ;;  %v807_v20 = vor.u32 1.1754944e-38, %v806_v7  ;;  %v834_v21 = vand.u32 2147483647, %v5177_v58  ;;  %vm5227_vm10 = vcmp.eq.f32.partialorder %v804_v3, 8.507059e+37 }
 0x14a   : > { %v4583_v14 = vpop.eup %4582  ;;  %v822_v26 = vor.u32 1.1754944e-38, %v821_v4  ;;  %v836_v27 = vand.u32 2147483648, %v5177_v58  ;;  %4594 = vrcp.f32 %v5205_v13  ;;  %vm5236_vm3 = vcmp.eq.f32.partialorder %v819_v12, 8.507059e+37 }
 0x14b   : > { %v4585_v9 = vpop.eup %4584  ;;  %v766_v10 = vmul.f32 %v4583_v14, %v5154_v49  ;;  %vm771_vm7 = vweird.f32 %v4583_v14  ;;  %vm5241_vm2 = vcmp.eq.f32.partialorder %v834_v21, 8.507059e+37  ;;  %v849_v39 = vand.u32 2147483647, %v5195_v63 }
 0x14c   : > { %v4587_v15 = vpop.eup %4586  ;;  %v781_v16 = vmul.f32 %v4585_v9, %v5157_v50  ;;  %vm786_vm6 = vweird.f32 %v4585_v9  ;;  %v851_v40 = vand.u32 2147483648, %v5195_v63  ;;  %vm772_vm0 = vmor %vm770_vm12, %vm771_vm7  ;;  %4596 = vrcp.f32 %v5210_v8 }
 0x14d   : > { %v767_v22 = vsub.f32 1.0, %v766_v10  ;;  %v796_v23 = vmul.f32 %v4587_v15, %v5161_v52  ;;  %v4589_v28 = vpop.eup %4588  ;;  %vm801_vm4 = vweird.f32 %v4587_v15  ;;  %vm787_vm1 = vmor %vm785_vm13, %vm786_vm6  ;;  %vm850_vm13 = vcmp.eq.f32.partialorder %v849_v39, 8.507059e+37 }
 0x14e   : > { %v782_v30 = vsub.f32 1.0, %v781_v16  ;;  %v4591_v31 = vpop.eup %4590  ;;  %v811_v34 = vmul.f32 %v4589_v28, %v5167_v55  ;;  %vm816_vm8 = vweird.f32 %v4589_v28  ;;  %vm802_vm7 = vmor %vm800_vm15, %vm801_vm4  ;;  %vm6777_vm4 = vweird.f32 %v5177_v58 }
 0x14f   : > { %v768_v32 = vmul.f32 %v4583_v14, %v767_v22  ;;  %v797_v33 = vsub.f32 1.0, %v796_v23  ;;  %v826_v37 = vmul.f32 %v4591_v31, %v5177_v58  ;;  %v4593_v42 = vpop.eup %4592  ;;  %vm831_vm5 = vweird.f32 %v4591_v31 }
 0x150   : > { %v783_v36 = vmul.f32 %v4585_v9, %v782_v30  ;;  %v812_v46 = vsub.f32 1.0, %v811_v34  ;;  %v841_v51 = vmul.f32 %v4593_v42, %v5195_v63  ;;  %vm846_vm11 = vweird.f32 %v4593_v42  ;;  %v4595_v1 = vpop.eup %4594  ;;  %vm832_vm6 = vmor %vm6777_vm4, %vm831_vm5 }
 0x151   : > { %v769_v43 = vadd.f32 %v4583_v14, %v768_v32  ;;  %v798_v44 = vmul.f32 %v4587_v15, %v797_v33  ;;  %v827_v48 = vsub.f32 1.0, %v826_v37  ;;  %v852_v58 = vor.u32 1.1754944e-38, %v851_v40 }
 0x152   : > { %v784_v47 = vadd.f32 %v4585_v9, %v783_v36  ;;  %v813_v59 = vmul.f32 %v4589_v28, %v812_v46  ;;  %v842_v7 = vsub.f32 1.0, %v841_v51  ;;  %vm6779_vm5 = vcmask 31744  }
 0x153   : > { %v773_v53 = vsel %vm772_vm0, %v4583_v14, %v769_v43  ;;  %v799_v54 = vadd.f32 %v4587_v15, %v798_v44  ;;  %v828_v49 = vmul.f32 %v4591_v31, %v827_v48  ;;  %vm6776_vm0 = vweird.f32 %v5167_v55 }
 0x154   : > { %v778_v2 = vsel %vm5213_vm14, %v777_v6, %v773_v53  ;;  %v788_v0 = vsel %vm787_vm1, %v4585_v9, %v784_v47  ;;  %v814_v14 = vadd.f32 %v4589_v28, %v813_v59  ;;  %vm817_vm1 = vmor %vm6776_vm0, %vm816_vm8  ;;  %v843_v6 = vmul.f32 %v4593_v42, %v842_v7  ;;  %v4579_v53 = vld [vmem:[%s6783_s30] ss:$0 sm:$0xff] }
 0x155   : > { %v779_v3 = vmul.f32 %v778_v2, %v5170_v56  ;;  %v793_v50 = vsel %vm5221_vm9, %v792_v18, %v788_v0  ;;  %v803_v4 = vsel %vm802_vm7, %v4587_v15, %v799_v54  ;;  %v829_v52 = vadd.f32 %v4591_v31, %v828_v49 }
 0x156   : > { %v794_v10 = vmul.f32 %v793_v50, %v5173_v57  ;;  %v808_v11 = vsel %vm5227_vm10, %v807_v20, %v803_v4  ;;  %v818_v12 = vsel %vm817_vm1, %v4589_v28, %v814_v14  ;;  %v837_v56 = vor.u32 1.1754944e-38, %v836_v27  ;;  %v4597_v28 = vpop.eup %4596 }
 0x157   : > { %v809_v9 = vmul.f32 %v808_v11, %v5181_v60  ;;  %v856_v15 = vmul.f32 %v4595_v1, %v5205_v13  ;;  %v823_v16 = vsel %vm5236_vm3, %v822_v26, %v818_v12  ;;  %v833_v17 = vsel %vm832_vm6, %v4591_v31, %v829_v52 }
 0x158   : > { %v885_v57 = vpack.c.bf16 %v794_v10, %v779_v3  ;;  %v844_v18 = vadd.f32 %v4593_v42, %v843_v6  ;;  %v824_v55 = vmul.f32 %v823_v16, %v5184_v61  ;;  %v838_v20 = vsel %vm5241_vm2, %v837_v56, %v833_v17  ;;  %vm6780_vm2 = vmmov %vm6779_vm5 }
 0x159   : > { %vm6778_vm8 = vweird.f32 %v5195_v63  ;;  %v857_v60 = vsub.f32 1.0, %v856_v15  ;;  %v839_v21 = vmul.f32 %v838_v20, %v5189_v5  ;;  %vm861_vm3 = vweird.f32 %v4595_v1  ;;  %vm6781_vm14 = vmmov %vm6780_vm2 }
 0x15a   : > { %vm847_vm12 = vmor %vm6778_vm8, %vm846_vm11  ;;  %4216 = vmatmul.msk.bf16.vlgmr.msra.gmra.mxu0 %vm6779_vm5, %v885_v57  ;;  %v886_v23 = vpack.c.bf16 %v824_v55, %v809_v9  ;;  %v866_v30 = vand.u32 2147483648, %v5205_v13  ;;  %vm860_vm15 = vweird.f32 %v5205_v13  ;;  %v864_v5 = vand.u32 2147483647, %v5205_v13 }
 0x15b   : > { %v848_v22 = vsel %vm847_vm12, %v4593_v42, %v844_v18  ;;  %v858_v61 = vmul.f32 %v4595_v1, %v857_v60  ;;  %v871_v31 = vmul.f32 %v4597_v28, %v5210_v8  ;;  %vm862_vm9 = vmor %vm860_vm15, %vm861_vm3  ;;  %v730_v32 = vperm.slane %v5144_v29, 6 }
 0x15c   : > { %v853_v24 = vsel %vm850_vm13, %v852_v58, %v848_v22  ;;  %4217 = vmatmul.msk.bf16.vlgmr.msra.gmra.mxu1 %vm6780_vm2, %v886_v23  ;;  %v731_v34 = vperm.slane %v5144_v29, 7  ;;  %v867_v35 = vor.u32 1.1754944e-38, %v866_v30  ;;  %v881_v36 = vand.u32 2147483648, %v5210_v8  ;;  %vm6782_vm4 = vmmov %vm6780_vm2 }
 0x15d   : > { %v854_v26 = vmul.f32 %v853_v24, %v5192_v62  ;;  %v859_v63 = vadd.f32 %v4595_v1, %v858_v61  ;;  %v872_v33 = vsub.f32 1.0, %v871_v31  ;;  %vm865_vm10 = vcmp.eq.f32.partialorder %v864_v5, 8.507059e+37 }
 0x15e   : > { %vm876_vm11 = vweird.f32 %v4597_v28  ;;  %v879_v38 = vand.u32 2147483647, %v5210_v8  ;;  %v746_v13 = vsub.f32 %v5078_v19, %v730_v32  ;;  %vm875_vm7 = vweird.f32 %v5210_v8  ;;  %v939_v8 = vld [vmem:[%s6736_s3] sm:$0xff] }
 0x15f   : > { %v887_v27 = vpack.c.bf16 %v854_v26, %v839_v21  ;;  %v863_v62 = vsel %vm862_vm9, %v4595_v1, %v859_v63  ;;  %v873_v37 = vmul.f32 %v4597_v28, %v872_v33  ;;  %vm877_vm0 = vmor %vm875_vm7, %vm876_vm11  ;;  %v882_v42 = vor.u32 1.1754944e-38, %v881_v36 }
 0x160   : > { %v868_v39 = vsel %vm865_vm10, %v867_v35, %v863_v62  ;;  %v747_v43 = vsub.f32 %v5089_v25, %v731_v34  ;;  %vm880_vm1 = vcmp.eq.f32.partialorder %v879_v38, 8.507059e+37  ;;  %vm948_vm6 = vcmp.lt.s32.totalorder %v5100_v41, 4 }
 0x161   : > { %4218 = vmatmul.msk.bf16.vlgmr.msra.gmra.mxu2 %vm6781_vm14, %v887_v27  ;;  %v874_v40 = vadd.f32 %v4597_v28, %v873_v37  ;;  %v869_v44 = vmul.f32 %v868_v39, %v746_v13  ;;  %v4909_v0 = vmov -1e+30  }
 0x162   : > { %v5307_v49 = vsel %vm948_vm6, 0.0, %v4909_v0 }
 0x163   : > { %v878_v46 = vsel %vm877_vm0, %v4597_v28, %v874_v40 }
 0x164   : > { %v883_v47 = vsel %vm880_vm1, %v882_v42, %v878_v46 }
 0x165   : > { %v884_v48 = vmul.f32 %v883_v47, %v747_v43 }
 0x167   : > { %v888_v51 = vpack.c.bf16 %v884_v48, %v869_v44 }
 0x169   : > { %4219 = vmatmul.msk.bf16.vlgmr.msra.gmra.mxu3 %vm6782_vm4, %v888_v51 }
 0x1d7   : > { %v919_v19 = vpop.f32.mrf.mxu0 }
 0x1d8   : > { %v920_v54 = vadd.f32 %v4579_v53, %v919_v19 }
 0x1d9   : > { %v924_v25 = vpop.f32.mrf.mxu1 }
 0x1da   : > { %v940_v59 = vadd.f32 %v939_v8, %v920_v54   ;;  %v925_v1 = vadd.f32 %v4579_v53, %v924_v25 }
 0x1dc   : > { %v942_v2 = vadd.f32 %v939_v8, %v925_v1  }
 0x1df   : > { %v921_v7 = vpop.f32.mrf.mxu0 }
 0x1e0   : > { %v922_v3 = vadd.f32 %v4579_v53, %v921_v7 }
 0x1e1   : > { %v926_v4 = vpop.f32.mrf.mxu1 }
 0x1e2   : > { %v941_v50 = vadd.f32 %v939_v8, %v922_v3   ;;  %v927_v10 = vadd.f32 %v4579_v53, %v926_v4 }
 0x1e4   : > { %v929_v14 = vpop.f32.mrf.mxu2  ;;  %v943_v52 = vadd.f32 %v939_v8, %v927_v10  }
 0x1e5   : > { %v930_v11 = vadd.f32 %v4579_v53, %v929_v14 }
 0x1e7   : > { %v944_v6 = vadd.f32 %v939_v8, %v930_v11  }
 0x1ec   : > { %v931_v9 = vpop.f32.mrf.mxu2  ;;  %v934_v15 = vpop.f32.mrf.mxu3 }
 0x1ed   : > { %v932_v12 = vadd.f32 %v4579_v53, %v931_v9  ;;  %v935_v57 = vadd.f32 %v4579_v53, %v934_v15 }
 0x1ef   : > { %v945_v56 = vadd.f32 %v939_v8, %v932_v12   ;;  %v946_v16 = vadd.f32 %v939_v8, %v935_v57  }
 0x1f4   : > { %v936_v17 = vpop.f32.mrf.mxu3 }
 0x1f5   : > { %v937_v41 = vadd.f32 %v4579_v53, %v936_v17 }
 0x1f7   : > { %v947_v18 = vadd.f32 %v939_v8, %v937_v41  }
 0x1f8 LB: >> { %vm968_vm8 = vcmask 261120   ;;  %v4910_v61 = vmov 32.0   ;;  %s964_s22 = scalar_lea.vmem %s6737_s4, %s4907_s1  ;;  %s966_s25 = scalar_lea.vmem %s6738_s5, %s4907_s1  ;;  %s4907_s1 = sphi %s5325_s1, %s955_s1   ;;  %v4903_v59 = vphi %v940_v59, %v6959_v59   ;;  %v4899_v50 = vphi %v941_v50, %v6958_v50   ;;  %v4895_v2 = vphi %v942_v2, %v6957_v2   ;;  %v4891_v52 = vphi %v943_v52, %v6956_v52   ;;  %v4887_v6 = vphi %v944_v6, %v6955_v6   ;;  %v4883_v56 = vphi %v945_v56, %v6954_v56   ;;  %v4879_v16 = vphi %v946_v16, %v6953_v16   ;;  %v4875_v18 = vphi %v947_v18, %v6952_v18  }
 0x1f9   : >> { %v969_v55 = vsel %vm968_vm8, %v4903_v59, 0.0  ;;  %v975_v20 = vsel %vm968_vm8, %v4895_v2, 0.0  ;;  %v981_v58 = vsel %vm968_vm8, %v4887_v6, 0.0  ;;  %v972_v60 = vsel %vm968_vm8, %v4899_v50, 0.0  ;;  %s1185_s29 = scalar_lea.vmem %s6740_s7, %s4907_s1  ;;  %s5441_s30 = sshll.u32 %s4907_s1, 4 }
 0x1fa   : >> { %970 = vadd.xlane.f32.xlu2 %v969_v55  ;;  %976 = vadd.xlane.f32.xlu0 %v975_v20  ;;  %v978_v21 = vsel %vm968_vm8, %v4891_v52, 0.0  ;;  %v984_v22 = vsel %vm968_vm8, %v4883_v56, 0.0  ;;  %v987_v23 = vsel %vm968_vm8, %v4879_v16, 0.0  ;;  %v990_v24 = vsel %vm968_vm8, %v4875_v18, 0.0  ;;  %s1180_s20 = scalar_lea.vmem %s6739_s6, %s5441_s30  ;;  %s4911_s28 = smov 96  }
 0x1fb   : >> { %982 = vadd.xlane.f32.xlu1 %v981_v58  ;;  %4666 = vrcp.f32 %v4910_v61  ;;  %v4449_v61 = vld [vmem:[%s1180_s20] sm:$0xff]  ;;  %s4913_s0 = smov 88   ;;  %s4914_s19 = smov 120  }
 0x1fc   : >> { %s4916_s21 = smov 80   ;;  %s4917_s2 = smov 112  }
 0x1fd   : >> { %s4919_s24 = smov 72   ;;  %s4921_s26 = smov 40  }
 0x201   : >> { %v4667_v26 = vpop.eup %4666 }
 0x202   : >> { %973 = vadd.xlane.f32.xlu2 %v972_v60  ;;  %979 = vadd.xlane.f32.xlu0 %v978_v21  ;;  %v994_v27 = vmul.f32 32.0, %v4667_v26  ;;  %vm998_vm12 = vweird.f32 %v4667_v26 }
 0x203   : >> { %985 = vadd.xlane.f32.xlu1 %v984_v22  ;;  %v4450_v22 = vld [vmem:[%s1180_s20 + $0x8] sm:$0xff]  ;;  %s4915_s20 = smov 56  }
 0x204   : >> { %v995_v63 = vsub.f32 1.0, %v994_v27  ;;  %4481 = vmatpush.bf16.msra.mxu3 %v4450_v22  ;;  %1220 = vmatpush.bf16.msra.mxu0 %v4450_v22 }
 0x206   : >> { %v996_v28 = vmul.f32 %v4667_v26, %v995_v63 }
 0x208   : >> { %v997_v30 = vadd.f32 %v4667_v26, %v996_v28  ;;  %4482 = vmatpush.bf16.msra.mxu3 %v4449_v61  ;;  %1221 = vmatpush.bf16.msra.mxu0 %v4449_v61 }
 0x20a   : >> { %988 = vadd.xlane.f32.xlu0 %v987_v23  ;;  %v5370_v5 = vsel %vm998_vm12, %v4667_v26, %v997_v30 }
 0x20b   : >> { %991 = vadd.xlane.f32.xlu1 %v990_v24 }
 0x26d   : >> { %v971_v31 = vpop.xlane.xlu2 %970  ;;  %v977_v32 = vpop.xlane.xlu0 %976 }
 0x26e   : >> { %v1002_v62 = vmul.f32 %v5370_v5, %v977_v32  ;;  %v983_v33 = vpop.xlane.xlu1 %982  ;;  %v1000_v48 = vmul.f32 %v5370_v5, %v971_v31 }
 0x26f   : >> { %v1004_v34 = vmul.f32 %v5370_v5, %v983_v33 }
 0x270   : >> { %v5375_v35 = vsub.f32 %v4895_v2, %v1002_v62  ;;  %v5406_v1 = vsub.f32 %v4903_v59, %v1000_v48 }
 0x271   : >> { %v5378_v36 = vsub.f32 %v4887_v6, %v1004_v34 }
 0x272   : >> { %v1018_v37 = vmul.f32 %v5375_v35, %v5375_v35  ;;  %v1016_v12 = vmul.f32 %v5406_v1, %v5406_v1 }
 0x273   : >> { %v1020_v38 = vmul.f32 %v5378_v36, %v5378_v36 }
 0x274   : >> { %v1030_v39 = vsel %vm968_vm8, %v1018_v37, 0.0  ;;  %v1024_v17 = vsel %vm968_vm8, %v1016_v12, 0.0 }
 0x275   : >> { %v974_v13 = vpop.xlane.xlu2 %973  ;;  %1031 = vadd.xlane.f32.xlu2 %v1030_v39  ;;  %v980_v40 = vpop.xlane.xlu0 %979  ;;  %v1036_v42 = vsel %vm968_vm8, %v1020_v38, 0.0 }
 0x276   : >> { %v1001_v43 = vmul.f32 %v5370_v5, %v974_v13  ;;  %v1003_v44 = vmul.f32 %v5370_v5, %v980_v40  ;;  %v986_v46 = vpop.xlane.xlu1 %985  ;;  %1037 = vadd.xlane.f32.xlu1 %v1036_v42 }
 0x277   : >> { %v1005_v47 = vmul.f32 %v5370_v5, %v986_v46 }
 0x278   : >> { %v5391_v51 = vsub.f32 %v4899_v50, %v1001_v43  ;;  %v5394_v53 = vsub.f32 %v4891_v52, %v1003_v44 }
 0x279   : >> { %v5397_v19 = vsub.f32 %v4883_v56, %v1005_v47 }
 0x27a   : >> { %v1019_v8 = vmul.f32 %v5394_v53, %v5394_v53  ;;  %v1017_v54 = vmul.f32 %v5391_v51, %v5391_v51 }
 0x27b   : >> { %v1021_v25 = vmul.f32 %v5397_v19, %v5397_v19 }
 0x27c   : >> { %v1033_v0 = vsel %vm968_vm8, %v1019_v8, 0.0  ;;  %v1027_v7 = vsel %vm968_vm8, %v1017_v54, 0.0 }
 0x27d   : >> { %v1039_v3 = vsel %vm968_vm8, %v1021_v25, 0.0  ;;  %1034 = vadd.xlane.f32.xlu0 %v1033_v0  ;;  %v989_v4 = vpop.xlane.xlu0 %988 }
 0x27e   : >> { %1040 = vadd.xlane.f32.xlu2 %v1039_v3  ;;  %v1006_v14 = vmul.f32 %v5370_v5, %v989_v4  ;;  %1028 = vadd.xlane.f32.xlu1 %v1027_v7  ;;  %v992_v10 = vpop.xlane.xlu1 %991 }
 0x27f   : >> { %v1007_v11 = vmul.f32 %v5370_v5, %v992_v10 }
 0x280   : >> { %v5414_v9 = vsub.f32 %v4879_v16, %v1006_v14 }
 0x281   : >> { %v5425_v57 = vsub.f32 %v4875_v18, %v1007_v11 }
 0x282   : >> { %v1022_v15 = vmul.f32 %v5414_v9, %v5414_v9 }
 0x283   : >> { %v1023_v55 = vmul.f32 %v5425_v57, %v5425_v57 }
 0x284   : >> { %v1042_v41 = vsel %vm968_vm8, %v1022_v15, 0.0 }
 0x285   : >> { %1025 = vadd.xlane.f32.xlu0 %v1024_v17  ;;  %v1045_v20 = vsel %vm968_vm8, %v1023_v55, 0.0 }
 0x286   : >> { %1043 = vadd.xlane.f32.xlu2 %v1042_v41 }
 0x28d   : >> { %1046 = vadd.xlane.f32.xlu0 %v1045_v20 }
 0x2e8   : >> { %v1032_v58 = vpop.xlane.xlu2 %1031 }
 0x2e9   : >> { %v1050_v60 = vmul.f32 %v1032_v58, %v5370_v5  ;;  %v1038_v21 = vpop.xlane.xlu1 %1037 }
 0x2ea   : >> { %v1052_v24 = vmul.f32 %v1038_v21, %v5370_v5 }
 0x2eb   : >> { %v1058_v23 = vadd.f32 1e-05, %v1050_v60 }
 0x2ec   : >> { %v5449_v26 = vadd.f32 1e-05, %v1052_v24 }
 0x2ed   : >> { %4668 = vrsqrt.f32 %v1058_v23  ;;  %vm1090_vm13 = vweird.f32 %v1058_v23 }
 0x2ee   : >> { %4670 = vrsqrt.f32 %v5449_v26  ;;  %vm1110_vm1 = vweird.f32 %v5449_v26 }
 0x2f0   : >> { %v1035_v27 = vpop.xlane.xlu0 %1034 }
 0x2f1   : >> { %v1041_v63 = vpop.xlane.xlu2 %1040  ;;  %v1051_v28 = vmul.f32 %v1035_v27, %v5370_v5  ;;  %v1029_v30 = vpop.xlane.xlu1 %1028 }
 0x2f2   : >> { %v1053_v31 = vmul.f32 %v1041_v63, %v5370_v5  ;;  %v1049_v32 = vmul.f32 %v1029_v30, %v5370_v5  ;;  %v5491_v63 = vld [vmem:[%s964_s22] ss:$0 sm:$0xff]  ;;  %s4918_s22 = smov 48  }
 0x2f3   : >> { %v4669_v62 = vpop.eup %4668  ;;  %v1059_v33 = vadd.f32 1e-05, %v1051_v28 }
 0x2f4   : >> { %v1085_v34 = vmul.f32 %v4669_v62, %v1058_v23  ;;  %v5455_v37 = vadd.f32 1e-05, %v1053_v31  ;;  %v1057_v38 = vadd.f32 1e-05, %v1049_v32  ;;  %v5458_v42 = vpop.eup %4670  ;;  %vm1091_vm5 = vweird.f32 %v4669_v62 }
 0x2f5   : >> { %4672 = vrsqrt.f32 %v1059_v33  ;;  %v1105_v0 = vmul.f32 %v5458_v42, %v5449_v26  ;;  %vm5471_vm2 = vmor %vm1090_vm13, %vm1091_vm5  ;;  %vm1100_vm14 = vweird.f32 %v1059_v33  ;;  %vm1111_vm4 = vweird.f32 %v5458_v42 }
 0x2f6   : >> { %v1086_v39 = vmul.f32 %v4669_v62, %v1085_v34  ;;  %4674 = vrsqrt.f32 %v5455_v37  ;;  %vm1080_vm9 = vweird.f32 %v1057_v38  ;;  %vm1120_vm11 = vweird.f32 %v5455_v37 }
 0x2f7   : >> { %4676 = vrsqrt.f32 %v1057_v38  ;;  %v1106_v41 = vmul.f32 %v5458_v42, %v1105_v0 }
 0x2f8   : >> { %v1087_v13 = vmul.f32 0.5, %v1086_v39  ;;  %v1026_v40 = vpop.xlane.xlu0 %1025 }
 0x2f9   : >> { %v1044_v43 = vpop.xlane.xlu2 %1043  ;;  %v1048_v44 = vmul.f32 %v1026_v40, %v5370_v5  ;;  %v1107_v28 = vmul.f32 0.5, %v1106_v41  ;;  %v5502_v40 = vld [vmem:[%s966_s25] ss:$0 sm:$0xff]  ;;  %s4920_s25 = smov 104  }
 0x2fa   : >> { %v1088_v46 = vsub.f32 1.5, %v1087_v13  ;;  %v1054_v48 = vmul.f32 %v1044_v43, %v5370_v5 }
 0x2fb   : >> { %v4673_v47 = vpop.eup %4672  ;;  %v5462_v8 = vadd.f32 1e-05, %v1048_v44  ;;  %v1108_v43 = vsub.f32 1.5, %v1107_v28 }
 0x2fc   : >> { %v5464_v54 = vpop.eup %4674  ;;  %v1089_v25 = vmul.f32 %v4669_v62, %v1088_v46  ;;  %v1095_v7 = vmul.f32 %v4673_v47, %v1059_v33  ;;  %v5476_v15 = vadd.f32 1e-05, %v1054_v48  ;;  %vm1101_vm3 = vweird.f32 %v4673_v47 }
 0x2fd   : >> { %v4677_v3 = vpop.eup %4676  ;;  %v1115_v4 = vmul.f32 %v5464_v54, %v5455_v37  ;;  %4678 = vrsqrt.f32 %v5462_v8  ;;  %vm1102_vm15 = vmor %vm1100_vm14, %vm1101_vm3  ;;  %vm1121_vm7 = vweird.f32 %v5464_v54  ;;  %vm1070_vm5 = vweird.f32 %v5462_v8 }
 0x2fe   : >> { %v1096_v14 = vmul.f32 %v4673_v47, %v1095_v7  ;;  %v1075_v10 = vmul.f32 %v4677_v3, %v1057_v38  ;;  %v1093_v17 = vsel %vm5471_vm2, %v4669_v62, %v1089_v25  ;;  %4680 = vrsqrt.f32 %v5476_v15  ;;  %vm5516_vm6 = vmor %vm1120_vm11, %vm1121_vm7 }
 0x2ff   : >> { %v1116_v12 = vmul.f32 %v5464_v54, %v1115_v4  ;;  %v1146_v27 = vmul.f32 %v1093_v17, %v5375_v35  ;;  %vm1081_vm10 = vweird.f32 %v4677_v3  ;;  %v1109_v4 = vmul.f32 %v5458_v42, %v1108_v43  ;;  %vm1112_vm2 = vmor %vm1110_vm1, %vm1111_vm4 }
 0x300   : >> { %v1097_v55 = vmul.f32 0.5, %v1096_v14  ;;  %v1076_v20 = vmul.f32 %v4677_v3, %v1075_v10  ;;  %v1047_v58 = vpop.xlane.xlu0 %1046  ;;  %vm5506_vm0 = vmor %vm1080_vm9, %vm1081_vm10  ;;  %vm6790_vm7 = vcmask 64512  }
 0x301   : >> { %v1055_v60 = vmul.f32 %v1047_v58, %v5370_v5  ;;  %v1117_v21 = vmul.f32 0.5, %v1116_v12  ;;  %v1157_v13 = vmul.f32 %v5491_v63, %v1146_v27 }
 0x302   : >> { %v1098_v22 = vsub.f32 1.5, %v1097_v55  ;;  %v1077_v23 = vmul.f32 0.5, %v1076_v20 }
 0x303   : >> { %v4679_v24 = vpop.eup %4678  ;;  %v5483_v61 = vadd.f32 1e-05, %v1055_v60  ;;  %v1118_v62 = vsub.f32 1.5, %v1117_v21  ;;  %v1168_v7 = vadd.f32 %v5502_v40, %v1157_v13 }
 0x304   : >> { %v1099_v30 = vmul.f32 %v4673_v47, %v1098_v22  ;;  %v1078_v31 = vsub.f32 1.5, %v1077_v23  ;;  %v1065_v32 = vmul.f32 %v4679_v24, %v5462_v8  ;;  %v4681_v44 = vpop.eup %4680  ;;  %vm1071_vm12 = vweird.f32 %v4679_v24 }
 0x305   : >> { %4682 = vrsqrt.f32 %v5483_v61  ;;  %v1119_v48 = vmul.f32 %v5464_v54, %v1118_v62  ;;  %v1125_v14 = vmul.f32 %v4681_v44, %v5476_v15  ;;  %vm1072_vm13 = vmor %vm1070_vm5, %vm1071_vm12  ;;  %vm1140_vm3 = vweird.f32 %v5483_v61 }
 0x306   : >> { %v1103_v33 = vsel %vm1102_vm15, %v4673_v47, %v1099_v30  ;;  %v1079_v35 = vmul.f32 %v4677_v3, %v1078_v31  ;;  %v1066_v34 = vmul.f32 %v4679_v24, %v1065_v32  ;;  %vm1130_vm15 = vweird.f32 %v5476_v15 }
 0x307   : >> { %v1147_v39 = vmul.f32 %v1103_v33, %v5394_v53  ;;  %v1123_v41 = vsel %vm5516_vm6, %v5464_v54, %v1119_v48  ;;  %v1126_v58 = vmul.f32 %v4681_v44, %v1125_v14  ;;  %vm1131_vm9 = vweird.f32 %v4681_v44 }
 0x308   : >> { %v1083_v53 = vsel %vm5506_vm0, %v4677_v3, %v1079_v35  ;;  %v1067_v46 = vmul.f32 0.5, %v1066_v34  ;;  %v1149_v21 = vmul.f32 %v1123_v41, %v5397_v19  ;;  %vm1132_vm11 = vmor %vm1130_vm15, %vm1131_vm9 }
 0x309   : >> { %v1158_v47 = vmul.f32 %v5491_v63, %v1147_v39  ;;  %v1145_v11 = vmul.f32 %v1083_v53, %v5391_v51  ;;  %v1113_v51 = vsel %vm1112_vm2, %v5458_v42, %v1109_v4  ;;  %v1127_v27 = vmul.f32 0.5, %v1126_v58  ;;  %vm6791_vm0 = vmmov %vm6790_vm7 }
 0x30a   : >> { %v1068_v0 = vsub.f32 1.5, %v1067_v46  ;;  %v1148_v23 = vmul.f32 %v1113_v51, %v5378_v36  ;;  %v1160_v28 = vmul.f32 %v5491_v63, %v1149_v21  ;;  %vm6792_vm1 = vmmov %vm6791_vm0 }
 0x30b   : >> { %v4683_v37 = vpop.eup %4682  ;;  %v1169_v3 = vadd.f32 %v5502_v40, %v1158_v47  ;;  %v1156_v60 = vmul.f32 %v5491_v63, %v1145_v11  ;;  %v1128_v31 = vsub.f32 1.5, %v1127_v27  ;;  %vm6793_vm4 = vmmov %vm6791_vm0 }
 0x30c   : >> { %v1135_v10 = vmul.f32 %v4683_v37, %v5483_v61  ;;  %v1069_v12 = vmul.f32 %v4679_v24, %v1068_v0  ;;  %vm1141_vm14 = vweird.f32 %v4683_v37  ;;  %v1171_v19 = vadd.f32 %v5502_v40, %v1160_v28  ;;  %vm6794_vm6 = vmmov %vm6791_vm0 }
 0x30d   : >> { %v1175_v17 = vpack.c.bf16 %v1169_v3, %v1168_v7  ;;  %vm1142_vm10 = vmor %vm1140_vm3, %vm1141_vm14  ;;  %v1129_v62 = vmul.f32 %v4681_v44, %v1128_v31  ;;  %vm1560_vm14 = vcmask 1043456  }
 0x30e   : >> { %v1136_v55 = vmul.f32 %v4683_v37, %v1135_v10  ;;  %v1073_v20 = vsel %vm1072_vm13, %v4679_v24, %v1069_v12  ;;  %v1167_v24 = vadd.f32 %v5502_v40, %v1156_v60  ;;  %vm6795_vm12 = vmmov %vm6791_vm0 }
 0x30f   : >> { %4231 = vmatmul.msk.bf16.vlgmr.msra.gmra.mxu3 %vm968_vm8, %v1175_v17  ;;  %v1144_v8 = vmul.f32 %v1073_v20, %v5406_v1  ;;  %v1159_v1 = vmul.f32 %v5491_v63, %v1148_v23  ;;  %v1133_v61 = vsel %vm1132_vm11, %v4681_v44, %v1129_v62  ;;  %v4660_v44 = vld [vmem:[%s1185_s29] ss:$0 sm:$0xff]  ;;  %s4912_s29 = smov 64   ;;  %vm6796_vm5 = vmmov %vm6791_vm0 }
 0x310   : >> { %v1137_v54 = vmul.f32 0.5, %v1136_v55  ;;  %v1150_v39 = vmul.f32 %v1133_v61, %v5414_v9  ;;  %vm6797_vm13 = vmmov %vm6791_vm0 }
 0x311   : >> { %v1155_v22 = vmul.f32 %v5491_v63, %v1144_v8  ;;  %v1170_v32 = vadd.f32 %v5502_v40, %v1159_v1  ;;  %vm6798_vm2 = vmmov %vm6791_vm0 }
 0x312   : >> { %v1138_v42 = vsub.f32 1.5, %v1137_v54  ;;  %v1161_v15 = vmul.f32 %v5491_v63, %v1150_v39  ;;  %vm6799_vm3 = vmmov %vm6791_vm0 }
 0x313   : >> { %v1166_v26 = vadd.f32 %v5502_v40, %v1155_v22  ;;  %v1176_v33 = vpack.c.bf16 %v1171_v19, %v1170_v32  ;;  %vm6800_vm15 = vmmov %vm6791_vm0 }
 0x314   : >> { %v1139_v36 = vmul.f32 %v4683_v37, %v1138_v42  ;;  %v1172_v38 = vadd.f32 %v5502_v40, %v1161_v15  ;;  %vm6801_vm9 = vmmov %vm6791_vm0 }
 0x315   : >> { %v1174_v30 = vpack.c.bf16 %v1167_v24, %v1166_v26  ;;  %vm6803_vm11 = vmmov %vm6791_vm0 }
 0x316   : >> { %v1143_v35 = vsel %vm1142_vm10, %v4683_v37, %v1139_v36  ;;  %vm6802_vm10 = vmmov %vm6791_vm0 }
 0x317   : >> { %4230 = vmatmul.msk.bf16.vlgmr.msra.gmra.mxu0 %vm968_vm8, %v1174_v30  ;;  %v1151_v34 = vmul.f32 %v1143_v35, %v5425_v57 }
 0x319   : >> { %v1162_v13 = vmul.f32 %v5491_v63, %v1151_v34 }
 0x31b   : >> { %v1173_v43 = vadd.f32 %v5502_v40, %v1162_v13 }
 0x31d   : >> { %v1177_v53 = vpack.c.bf16 %v1173_v43, %v1172_v38 }
 0x31f   : >> { %4232 = vmatmul.msk.bf16.gmra.mxu3 %vm968_vm8, %v1176_v33 }
 0x32f   : >> { %4233 = vmatmul.msk.bf16.gmra.mxu3 %vm968_vm8, %v1177_v53 }
 0x392   : >> { %v1228_v46 = vpop.f32.mrf.mxu3 }
 0x393   : >> { %v1229_v57 = vadd.f32 %v4660_v44, %v1228_v46 }
 0x394   : >> { %v1223_v9 = vpop.f32.mrf.mxu0 }
 0x395   : >> { %v5563_v47 = vpack.c.bf16 %v1229_v57, %v1229_v57  ;;  %v1224_v48 = vadd.f32 %v4660_v44, %v1223_v9 }
 0x397   : >> { %v1300_v63 = vunpack.c.l.b16 %v5563_v47  ;;  %v5566_v37 = vpack.c.bf16 %v1224_v48, %v1224_v48 }
 0x399   : >> { %v5568_v25 = vpack.c.b16 %v1300_v63, %v1300_v63  ;;  %v1252_v40 = vunpack.c.l.b16 %v5566_v37 }
 0x39a   : >> { %v1230_v0 = vpop.f32.mrf.mxu3 }
 0x39b   : >> { %v1231_v7 = vadd.f32 %v4660_v44, %v1230_v0  ;;  %1302 = vrot.lane.b32.xlu2 %v5568_v25, %s4911_s28  ;;  %v5573_v3 = vpack.c.b16 %v1252_v40, %v1252_v40 }
 0x39c   : >> { %v1225_v14 = vpop.f32.mrf.mxu0 }
 0x39d   : >> { %v1246_v4 = vpack.c.bf16 %v1231_v7, %v1231_v7  ;;  %v1226_v10 = vadd.f32 %v4660_v44, %v1225_v14  ;;  %1254 = vrot.lane.b32.xlu1 %v5573_v3, %s4911_s28 }
 0x39f   : >> { %v1324_v11 = vunpack.c.l.b16 %v1246_v4  ;;  %v5577_v12 = vpack.c.bf16 %v1226_v10, %v1226_v10 }
 0x3a1   : >> { %v5579_v17 = vpack.c.b16 %v1324_v11, %v1324_v11  ;;  %v1276_v41 = vunpack.c.l.b16 %v5577_v12 }
 0x3a2   : >> { %v1233_v55 = vpop.f32.mrf.mxu3 }
 0x3a3   : >> { %v1234_v20 = vadd.f32 %v4660_v44, %v1233_v55  ;;  %1326 = vrot.lane.b32.xlu2 %v5579_v17, %s4911_s28  ;;  %v5584_v51 = vpack.c.b16 %v1276_v41, %v1276_v41 }
 0x3a5   : >> { %v5586_v58 = vpack.c.bf16 %v1234_v20, %v1234_v20  ;;  %1278 = vrot.lane.b32.xlu1 %v5584_v51, %s4911_s28 }
 0x3a7   : >> { %v1348_v8 = vunpack.c.l.b16 %v5586_v58 }
 0x3a9   : >> { %v5591_v60 = vpack.c.b16 %v1348_v8, %v1348_v8 }
 0x3aa   : >> { %v1235_v21 = vpop.f32.mrf.mxu3 }
 0x3ab   : >> { %v1236_v54 = vadd.f32 %v4660_v44, %v1235_v21  ;;  %1350 = vrot.lane.b32.xlu0 %v5591_v60, %s4911_s28 }
 0x3ad   : >> { %v5595_v22 = vpack.c.bf16 %v1236_v54, %v1236_v54 }
 0x3af   : >> { %v1372_v23 = vunpack.c.l.b16 %v5595_v22 }
 0x3b1   : >> { %v5598_v27 = vpack.c.b16 %v1372_v23, %v1372_v23 }
 0x3b2   : >> { %v1238_v26 = vpop.f32.mrf.mxu3 }
 0x3b3   : >> { %v1239_v24 = vadd.f32 %v4660_v44, %v1238_v26  ;;  %1374 = vrot.lane.b32.xlu1 %v5598_v27, %s4911_s28 }
 0x3b5   : >> { %v1249_v28 = vpack.c.bf16 %v1239_v24, %v1239_v24 }
 0x3b7   : >> { %v1396_v42 = vunpack.c.l.b16 %v1249_v28 }
 0x3b9   : >> { %v5602_v30 = vpack.c.b16 %v1396_v42, %v1396_v42 }
 0x3ba   : >> { %v1240_v1 = vpop.f32.mrf.mxu3 }
 0x3bb   : >> { %v1241_v31 = vadd.f32 %v4660_v44, %v1240_v1  ;;  %1398 = vrot.lane.b32.xlu2 %v5602_v30, %s4911_s28  ;;  %1598 = vrot.lane.b32.xlu1 %v5568_v25, %s4912_s29 }
 0x3bd   : >> { %v5607_v19 = vpack.c.bf16 %v1241_v31, %v1241_v31 }
 0x3bf   : >> { %v1420_v36 = vunpack.c.l.b16 %v5607_v19 }
 0x3c1   : >> { %v5610_v32 = vpack.c.b16 %v1420_v36, %v1420_v36 }
 0x3c3   : >> { %1619 = vrot.lane.b32.xlu2 %v5579_v17, %s4912_s29  ;;  %1422 = vrot.lane.b32.xlu0 %v5610_v32, %s4911_s28  ;;  %s4922_s28 = smov 16  }
 0x3c4   : >> { %1795 = vrot.lane.b32.xlu1 %v5579_v17, %s4913_s0 }
 0x3cb   : >> { %1577 = vrot.lane.b32.xlu2 %v5584_v51, %s4912_s29  ;;  %1555 = vrot.lane.b32.xlu0 %v5573_v3, %s4912_s29 }
 0x3cc   : >> { %1749 = vrot.lane.b32.xlu1 %v5584_v51, %s4913_s0 }
 0x3d3   : >> { %1661 = vrot.lane.b32.xlu2 %v5598_v27, %s4912_s29  ;;  %1682 = vrot.lane.b32.xlu0 %v5602_v30, %s4912_s29 }
 0x3d4   : >> { %1703 = vrot.lane.b32.xlu1 %v5610_v32, %s4912_s29 }
 0x3db   : >> { %1793 = vrot.lane.b32.xlu2 %v5579_v17, %s4914_s19  ;;  %1640 = vrot.lane.b32.xlu0 %v5591_v60, %s4912_s29  ;;  %s4923_s29 = smov 8  }
 0x3e3   : >> { %1772 = vrot.lane.b32.xlu0 %v5568_v25, %s4913_s0 }
 0x3eb   : >> { %1726 = vrot.lane.b32.xlu0 %v5573_v3, %s4913_s0 }
 0x3f3   : >> { %1770 = vrot.lane.b32.xlu0 %v5568_v25, %s4914_s19 }
 0x3f5   : >> { %v1303_v62 = vpop.permute.xlu2 %1302 }
 0x3f6   : >> { %v1308_v33 = vsel %vm6790_vm7, %v1303_v62, 0  ;;  %vm6804_vm7 = vmmov %vm6791_vm0 }
 0x3f7   : >> { %1317 = vmatpush.bf16.xpose.msrb.mxu3 %v1308_v33 }
 0x3fd   : >> { %v1327_v35 = vpop.permute.xlu2 %1326 }
 0x3fe   : >> { %4236 = vmatmul.msk.bf16.vlgmr.msrb.gmra.mxu3 %vm6791_vm0, %v5563_v47  ;;  %v1332_v61 = vsel %vm6792_vm1, %v1327_v35, 0  ;;  %vm6805_vm1 = vmmov %vm6791_vm0 }
 0x3ff   : >> { %1341 = vmatpush.bf16.xpose.msra.mxu1 %v1332_v61 }
 0x406   : >> { %4237 = vmatmul.msk.bf16.vlgmr.msra.gmra.mxu1 %vm6793_vm4, %v1246_v4  ;;  %vm6806_vm4 = vmmov %vm6791_vm0 }
 0x40f   : >> { %v1255_v34 = vpop.permute.xlu1 %1254 }
 0x410   : >> { %v1260_v39 = vsel %vm6794_vm6, %v1255_v34, 0  ;;  %vm6807_vm6 = vmmov %vm6791_vm0 }
 0x411   : >> { %1269 = vmatpush.bf16.xpose.msrb.mxu0 %v1260_v39 }
 0x415   : >> { %v1399_v13 = vpop.permute.xlu2 %1398 }
 0x416   : >> { %v1404_v15 = vsel %vm6795_vm12, %v1399_v13, 0  ;;  %vm6808_vm12 = vmmov %vm6791_vm0 }
 0x417   : >> { %1413 = vmatpush.bf16.xpose.msrb.mxu1 %v1404_v15  ;;  %v1279_v43 = vpop.permute.xlu1 %1278 }
 0x418   : >> { %v1284_v38 = vsel %vm6796_vm5, %v1279_v43, 0  ;;  %4234 = vmatmul.msk.bf16.vlgmr.msrb.gmra.mxu0 %vm6797_vm13, %v5566_v37  ;;  %vm6809_vm5 = vmmov %vm6791_vm0 }
 0x419   : >> { %1293 = vmatpush.bf16.xpose.msra.mxu0 %v1284_v38  ;;  %vm6810_vm13 = vmmov %vm6791_vm0 }
 0x41d   : >> { %v1620_v53 = vpop.permute.xlu2 %1619  ;;  %v1351_v44 = vpop.permute.xlu0 %1350 }
 0x41e   : >> { %4240 = vmatmul.msk.bf16.vlgmr.msrb.gmra.mxu1 %vm6798_vm2, %v1249_v28  ;;  %v1356_v46 = vsel %vm6799_vm3, %v1351_v44, 0  ;;  %v1625_v11 = vsel %vm1560_vm14, %v1620_v53, 0  ;;  %vm6811_vm2 = vmmov %vm6791_vm0 }
 0x41f   : >> { %1365 = vmatpush.bf16.xpose.msra.mxu2 %v1356_v46  ;;  %vm6812_vm3 = vmmov %vm6791_vm0 }
 0x425   : >> { %v1578_v57 = vpop.permute.xlu2 %1577  ;;  %v1375_v47 = vpop.permute.xlu1 %1374 }
 0x426   : >> { %v1583_v9 = vsel %vm1560_vm14, %v1578_v57, 0  ;;  %v1380_v48 = vsel %vm6800_vm15, %v1375_v47, 0  ;;  %4238 = vmatmul.msk.bf16.vlgmr.msra.gmra.mxu2 %vm6801_vm9, %v5586_v58  ;;  %vm6813_vm15 = vmmov %vm6791_vm0 }
 0x427   : >> { %1389 = vmatpush.bf16.xpose.msra.mxu3 %v1380_v48  ;;  %1592 = vmatpush.bf16.msra.mxu1 %v1583_v9  ;;  %vm6814_vm9 = vmmov %vm6791_vm0 }
 0x428   : >> { %4235 = vmatmul.msk.bf16.vlgmr.msra.gmra.mxu0 %vm6802_vm10, %v5577_v12  ;;  %vm6815_vm10 = vmmov %vm6791_vm0 }
 0x42d   : >> { %v1662_v63 = vpop.permute.xlu2 %1661  ;;  %v1599_v40 = vpop.permute.xlu1 %1598 }
 0x42e   : >> { %v1667_v37 = vsel %vm1560_vm14, %v1662_v63, 0  ;;  %4239 = vmatmul.msk.bf16.vlgmr.msra.gmra.mxu3 %vm6803_vm11, %v5595_v22  ;;  %v1604_v4 = vsel %vm1560_vm14, %v1599_v40, 0  ;;  %vm6816_vm11 = vmmov %vm6791_vm0 }
 0x42f   : >> { %1676 = vmatpush.bf16.msrb.mxu1 %v1667_v37 }
 0x435   : >> { %v1423_v0 = vpop.permute.xlu0 %1422 }
 0x436   : >> { %v1428_v7 = vsel %vm6804_vm7, %v1423_v0, 0  ;;  %vm6817_vm7 = vmmov %vm6791_vm0 }
 0x437   : >> { %1437 = vmatpush.bf16.xpose.msrb.mxu2 %v1428_v7 }
 0x43d   : >> { %v1556_v14 = vpop.permute.xlu0 %1555 }
 0x43e   : >> { %v1562_v10 = vsel %vm1560_vm14, %v1556_v14, 0  ;;  %4241 = vmatmul.msk.bf16.vlgmr.msrb.gmra.mxu2 %vm6791_vm0, %v5607_v19 }
 0x43f   : >> { %1613 = vmatpush.bf16.msra.mxu2 %v1604_v4  ;;  %1571 = vmatpush.bf16.msrb.mxu3 %v1562_v10 }
 0x443   : >> { %1634 = vmatpush.bf16.msra.mxu3 %v1625_v11 }
 0x445   : >> { %v1683_v12 = vpop.permute.xlu0 %1682 }
 0x446   : >> { %v1688_v41 = vsel %vm1560_vm14, %v1683_v12, 0 }
 0x447   : >> { %1697 = vmatpush.bf16.msrb.mxu2 %v1688_v41 }
 0x44d   : >> { %v1641_v55 = vpop.permute.xlu0 %1640 }
 0x44e   : >> { %v1646_v20 = vsel %vm1560_vm14, %v1641_v55, 0 }
 0x44f   : >> { %1655 = vmatpush.bf16.msrb.mxu0 %v1646_v20  ;;  %v5686_v20 = vpop.permute.xlu2 %1793 }
 0x455   : >> { %v5662_v58 = vpop.permute.xlu0 %1772 }
 0x45d   : >> { %v1727_v8 = vpop.permute.xlu0 %1726 }
 0x45e   : >> { %v1732_v21 = vsel %vm6805_vm1, %v1727_v8, 0  ;;  %v5688_v8 = vpop.permute.xlu1 %1795  ;;  %vm6818_vm1 = vmmov %vm6791_vm0 }
 0x45f   : >> { %1741 = vmatpush.bf16.xpose.msra.mxu0 %v1732_v21 }
 0x481   : >> { %v1319_v54 = vpop.f32.mrf.mxu3 }
 0x482   : >> { %v1445_v22 = vmul.f32 0.35355338, %v1319_v54 }
 0x483   : >> { %v1343_v23 = vpop.f32.mrf.mxu1 }
 0x484   : >> { %v1453_v26 = vadd.f32 %v1445_v22, %v5307_v49  ;;  %v1446_v24 = vmul.f32 0.35355338, %v1343_v23  ;;  %v5690_v22 = vpop.permute.xlu1 %1749 }
 0x486   : >> { %v1454_v28 = vadd.f32 %v1446_v24, %v5307_v49  ;;  %v1465_v42 = vsel %vm6806_vm4, %v1453_v26, -inf  ;;  %vm6819_vm4 = vmmov %vm6791_vm0 }
 0x487   : >> { %1466 = vmax.xlane.f32.xlu2 %v1465_v42 }
 0x488   : >> { %v1468_v1 = vsel %vm6807_vm6, %v1454_v28, -inf  ;;  %vm6820_vm6 = vmmov %vm6791_vm0 }
 0x489   : >> { %v1321_v31 = vpop.f32.mrf.mxu3  ;;  %1469 = vmax.xlane.f32.xlu1 %v1468_v1 }
 0x48a   : >> { %v5698_v31 = vpop.permute.xlu0 %1770 }
 0x48b   : >> { %v1345_v19 = vpop.f32.mrf.mxu1 }
 0x48c   : >> { %v5696_v1 = vpop.permute.xlu1 %1703 }
 0x495   : >> { %v1271_v36 = vpop.f32.mrf.mxu0 }
 0x496   : >> { %v1443_v62 = vmul.f32 0.35355338, %v1271_v36 }
 0x498   : >> { %v1451_v33 = vadd.f32 %v1443_v62, %v5307_v49 }
 0x49a   : >> { %v1459_v61 = vsel %vm6808_vm12, %v1451_v33, -inf  ;;  %vm6821_vm12 = vmmov %vm6791_vm0 }
 0x49b   : >> { %v1415_v35 = vpop.f32.mrf.mxu1  ;;  %1460 = vmax.xlane.f32.xlu0 %v1459_v61 }
 0x49c   : >> { %v1449_v40 = vmul.f32 0.35355338, %v1415_v35 }
 0x49d   : >> { %v1273_v34 = vpop.f32.mrf.mxu0 }
 0x49e   : >> { %v1457_v4 = vadd.f32 %v1449_v40, %v5307_v49 }
 0x4a0   : >> { %v1477_v14 = vsel %vm6812_vm3, %v1457_v4, -inf  ;;  %vm6825_vm3 = vmmov %vm6791_vm0 }
 0x4a3   : >> { %v1417_v39 = vpop.f32.mrf.mxu1 }
 0x4a5   : >> { %v1295_v13 = vpop.f32.mrf.mxu0 }
 0x4a6   : >> { %v1444_v15 = vmul.f32 0.35355338, %v1295_v13 }
 0x4a8   : >> { %v1452_v43 = vadd.f32 %v1444_v15, %v5307_v49 }
 0x4a9   : >> { %v1367_v38 = vpop.f32.mrf.mxu2 }
 0x4aa   : >> { %v1447_v53 = vmul.f32 0.35355338, %v1367_v38  ;;  %v1462_v44 = vsel %vm6809_vm5, %v1452_v43, -inf  ;;  %vm6822_vm5 = vmmov %vm6791_vm0 }
 0x4ab   : >> { %1463 = vmax.xlane.f32.xlu0 %v1462_v44 }
 0x4ac   : >> { %v5674_v57 = vadd.f32 %v1447_v53, %v5307_v49 }
 0x4ad   : >> { %v1297_v46 = vpop.f32.mrf.mxu0 }
 0x4ae   : >> { %v1471_v63 = vsel %vm6810_vm13, %v5674_v57, -inf  ;;  %vm6823_vm13 = vmmov %vm6791_vm0 }
 0x4b1   : >> { %v1369_v47 = vpop.f32.mrf.mxu2  ;;  %v1391_v9 = vpop.f32.mrf.mxu3 }
 0x4b2   : >> { %v1448_v48 = vmul.f32 0.35355338, %v1391_v9 }
 0x4b3   : >> { %1472 = vmax.xlane.f32.xlu0 %v1471_v63 }
 0x4b4   : >> { %v1456_v37 = vadd.f32 %v1448_v48, %v5307_v49 }
 0x4b6   : >> { %v1474_v0 = vsel %vm6811_vm2, %v1456_v37, -inf  ;;  %vm6824_vm2 = vmmov %vm6791_vm0 }
 0x4b7   : >> { %1475 = vmax.xlane.f32.xlu2 %v1474_v0 }
 0x4b9   : >> { %v1393_v7 = vpop.f32.mrf.mxu3 }
 0x4bf   : >> { %1478 = vmax.xlane.f32.xlu2 %v1477_v14 }
 0x4c1   : >> { %v1439_v10 = vpop.f32.mrf.mxu2 }
 0x4c2   : >> { %v1450_v11 = vmul.f32 0.35355338, %v1439_v10 }
 0x4c4   : >> { %v1458_v12 = vadd.f32 %v1450_v11, %v5307_v49 }
 0x4c6   : >> { %v1480_v41 = vsel %vm6813_vm15, %v1458_v12, -inf  ;;  %vm6826_vm15 = vmmov %vm6791_vm0 }
 0x4c7   : >> { %1481 = vmax.xlane.f32.xlu1 %v1480_v41  ;;  %1747 = vrot.lane.b32.xlu0 %v5584_v51, %s4914_s19 }
 0x4c9   : >> { %v1441_v55 = vpop.f32.mrf.mxu2 }
 0x4fa   : >> { %v1467_v21 = vpop.xlane.xlu2 %1466 }
 0x4fb   : >> { %v1485_v54 = vsub.f32 %v1453_v26, %v1467_v21 }
 0x4fc   : >> { %v1470_v19 = vpop.xlane.xlu1 %1469 }
 0x4fd   : >> { %v1495_v23 = vmul.f32 1.442695, %v1485_v54  ;;  %v1486_v35 = vsub.f32 %v1454_v28, %v1470_v19 }
 0x4ff   : >> { %4684 = vpow2.f32 %v1495_v23  ;;  %v1497_v26 = vmul.f32 1.442695, %v1486_v35 }
 0x505   : >> { %v5692_v24 = vpop.eup %4684 }
 0x506   : >> { %v1513_v42 = vsel %vm6814_vm9, %v5692_v24, 0.0  ;;  %vm6827_vm9 = vmmov %vm6791_vm0 }
 0x507   : >> { %1514 = vadd.xlane.f32.xlu2 %v1513_v42 }
 0x50e   : >> { %v1461_v36 = vpop.xlane.xlu0 %1460 }
 0x50f   : >> { %v1483_v62 = vsub.f32 %v1451_v33, %v1461_v36 }
 0x511   : >> { %v1491_v61 = vmul.f32 1.442695, %v1483_v62  ;;  %v1778_v62 = vsel %vm6821_vm12, %v5662_v58, 0  ;;  %vm6834_vm12 = vmmov %vm6791_vm0 }
 0x513   : >> { %4686 = vpow2.f32 %v1491_v61 }
 0x514   : >> { %4688 = vpow2.f32 %v1497_v26 }
 0x519   : >> { %v5700_v34 = vpop.eup %4686 }
 0x51a   : >> { %v1507_v39 = vsel %vm6815_vm10, %v5700_v34, 0.0  ;;  %v5704_v15 = vpop.eup %4688  ;;  %vm6828_vm10 = vmmov %vm6791_vm0 }
 0x51b   : >> { %1508 = vadd.xlane.f32.xlu1 %v1507_v39  ;;  %v1516_v44 = vsel %vm6816_vm11, %v5704_v15, 0.0  ;;  %v1709_v39 = vsel %vm1560_vm14, %v5696_v1, 0  ;;  %vm6829_vm11 = vmmov %vm6791_vm0 }
 0x51e   : >> { %v1464_v13 = vpop.xlane.xlu0 %1463 }
 0x51f   : >> { %v1484_v38 = vsub.f32 %v1452_v43, %v1464_v13 }
 0x521   : >> { %v1493_v53 = vmul.f32 1.442695, %v1484_v38 }
 0x523   : >> { %4690 = vpow2.f32 %v1493_v53  ;;  %1517 = vadd.xlane.f32.xlu1 %v1516_v44 }
 0x526   : >> { %v1473_v10 = vpop.xlane.xlu0 %1472 }
 0x527   : >> { %v1487_v41 = vsub.f32 %v5674_v57, %v1473_v10 }
 0x529   : >> { %v5708_v28 = vpop.eup %4690  ;;  %v1499_v55 = vmul.f32 1.442695, %v1487_v41 }
 0x52a   : >> { %v1476_v33 = vpop.xlane.xlu2 %1475  ;;  %v1510_v47 = vsel %vm6817_vm7, %v5708_v28, 0.0  ;;  %vm6830_vm7 = vmmov %vm6791_vm0 }
 0x52b   : >> { %v1488_v46 = vsub.f32 %v1456_v37, %v1476_v33  ;;  %1511 = vadd.xlane.f32.xlu2 %v1510_v47 }
 0x52d   : >> { %v1501_v9 = vmul.f32 1.442695, %v1488_v46 }
 0x52f   : >> { %4692 = vpow2.f32 %v1501_v9  ;;  %v1801_v9 = vsel %vm6824_vm2, %v5688_v8, 0  ;;  %vm6837_vm2 = vmmov %vm6791_vm0 }
 0x532   : >> { %v1479_v48 = vpop.xlane.xlu2 %1478 }
 0x533   : >> { %v1489_v63 = vsub.f32 %v1457_v4, %v1479_v48  ;;  %v1755_v48 = vsel %vm6825_vm3, %v5690_v22, 0  ;;  %vm6838_vm3 = vmmov %vm6791_vm0 }
 0x535   : >> { %v5712_v40 = vpop.eup %4692  ;;  %v1503_v43 = vmul.f32 1.442695, %v1489_v63 }
 0x536   : >> { %v1522_v0 = vsel %vm6791_vm0, %v5712_v40, 0.0 }
 0x537   : >> { %4694 = vpow2.f32 %v1503_v43  ;;  %1523 = vadd.xlane.f32.xlu0 %v1522_v0 }
 0x539   : >> { %v1748_v38 = vpop.permute.xlu0 %1747 }
 0x53a   : >> { %v1482_v4 = vpop.xlane.xlu1 %1481 }
 0x53b   : >> { %v1490_v14 = vsub.f32 %v1458_v12, %v1482_v4 }
 0x53c   : >> { %1724 = vrot.lane.b32.xlu1 %v5573_v3, %s4914_s19 }
 0x53d   : >> { %v5716_v7 = vpop.eup %4694  ;;  %v1505_v11 = vmul.f32 1.442695, %v1490_v14 }
 0x53e   : >> { %v1525_v37 = vsel %vm6818_vm1, %v5716_v7, 0.0  ;;  %vm6831_vm1 = vmmov %vm6791_vm0 }
 0x53f   : >> { %1526 = vadd.xlane.f32.xlu0 %v1525_v37  ;;  %4696 = vpow2.f32 %v1505_v11 }
 0x540   : >> { %4698 = vpow2.f32 %v1499_v55 }
 0x543   : >> { %1864 = vrot.lane.b32.xlu2 %v5602_v30, %s4913_s0 }
 0x545   : >> { %v5729_v21 = vpop.eup %4696 }
 0x546   : >> { %v1528_v54 = vsel %vm6819_vm4, %v5729_v21, 0.0  ;;  %v5735_v12 = vpop.eup %4698  ;;  %vm6832_vm4 = vmmov %vm6791_vm0 }
 0x547   : >> { %v1519_v57 = vsel %vm6820_vm6, %v5735_v12, 0.0  ;;  %vm6833_vm6 = vmmov %vm6791_vm0 }
 0x553   : >> { %1818 = vrot.lane.b32.xlu0 %v5591_v60, %s4913_s0 }
 0x55b   : >> { %1885 = vrot.lane.b32.xlu0 %v5610_v32, %s4914_s19 }
 0x563   : >> { %2062 = vrot.lane.b32.xlu0 %v5568_v25, %s4915_s20 }
 0x566   : >> { %1529 = vadd.xlane.f32.xlu1 %v1528_v54 }
 0x56b   : >> { %2041 = vrot.lane.b32.xlu0 %v5584_v51, %s4915_s20 }
 0x56c   : >> { %1520 = vadd.xlane.f32.xlu2 %v1519_v57 }
 0x573   : >> { %2146 = vrot.lane.b32.xlu0 %v5602_v30, %s4915_s20 }
 0x57a   : >> { %v1515_v23 = vpop.xlane.xlu2 %1514 }
 0x57b   : >> { %4700 = vrcp.f32 %v1515_v23  ;;  %2125 = vrot.lane.b32.xlu0 %v5598_v27, %s4915_s20 }
 0x57f   : >> { %1887 = vrot.lane.b32.xlu1 %v5610_v32, %s4913_s0 }
 0x581   : >> { %v4701_v42 = vpop.eup %4700 }
 0x582   : >> { %v1541_v19 = vmul.f32 %v4701_v42, %v5692_v24 }
 0x583   : >> { %2236 = vrot.lane.b32.xlu0 %v5568_v25, %s4916_s21 }
 0x584   : >> { %v1549_v36 = vpack.c.bf16 %v1541_v19, %v1541_v19  ;;  %1841 = vrot.lane.b32.xlu2 %v5598_v27, %s4913_s0  ;;  %s4924_s0 = smov 24  }
 0x586   : >> { %4244 = vmatmul.msk.bf16.vlgmr.msra.gmra.mxu2 %vm6822_vm5, %v1549_v36  ;;  %vm6835_vm5 = vmmov %vm6791_vm0 }
 0x587   : >> { %1787 = vmatpush.bf16.xpose.msra.mxu2 %v1778_v62  ;;  %1862 = vrot.lane.b32.xlu1 %v5602_v30, %s4914_s19 }
 0x58b   : >> { %2213 = vrot.lane.b32.xlu0 %v5584_v51, %s4916_s21 }
 0x58c   : >> { %1816 = vrot.lane.b32.xlu2 %v5591_v60, %s4914_s19 }
 0x58e   : >> { %v1509_v24 = vpop.xlane.xlu1 %1508 }
 0x58f   : >> { %4702 = vrcp.f32 %v1509_v24  ;;  %1839 = vrot.lane.b32.xlu1 %v5598_v27, %s4914_s19  ;;  %s3526_s19 = scalar_lea.vmem %s6746_s13, %s4907_s1 }
 0x593   : >> { %2188 = vrot.lane.b32.xlu0 %v5573_v3, %s4917_s2 }
 0x594   : >> { %2083 = vrot.lane.b32.xlu2 %v5579_v17, %s4915_s20 }
 0x595   : >> { %v4703_v58 = vpop.eup %4702 }
 0x596   : >> { %v1539_v35 = vmul.f32 %v4703_v58, %v5700_v34  ;;  %v1518_v61 = vpop.xlane.xlu1 %1517 }
 0x597   : >> { %2020 = vrot.lane.b32.xlu1 %v5573_v3, %s4915_s20  ;;  %4704 = vrcp.f32 %v1518_v61 }
 0x598   : >> { %v1547_v26 = vpack.c.bf16 %v1539_v35, %v1539_v35 }
 0x59a   : >> { %4242 = vmatmul.msk.bf16.vlgmr.msrb.gmra.mxu3 %vm6823_vm13, %v1547_v26  ;;  %vm6836_vm13 = vmmov %vm6791_vm0 }
 0x59b   : >> { %1718 = vmatpush.bf16.msrb.mxu3 %v1709_v39 }
 0x59c   : >> { %2104 = vrot.lane.b32.xlu2 %v5591_v60, %s4915_s20 }
 0x59d   : >> { %v4705_v34 = vpop.eup %4704 }
 0x59e   : >> { %v1512_v13 = vpop.xlane.xlu2 %1511  ;;  %v1542_v53 = vmul.f32 %v4705_v34, %v5704_v15 }
 0x59f   : >> { %4706 = vrcp.f32 %v1512_v13  ;;  %2167 = vrot.lane.b32.xlu1 %v5610_v32, %s4915_s20  ;;  %s4457_s20 = sshll.u32 %s4907_s1, 5 }
 0x5a0   : >> { %v1550_v46 = vpack.c.bf16 %v1542_v53, %v1542_v53 }
 0x5a4   : >> { %2259 = vrot.lane.b32.xlu2 %v5579_v17, %s4916_s21 }
 0x5a5   : >> { %v4707_v1 = vpop.eup %4706 }
 0x5a6   : >> { %v1540_v44 = vmul.f32 %v4707_v1, %v5708_v28  ;;  %v1865_v0 = vpop.permute.xlu2 %1864 }
 0x5a7   : >> { %2190 = vrot.lane.b32.xlu1 %v5573_v3, %s4916_s21  ;;  %v1870_v4 = vsel %vm6829_vm11, %v1865_v0, 0  ;;  %vm6842_vm11 = vmmov %vm6791_vm0 }
 0x5a8   : >> { %v1548_v33 = vpack.c.bf16 %v1540_v44, %v1540_v44 }
 0x5aa   : >> { %v1524_v47 = vpop.xlane.xlu0 %1523  ;;  %4243 = vmatmul.msk.bf16.vlgmr.msra.gmra.mxu1 %vm6826_vm15, %v1548_v33  ;;  %4245 = vmatmul.msk.bf16.vlgmr.msra.gmra.mxu3 %vm6827_vm9, %v1550_v46  ;;  %vm6839_vm15 = vmmov %vm6791_vm0 }
 0x5ab   : >> { %4708 = vrcp.f32 %v1524_v47  ;;  %1764 = vmatpush.bf16.xpose.msra.mxu1 %v1755_v48  ;;  %1810 = vmatpush.bf16.xpose.msra.mxu3 %v1801_v9  ;;  %vm6840_vm9 = vmmov %vm6791_vm0 }
 0x5ac   : >> { %2234 = vrot.lane.b32.xlu2 %v5568_v25, %s4917_s2 }
 0x5af   : >> { %2257 = vrot.lane.b32.xlu1 %v5579_v17, %s4917_s2 }
 0x5b1   : >> { %v4709_v15 = vpop.eup %4708 }
 0x5b2   : >> { %v1527_v28 = vpop.xlane.xlu0 %1526  ;;  %v1544_v8 = vmul.f32 %v4709_v15, %v5712_v40  ;;  %v1725_v40 = vpop.permute.xlu1 %1724 }
 0x5b3   : >> { %4710 = vrcp.f32 %v1527_v28 }
 0x5b4   : >> { %v1552_v22 = vpack.c.bf16 %v1544_v8, %v1544_v8 }
 0x5b9   : >> { %v4711_v63 = vpop.eup %4710 }
 0x5ba   : >> { %v1545_v43 = vmul.f32 %v4711_v63, %v5716_v7  ;;  %4247 = vmatmul.msk.bf16.vlgmr.msrb.gmra.mxu1 %vm6828_vm10, %v1552_v22  ;;  %vm6841_vm10 = vmmov %vm6791_vm0 }
 0x5bc   : >> { %v1553_v37 = vpack.c.bf16 %v1545_v43, %v1545_v43 }
 0x5be   : >> { %4248 = vmatmul.msk.bf16.vlgmr.msrb.gmra.mxu2 %vm6830_vm7, %v1553_v37  ;;  %vm6843_vm7 = vmmov %vm6791_vm0 }
 0x5bf   : >> { %1879 = vmatpush.bf16.xpose.msrb.mxu2 %v1870_v4 }
 0x5c5   : >> { %v1819_v14 = vpop.permute.xlu0 %1818 }
 0x5c6   : >> { %v1824_v35 = vsel %vm6834_vm12, %v1819_v14, 0  ;;  %vm6847_vm12 = vmmov %vm6791_vm0 }
 0x5ca   : >> { %4251 = vmatmul.msk.bf16.vlgmr.msra.gmra.mxu1 %vm6791_vm0, %v1748_v38 }
 0x5cd   : >> { %v1886_v10 = vpop.permute.xlu0 %1885 }
 0x5ce   : >> { %4252 = vmatmul.msk.bf16.vlgmr.msra.gmra.mxu2 %vm6831_vm1, %v5698_v31  ;;  %vm6844_vm1 = vmmov %vm6791_vm0 }
 0x5d5   : >> { %v2063_v11 = vpop.permute.xlu0 %2062 }
 0x5d6   : >> { %v2068_v7 = vsel %vm1560_vm14, %v2063_v11, 0 }
 0x5d7   : >> { %2077 = vmatpush.bf16.msra.mxu2 %v2068_v7 }
 0x5d9   : >> { %v1530_v41 = vpop.xlane.xlu1 %1529 }
 0x5da   : >> { %4712 = vrcp.f32 %v1530_v41 }
 0x5dd   : >> { %v2042_v19 = vpop.permute.xlu0 %2041 }
 0x5de   : >> { %v2047_v24 = vsel %vm1560_vm14, %v2042_v19, 0 }
 0x5df   : >> { %v1521_v55 = vpop.xlane.xlu2 %1520 }
 0x5e0   : >> { %v4713_v54 = vpop.eup %4712  ;;  %4714 = vrcp.f32 %v1521_v55 }
 0x5e1   : >> { %v1546_v57 = vmul.f32 %v4713_v54, %v5729_v21 }
 0x5e3   : >> { %v1554_v23 = vpack.c.bf16 %v1546_v57, %v1546_v57 }
 0x5e5   : >> { %4249 = vmatmul.msk.bf16.vlgmr.msrb.gmra.mxu3 %vm6832_vm4, %v1554_v23  ;;  %v2147_v39 = vpop.permute.xlu0 %2146  ;;  %vm6845_vm4 = vmmov %vm6791_vm0 }
 0x5e6   : >> { %v4715_v42 = vpop.eup %4714  ;;  %v2152_v38 = vsel %vm1560_vm14, %v2147_v39, 0 }
 0x5e7   : >> { %v1543_v36 = vmul.f32 %v4715_v42, %v5735_v12  ;;  %v1842_v31 = vpop.permute.xlu2 %1841 }
 0x5e8   : >> { %v1847_v62 = vsel %vm6833_vm6, %v1842_v31, 0  ;;  %vm6846_vm6 = vmmov %vm6791_vm0 }
 0x5e9   : >> { %1856 = vmatpush.bf16.xpose.msrb.mxu1 %v1847_v62  ;;  %v1551_v58 = vpack.c.bf16 %v1543_v36, %v1543_v36 }
 0x5eb   : >> { %4246 = vmatmul.msk.bf16.vlgmr.msrb.gmra.mxu0 %vm6835_vm5, %v1551_v58  ;;  %vm6848_vm5 = vmmov %vm6791_vm0 }
 0x5ec   : >> { %1833 = vmatpush.bf16.xpose.msrb.mxu0 %v1824_v35 }
 0x5ed   : >> { %v2126_v53 = vpop.permute.xlu0 %2125 }
 0x5ee   : >> { %v2131_v44 = vsel %vm1560_vm14, %v2126_v53, 0 }
 0x5ef   : >> { %v1817_v21 = vpop.permute.xlu2 %1816 }
 0x5f1   : >> { %2056 = vmatpush.bf16.msra.mxu1 %v2047_v24  ;;  %v1888_v61 = vpop.permute.xlu1 %1887 }
 0x5f2   : >> { %v1893_v26 = vsel %vm6836_vm13, %v1888_v61, 0  ;;  %vm6849_vm13 = vmmov %vm6791_vm0 }
 0x5f3   : >> { %1902 = vmatpush.bf16.xpose.msrb.mxu3 %v1893_v26 }
 0x5f5   : >> { %4253 = vmatmul.msk.bf16.vlgmr.msra.gmra.mxu3 %vm6837_vm2, %v5686_v20  ;;  %vm6850_vm2 = vmmov %vm6791_vm0 }
 0x5f7   : >> { %v2084_v12 = vpop.permute.xlu2 %2083 }
 0x5f8   : >> { %v2089_v13 = vsel %vm1560_vm14, %v2084_v12, 0 }
 0x5f9   : >> { %v1863_v34 = vpop.permute.xlu1 %1862 }
 0x5fa   : >> { %4256 = vmatmul.msk.bf16.vlgmr.msrb.gmra.mxu2 %vm6838_vm3, %v1863_v34  ;;  %vm6851_vm3 = vmmov %vm6791_vm0 }
 0x5fb   : >> { %2098 = vmatpush.bf16.msra.mxu3 %v2089_v13  ;;  %2161 = vmatpush.bf16.msrb.mxu2 %v2152_v38 }
 0x5fc   : >> { %4250 = vmatmul.msk.bf16.vlgmr.msra.gmra.mxu0 %vm6839_vm15, %v1725_v40  ;;  %vm6852_vm15 = vmmov %vm6791_vm0 }
 0x5ff   : >> { %v2105_v33 = vpop.permute.xlu2 %2104 }
 0x600   : >> { %v2110_v9 = vsel %vm1560_vm14, %v2105_v33, 0 }
 0x601   : >> { %v1840_v1 = vpop.permute.xlu1 %1839 }
 0x602   : >> { %4255 = vmatmul.msk.bf16.vlgmr.msrb.gmra.mxu1 %vm6840_vm9, %v1840_v1  ;;  %vm6853_vm9 = vmmov %vm6791_vm0 }
 0x603   : >> { %2140 = vmatpush.bf16.msrb.mxu1 %v2131_v44 }
 0x605   : >> { %4257 = vmatmul.msk.bf16.vlgmr.msrb.gmra.mxu3 %vm6841_vm10, %v1886_v10  ;;  %vm6854_vm10 = vmmov %vm6791_vm0 }
 0x609   : >> { %v5819_v20 = vpop.f32.mrf.mxu2  ;;  %v2021_v46 = vpop.permute.xlu1 %2020 }
 0x60a   : >> { %v2026_v47 = vsel %vm1560_vm14, %v2021_v46, 0 }
 0x60b   : >> { %2035 = vmatpush.bf16.msra.mxu0 %v2026_v47 }
 0x60c   : >> { %4254 = vmatmul.msk.bf16.vlgmr.msrb.gmra.mxu0 %vm6842_vm11, %v1817_v21  ;;  %vm6855_vm11 = vmmov %vm6791_vm0 }
 0x60f   : >> { %2119 = vmatpush.bf16.msrb.mxu0 %v2110_v9 }
 0x611   : >> { %v1617_v48 = vpop.f32.mrf.mxu2  ;;  %v2168_v15 = vpop.permute.xlu1 %2167 }
 0x612   : >> { %v2173_v28 = vsel %vm1560_vm14, %v2168_v15, 0 }
 0x613   : >> { %2182 = vmatpush.bf16.msrb.mxu3 %v2173_v28 }
 0x61d   : >> { %v5825_v8 = vpop.f32.mrf.mxu3 }
 0x625   : >> { %v1575_v63 = vpop.f32.mrf.mxu3 }
 0x627   : >> { %v5827_v22 = vpop.f32.mrf.mxu1 }
 0x62d   : >> { %v5829_v43 = vpop.f32.mrf.mxu3 }
 0x62f   : >> { %v1596_v0 = vpop.f32.mrf.mxu1 }
 0x635   : >> { %v1638_v37 = vpop.f32.mrf.mxu3 }
 0x637   : >> { %v5831_v4 = vpop.f32.mrf.mxu1 }
 0x63f   : >> { %v1680_v14 = vpop.f32.mrf.mxu1 }
 0x641   : >> { %v5833_v10 = vpop.f32.mrf.mxu2 }
 0x647   : >> { %v1766_v40 = vpop.f32.mrf.mxu1 }
 0x648   : >> { %v1909_v11 = vmul.f32 0.35355338, %v1766_v40 }
 0x649   : >> { %v1701_v7 = vpop.f32.mrf.mxu2 }
 0x64a   : >> { %v1917_v41 = vadd.f32 %v1909_v11, %v5307_v49 }
 0x64c   : >> { %v1927_v55 = vsel %vm6843_vm7, %v1917_v41, -inf  ;;  %vm6856_vm7 = vmmov %vm6791_vm0 }
 0x64d   : >> { %1928 = vmax.xlane.f32.xlu0 %v1927_v55 }
 0x64f   : >> { %v1768_v54 = vpop.f32.mrf.mxu1 }
 0x651   : >> { %v1789_v57 = vpop.f32.mrf.mxu2 }
 0x652   : >> { %v1910_v23 = vmul.f32 0.35355338, %v1789_v57 }
 0x654   : >> { %v1918_v42 = vadd.f32 %v1910_v23, %v5307_v49 }
 0x656   : >> { %v1930_v19 = vsel %vm6791_vm0, %v1918_v42, -inf }
 0x657   : >> { %1931 = vmax.xlane.f32.xlu0 %v1930_v19  ;;  %v5858_v19 = vpop.permute.xlu0 %2236 }
 0x659   : >> { %v1791_v36 = vpop.f32.mrf.mxu2 }
 0x65f   : >> { %v5862_v36 = vpop.permute.xlu0 %2213 }
 0x668   : >> { %v5839_v31 = vpop.f32.mrf.mxu0  ;;  %v5841_v62 = vpop.f32.mrf.mxu3 }
 0x670   : >> { %v1659_v24 = vpop.f32.mrf.mxu0  ;;  %v1722_v58 = vpop.f32.mrf.mxu3 }
 0x671   : >> { %v5864_v24 = vpop.permute.xlu0 %2188 }
 0x678   : >> { %v1812_v21 = vpop.f32.mrf.mxu3 }
 0x679   : >> { %v1743_v35 = vpop.f32.mrf.mxu0  ;;  %v1911_v44 = vmul.f32 0.35355338, %v1812_v21 }
 0x67a   : >> { %v1908_v61 = vmul.f32 0.35355338, %v1743_v35 }
 0x67b   : >> { %v1919_v9 = vadd.f32 %v1911_v44, %v5307_v49  ;;  %v5874_v44 = vpop.permute.xlu1 %2190 }
 0x67c   : >> { %v1916_v26 = vadd.f32 %v1908_v61, %v5307_v49 }
 0x67d   : >> { %v1881_v39 = vpop.f32.mrf.mxu2  ;;  %v1933_v40 = vsel %vm6846_vm6, %v1919_v9, -inf  ;;  %vm6859_vm6 = vmmov %vm6791_vm0 }
 0x67e   : >> { %v1924_v12 = vsel %vm6844_vm1, %v1916_v26, -inf  ;;  %v1914_v14 = vmul.f32 0.35355338, %v1881_v39  ;;  %vm6857_vm1 = vmmov %vm6791_vm0 }
 0x67f   : >> { %1925 = vmax.xlane.f32.xlu1 %v1924_v12  ;;  %v1858_v13 = vpop.f32.mrf.mxu1 }
 0x680   : >> { %v1913_v34 = vmul.f32 0.35355338, %v1858_v13  ;;  %v1814_v53 = vpop.f32.mrf.mxu3  ;;  %v1922_v55 = vadd.f32 %v1914_v14, %v5307_v49 }
 0x681   : >> { %v1745_v38 = vpop.f32.mrf.mxu0 }
 0x682   : >> { %v1921_v1 = vadd.f32 %v1913_v34, %v5307_v49  ;;  %v1942_v23 = vsel %vm6849_vm13, %v1922_v55, -inf  ;;  %vm6862_vm13 = vmmov %vm6791_vm0 }
 0x684   : >> { %v1939_v33 = vsel %vm6845_vm4, %v1921_v1, -inf  ;;  %vm6858_vm4 = vmmov %vm6791_vm0 }
 0x685   : >> { %v1883_v46 = vpop.f32.mrf.mxu2  ;;  %1940 = vmax.xlane.f32.xlu2 %v1939_v33  ;;  %v5878_v33 = vpop.permute.xlu1 %2257 }
 0x687   : >> { %v1860_v47 = vpop.f32.mrf.mxu1 }
 0x688   : >> { %v1904_v15 = vpop.f32.mrf.mxu3 }
 0x689   : >> { %v1835_v48 = vpop.f32.mrf.mxu0  ;;  %v1915_v63 = vmul.f32 0.35355338, %v1904_v15 }
 0x68a   : >> { %v1912_v28 = vmul.f32 0.35355338, %v1835_v48 }
 0x68b   : >> { %v5850_v37 = vadd.f32 %v1915_v63, %v5307_v49 }
 0x68c   : >> { %v1920_v0 = vadd.f32 %v1912_v28, %v5307_v49 }
 0x68d   : >> { %1934 = vmax.xlane.f32.xlu2 %v1933_v40  ;;  %v1945_v7 = vsel %vm6848_vm5, %v5850_v37, -inf  ;;  %vm6861_vm5 = vmmov %vm6791_vm0 }
 0x68e   : >> { %v1936_v11 = vsel %vm6847_vm12, %v1920_v0, -inf  ;;  %1946 = vmax.xlane.f32.xlu1 %v1945_v7  ;;  %vm6860_vm12 = vmmov %vm6791_vm0 }
 0x68f   : >> { %1937 = vmax.xlane.f32.xlu0 %v1936_v11 }
 0x690   : >> { %v1906_v57 = vpop.f32.mrf.mxu3 }
 0x691   : >> { %v1837_v54 = vpop.f32.mrf.mxu0 }
 0x695   : >> { %1943 = vmax.xlane.f32.xlu2 %v1942_v23 }
 0x6ad   : >> { %2211 = vrot.lane.b32.xlu2 %v5584_v51, %s4917_s2 }
 0x6c0   : >> { %v1929_v58 = vpop.xlane.xlu0 %1928 }
 0x6c1   : >> { %v1949_v35 = vsub.f32 %v1917_v41, %v1929_v58  ;;  %v5876_v41 = vpop.permute.xlu2 %2259 }
 0x6c3   : >> { %v1958_v21 = vmul.f32 1.442695, %v1949_v35 }
 0x6c5   : >> { %4716 = vpow2.f32 %v1958_v21 }
 0x6ca   : >> { %v1932_v61 = vpop.xlane.xlu0 %1931 }
 0x6cb   : >> { %v1950_v39 = vsub.f32 %v1918_v42, %v1932_v61  ;;  %v5866_v12 = vpop.eup %4716  ;;  %v5882_v42 = vpop.permute.xlu2 %2234 }
 0x6cc   : >> { %v1975_v34 = vsel %vm6850_vm2, %v5866_v12, 0.0  ;;  %vm6863_vm2 = vmmov %vm6791_vm0 }
 0x6cd   : >> { %v1960_v13 = vmul.f32 1.442695, %v1950_v39  ;;  %1976 = vadd.xlane.f32.xlu1 %v1975_v34 }
 0x6cf   : >> { %4718 = vpow2.f32 %v1960_v13 }
 0x6d5   : >> { %v5870_v38 = vpop.eup %4718 }
 0x6d6   : >> { %v1978_v53 = vsel %vm6851_vm3, %v5870_v38, 0.0  ;;  %vm6864_vm3 = vmmov %vm6791_vm0 }
 0x6d7   : >> { %1979 = vadd.xlane.f32.xlu1 %v1978_v53 }
 0x6f0   : >> { %2328 = vrot.lane.b32.xlu1 %v5602_v30, %s4916_s21 }
 0x6f2   : >> { %v1926_v46 = vpop.xlane.xlu1 %1925 }
 0x6f3   : >> { %v1948_v47 = vsub.f32 %v1916_v26, %v1926_v46 }
 0x6f5   : >> { %v1956_v48 = vmul.f32 1.442695, %v1948_v47 }
 0x6f7   : >> { %4720 = vpow2.f32 %v1956_v48 }
 0x6f8   : >> { %v1941_v15 = vpop.xlane.xlu2 %1940 }
 0x6f9   : >> { %v1953_v28 = vsub.f32 %v1921_v1, %v1941_v15 }
 0x6fb   : >> { %v1966_v63 = vmul.f32 1.442695, %v1953_v28 }
 0x6fd   : >> { %v5884_v14 = vpop.eup %4720  ;;  %4722 = vpow2.f32 %v1966_v63 }
 0x6fe   : >> { %v1972_v40 = vsel %vm6852_vm15, %v5884_v14, 0.0  ;;  %vm6865_vm15 = vmmov %vm6791_vm0 }
 0x6ff   : >> { %1973 = vadd.xlane.f32.xlu2 %v1972_v40 }
 0x700   : >> { %v1935_v11 = vpop.xlane.xlu2 %1934 }
 0x701   : >> { %v1951_v7 = vsub.f32 %v1919_v9, %v1935_v11 }
 0x702   : >> { %v1938_v23 = vpop.xlane.xlu0 %1937 }
 0x703   : >> { %v5888_v54 = vpop.eup %4722  ;;  %v1962_v57 = vmul.f32 1.442695, %v1951_v7  ;;  %v1952_v1 = vsub.f32 %v1920_v0, %v1938_v23  ;;  %v2219_v7 = vsel %vm6857_vm1, %v5862_v36, 0  ;;  %vm6870_vm1 = vmmov %vm6791_vm0 }
 0x704   : >> { %v1987_v26 = vsel %vm6853_vm9, %v5888_v54, 0.0  ;;  %vm6866_vm9 = vmmov %vm6791_vm0 }
 0x705   : >> { %4724 = vpow2.f32 %v1962_v57  ;;  %v1964_v61 = vmul.f32 1.442695, %v1952_v1 }
 0x707   : >> { %1988 = vadd.xlane.f32.xlu2 %v1987_v26  ;;  %v2242_v26 = vsel %vm6859_vm6, %v5858_v19, 0  ;;  %vm6872_vm6 = vmmov %vm6791_vm0 }
 0x708   : >> { %v1944_v58 = vpop.xlane.xlu2 %1943 }
 0x709   : >> { %v1954_v35 = vsub.f32 %v1922_v55, %v1944_v58  ;;  %v1947_v55 = vpop.xlane.xlu1 %1946 }
 0x70a   : >> { %v1955_v46 = vsub.f32 %v5850_v37, %v1947_v55 }
 0x70b   : >> { %v5892_v21 = vpop.eup %4724  ;;  %v1968_v39 = vmul.f32 1.442695, %v1954_v35 }
 0x70c   : >> { %v1981_v13 = vsel %vm6854_vm10, %v5892_v21, 0.0  ;;  %v1970_v47 = vmul.f32 1.442695, %v1955_v46  ;;  %vm6867_vm10 = vmmov %vm6791_vm0 }
 0x70d   : >> { %4726 = vpow2.f32 %v1968_v39  ;;  %1982 = vadd.xlane.f32.xlu0 %v1981_v13 }
 0x70e   : >> { %4728 = vpow2.f32 %v1964_v61  ;;  %v2196_v61 = vsel %vm6861_vm5, %v5874_v44, 0  ;;  %vm6874_vm5 = vmmov %vm6791_vm0 }
 0x70f   : >> { %4730 = vpow2.f32 %v1970_v47 }
 0x710   : >> { %v2212_v36 = vpop.permute.xlu2 %2211 }
 0x713   : >> { %v5896_v9 = vpop.eup %4726 }
 0x714   : >> { %v1990_v34 = vsel %vm6855_vm11, %v5896_v9, 0.0  ;;  %v5900_v53 = vpop.eup %4728  ;;  %vm6868_vm11 = vmmov %vm6791_vm0 }
 0x715   : >> { %1991 = vadd.xlane.f32.xlu2 %v1990_v34  ;;  %v1984_v0 = vsel %vm6856_vm7, %v5900_v53, 0.0  ;;  %v5921_v15 = vpop.eup %4730  ;;  %vm6869_vm7 = vmmov %vm6791_vm0 }
 0x716   : >> { %v1993_v40 = vsel %vm6791_vm0, %v5921_v15, 0.0 }
 0x71a   : >> { %1985 = vadd.xlane.f32.xlu1 %v1984_v0 }
 0x721   : >> { %2351 = vrot.lane.b32.xlu0 %v5610_v32, %s4916_s21 }
 0x72d   : >> { %2282 = vrot.lane.b32.xlu2 %v5591_v60, %s4916_s21 }
 0x733   : >> { %2305 = vrot.lane.b32.xlu1 %v5598_v27, %s4916_s21  ;;  %s3248_s21 = scalar_lea.vmem %s6742_s9, %s4907_s1 }
 0x735   : >> { %2349 = vrot.lane.b32.xlu2 %v5610_v32, %s4917_s2 }
 0x73b   : >> { %2280 = vrot.lane.b32.xlu1 %v5591_v60, %s4917_s2 }
 0x73d   : >> { %2526 = vrot.lane.b32.xlu2 %v5568_v25, %s4918_s22 }
 0x740   : >> { %v1977_v48 = vpop.xlane.xlu1 %1976 }
 0x741   : >> { %4732 = vrcp.f32 %v1977_v48  ;;  %v2265_v48 = vsel %vm6864_vm3, %v5876_v41, 0  ;;  %vm6877_vm3 = vmmov %vm6791_vm0 }
 0x743   : >> { %2505 = vrot.lane.b32.xlu1 %v5584_v51, %s4918_s22 }
 0x745   : >> { %2589 = vrot.lane.b32.xlu2 %v5598_v27, %s4918_s22 }
 0x747   : >> { %v4733_v37 = vpop.eup %4732 }
 0x748   : >> { %v2005_v28 = vmul.f32 %v4733_v37, %v5866_v12 }
 0x74a   : >> { %v1980_v63 = vpop.xlane.xlu1 %1979  ;;  %v2013_v11 = vpack.c.bf16 %v2005_v28, %v2005_v28 }
 0x74b   : >> { %4734 = vrcp.f32 %v1980_v63  ;;  %2610 = vrot.lane.b32.xlu1 %v5602_v30, %s4918_s22  ;;  %1994 = vadd.xlane.f32.xlu0 %v1993_v40 }
 0x74c   : >> { %4259 = vmatmul.msk.bf16.vlgmr.msra.gmra.mxu1 %vm6858_vm4, %v2013_v11  ;;  %vm6871_vm4 = vmmov %vm6791_vm0 }
 0x74d   : >> { %2228 = vmatpush.bf16.xpose.msra.mxu1 %v2219_v7  ;;  %2654 = vrot.lane.b32.xlu2 %v5573_v3, %s4919_s24 }
 0x751   : >> { %v4735_v12 = vpop.eup %4734 }
 0x752   : >> { %v2006_v57 = vmul.f32 %v4735_v12, %v5870_v38 }
 0x754   : >> { %v2014_v23 = vpack.c.bf16 %v2006_v57, %v2006_v57 }
 0x756   : >> { %4260 = vmatmul.msk.bf16.vlgmr.msra.gmra.mxu2 %vm6860_vm12, %v2014_v23  ;;  %vm6873_vm12 = vmmov %vm6791_vm0 }
 0x757   : >> { %2251 = vmatpush.bf16.xpose.msra.mxu2 %v2242_v26 }
 0x75f   : >> { %2326 = vrot.lane.b32.xlu0 %v5602_v30, %s4917_s2 }
 0x762   : >> { %v2329_v55 = vpop.permute.xlu1 %2328 }
 0x763   : >> { %v2334_v11 = vsel %vm6866_vm9, %v2329_v55, 0  ;;  %vm6879_vm9 = vmmov %vm6791_vm0 }
 0x767   : >> { %2303 = vrot.lane.b32.xlu0 %v5598_v27, %s4917_s2 }
 0x76f   : >> { %2484 = vrot.lane.b32.xlu0 %v5573_v3, %s4918_s22 }
 0x772   : >> { %v1974_v1 = vpop.xlane.xlu2 %1973 }
 0x773   : >> { %4736 = vrcp.f32 %v1974_v1 }
 0x777   : >> { %2547 = vrot.lane.b32.xlu0 %v5579_v17, %s4918_s22 }
 0x779   : >> { %v4737_v38 = vpop.eup %4736 }
 0x77a   : >> { %v2004_v19 = vmul.f32 %v4737_v38, %v5884_v14  ;;  %v1989_v58 = vpop.xlane.xlu2 %1988 }
 0x77b   : >> { %4738 = vrcp.f32 %v1989_v58 }
 0x77c   : >> { %v2012_v35 = vpack.c.bf16 %v2004_v19, %v2004_v19 }
 0x77e   : >> { %4258 = vmatmul.msk.bf16.vlgmr.msra.gmra.mxu0 %vm6862_vm13, %v2012_v35  ;;  %vm6875_vm13 = vmmov %vm6791_vm0 }
 0x77f   : >> { %2205 = vmatpush.bf16.xpose.msra.mxu0 %v2196_v61  ;;  %2568 = vrot.lane.b32.xlu0 %v5591_v60, %s4918_s22 }
 0x780   : >> { %v1983_v13 = vpop.xlane.xlu0 %1982 }
 0x781   : >> { %v4739_v39 = vpop.eup %4738  ;;  %4740 = vrcp.f32 %v1983_v13 }
 0x782   : >> { %v2009_v34 = vmul.f32 %v4739_v39, %v5888_v54 }
 0x784   : >> { %v2017_v0 = vpack.c.bf16 %v2009_v34, %v2009_v34 }
 0x786   : >> { %4263 = vmatmul.msk.bf16.vlgmr.msrb.gmra.mxu1 %vm6863_vm2, %v2017_v0  ;;  %vm6876_vm2 = vmmov %vm6791_vm0 }
 0x787   : >> { %v4741_v14 = vpop.eup %4740  ;;  %2631 = vrot.lane.b32.xlu0 %v5610_v32, %s4918_s22  ;;  %s3598_s22 = scalar_lea.vmem %s6747_s14, %s4457_s20 }
 0x788   : >> { %v2007_v44 = vmul.f32 %v4741_v14, %v5892_v21  ;;  %v1992_v46 = vpop.xlane.xlu2 %1991 }
 0x789   : >> { %4742 = vrcp.f32 %v1992_v46 }
 0x78a   : >> { %v2015_v47 = vpack.c.bf16 %v2007_v44, %v2007_v44 }
 0x78c   : >> { %4261 = vmatmul.msk.bf16.vlgmr.msra.gmra.mxu3 %vm6865_vm15, %v2015_v47  ;;  %vm6878_vm15 = vmmov %vm6791_vm0 }
 0x78d   : >> { %v1986_v54 = vpop.xlane.xlu1 %1985  ;;  %2274 = vmatpush.bf16.xpose.msra.mxu3 %v2265_v48 }
 0x78e   : >> { %4744 = vrcp.f32 %v1986_v54 }
 0x78f   : >> { %v4743_v37 = vpop.eup %4742  ;;  %2677 = vrot.lane.b32.xlu0 %v5584_v51, %s4919_s24 }
 0x790   : >> { %v2010_v28 = vmul.f32 %v4743_v37, %v5896_v9  ;;  %v2283_v63 = vpop.permute.xlu2 %2282 }
 0x791   : >> { %v2288_v12 = vsel %vm6869_vm7, %v2283_v63, 0  ;;  %vm6882_vm7 = vmmov %vm6791_vm0 }
 0x792   : >> { %v2018_v40 = vpack.c.bf16 %v2010_v28, %v2010_v28 }
 0x793   : >> { %v2352_v19 = vpop.permute.xlu0 %2351 }
 0x794   : >> { %v4745_v21 = vpop.eup %4744  ;;  %4264 = vmatmul.msk.bf16.vlgmr.msrb.gmra.mxu2 %vm6867_vm10, %v2018_v40  ;;  %v2357_v13 = vsel %vm6874_vm5, %v2352_v19, 0  ;;  %vm6880_vm10 = vmmov %vm6791_vm0 }
 0x795   : >> { %v2008_v7 = vmul.f32 %v4745_v21, %v5900_v53  ;;  %2343 = vmatpush.bf16.xpose.msrb.mxu2 %v2334_v11  ;;  %vm6887_vm5 = vmmov %vm6791_vm0 }
 0x796   : >> { %4267 = vmatmul.msk.bf16.vlgmr.msra.gmra.mxu1 %vm6868_vm11, %v2212_v36  ;;  %vm6881_vm11 = vmmov %vm6791_vm0 }
 0x797   : >> { %v2016_v41 = vpack.c.bf16 %v2008_v7, %v2008_v7 }
 0x798   : >> { %v2350_v57 = vpop.permute.xlu2 %2349 }
 0x799   : >> { %4262 = vmatmul.msk.bf16.vlgmr.msrb.gmra.mxu0 %vm6791_vm0, %v2016_v41 }
 0x79a   : >> { %2297 = vmatpush.bf16.xpose.msrb.mxu0 %v2288_v12 }
 0x7a0   : >> { %v2527_v9 = vpop.permute.xlu2 %2526 }
 0x7a1   : >> { %v2532_v23 = vsel %vm1560_vm14, %v2527_v9, 0 }
 0x7a4   : >> { %4268 = vmatmul.msk.bf16.vlgmr.msra.gmra.mxu2 %vm6870_vm1, %v5882_v42  ;;  %vm6883_vm1 = vmmov %vm6791_vm0 }
 0x7a5   : >> { %v2306_v26 = vpop.permute.xlu1 %2305  ;;  %2541 = vmatpush.bf16.msra.mxu2 %v2532_v23 }
 0x7a6   : >> { %v2311_v53 = vsel %vm6871_vm4, %v2306_v26, 0  ;;  %vm6884_vm4 = vmmov %vm6791_vm0 }
 0x7a7   : >> { %2320 = vmatpush.bf16.xpose.msrb.mxu1 %v2311_v53 }
 0x7a8   : >> { %v2590_v14 = vpop.permute.xlu2 %2589 }
 0x7a9   : >> { %4266 = vmatmul.msk.bf16.vlgmr.msra.gmra.mxu0 %vm6872_vm6, %v5864_v24  ;;  %v2595_v46 = vsel %vm1560_vm14, %v2590_v14, 0  ;;  %vm6885_vm6 = vmmov %vm6791_vm0 }
 0x7ad   : >> { %v2281_v36 = vpop.permute.xlu1 %2280 }
 0x7b5   : >> { %v2506_v1 = vpop.permute.xlu1 %2505 }
 0x7b6   : >> { %v2511_v38 = vsel %vm1560_vm14, %v2506_v1, 0 }
 0x7b7   : >> { %2520 = vmatpush.bf16.msra.mxu1 %v2511_v38 }
 0x7b9   : >> { %4270 = vmatmul.msk.bf16.vlgmr.msrb.gmra.mxu0 %vm6873_vm12, %v2281_v36  ;;  %vm6886_vm12 = vmmov %vm6791_vm0 }
 0x7bd   : >> { %v2611_v24 = vpop.permute.xlu1 %2610 }
 0x7be   : >> { %v1995_v58 = vpop.xlane.xlu0 %1994  ;;  %v2616_v55 = vsel %vm1560_vm14, %v2611_v24, 0 }
 0x7bf   : >> { %4746 = vrcp.f32 %v1995_v58 }
 0x7c5   : >> { %v4747_v35 = vpop.eup %4746 }
 0x7c6   : >> { %v2011_v42 = vmul.f32 %v4747_v35, %v5921_v15 }
 0x7c8   : >> { %v2019_v61 = vpack.c.bf16 %v2011_v42, %v2011_v42 }
 0x7c9   : >> { %v5977_v39 = vpop.f32.mrf.mxu1 }
 0x7ca   : >> { %4265 = vmatmul.msk.bf16.vlgmr.msrb.gmra.mxu3 %vm6875_vm13, %v2019_v61  ;;  %vm6888_vm13 = vmmov %vm6791_vm0 }
 0x7cb   : >> { %2366 = vmatpush.bf16.xpose.msrb.mxu3 %v2357_v13 }
 0x7d1   : >> { %v2327_v34 = vpop.permute.xlu0 %2326  ;;  %v2060_v0 = vpop.f32.mrf.mxu1 }
 0x7d2   : >> { %4272 = vmatmul.msk.bf16.vlgmr.msrb.gmra.mxu2 %vm6876_vm2, %v2327_v34  ;;  %vm6889_vm2 = vmmov %vm6791_vm0 }
 0x7d3   : >> { %2625 = vmatpush.bf16.msrb.mxu2 %v2616_v55 }
 0x7d9   : >> { %v5983_v44 = vpop.f32.mrf.mxu2  ;;  %v2304_v15 = vpop.permute.xlu0 %2303 }
 0x7da   : >> { %4269 = vmatmul.msk.bf16.vlgmr.msra.gmra.mxu3 %vm6877_vm3, %v5878_v33  ;;  %4271 = vmatmul.msk.bf16.vlgmr.msrb.gmra.mxu1 %vm6878_vm15, %v2304_v15  ;;  %vm6890_vm3 = vmmov %vm6791_vm0 }
 0x7db   : >> { %2604 = vmatpush.bf16.msrb.mxu1 %v2595_v46  ;;  %vm6891_vm15 = vmmov %vm6791_vm0 }
 0x7e1   : >> { %v2081_v47 = vpop.f32.mrf.mxu2  ;;  %v2485_v48 = vpop.permute.xlu0 %2484 }
 0x7e2   : >> { %v2490_v54 = vsel %vm1560_vm14, %v2485_v48, 0 }
 0x7e3   : >> { %2499 = vmatpush.bf16.msra.mxu0 %v2490_v54 }
 0x7e9   : >> { %v2548_v37 = vpop.permute.xlu0 %2547 }
 0x7ea   : >> { %v2553_v28 = vsel %vm1560_vm14, %v2548_v37, 0  ;;  %4273 = vmatmul.msk.bf16.vlgmr.msrb.gmra.mxu3 %vm6879_vm9, %v2350_v57  ;;  %vm6892_vm9 = vmmov %vm6791_vm0 }
 0x7eb   : >> { %2562 = vmatpush.bf16.msra.mxu3 %v2553_v28 }
 0x7f1   : >> { %v2569_v63 = vpop.permute.xlu0 %2568 }
 0x7f2   : >> { %v2574_v40 = vsel %vm1560_vm14, %v2569_v63, 0 }
 0x7f3   : >> { %2583 = vmatpush.bf16.msrb.mxu0 %v2574_v40 }
 0x7f9   : >> { %v2632_v21 = vpop.permute.xlu0 %2631 }
 0x7fa   : >> { %v2637_v33 = vsel %vm1560_vm14, %v2632_v21, 0 }
 0x7fb   : >> { %v5994_v11 = vpop.f32.mrf.mxu0  ;;  %2646 = vmatpush.bf16.msrb.mxu3 %v2637_v33 }
 0x7fc   : >> { %v4598_v7 = vpack.i.bf16 %v5977_v39, %v5994_v11 }
 0x803   : >> { %v2039_v41 = vpop.f32.mrf.mxu0  ;;  %v5998_v12 = vpop.f32.mrf.mxu1 }
 0x80b   : >> { %v2144_v9 = vpop.f32.mrf.mxu1 }
 0x80f   : >> { %v6000_v23 = vpop.f32.mrf.mxu3 }
 0x810   : >> { %v4613_v57 = vpack.i.bf16 %v6000_v23, %v5983_v44 }
 0x813   : >> { %v2230_v26 = vpop.f32.mrf.mxu1 }
 0x814   : >> { %v2373_v53 = vmul.f32 0.35355338, %v2230_v26 }
 0x816   : >> { %v2381_v36 = vadd.f32 %v2373_v53, %v5307_v49  ;;  %v6005_v1 = vpop.f32.mrf.mxu0 }
 0x817   : >> { %v2102_v19 = vpop.f32.mrf.mxu3  ;;  %v6009_v58 = vpop.f32.mrf.mxu2 }
 0x818   : >> { %v2391_v35 = vsel %vm6880_vm10, %v2381_v36, -inf  ;;  %vm6893_vm10 = vmmov %vm6791_vm0 }
 0x819   : >> { %2392 = vmax.xlane.f32.xlu1 %v2391_v35 }
 0x81b   : >> { %v2232_v42 = vpop.f32.mrf.mxu1 }
 0x81e   : >> { %v2123_v61 = vpop.f32.mrf.mxu0 }
 0x81f   : >> { %v2165_v13 = vpop.f32.mrf.mxu2 }
 0x826   : >> { %v2207_v24 = vpop.f32.mrf.mxu0 }
 0x827   : >> { %v2372_v34 = vmul.f32 0.35355338, %v2207_v24  ;;  %v2253_v0 = vpop.f32.mrf.mxu2 }
 0x828   : >> { %v2374_v14 = vmul.f32 0.35355338, %v2253_v0 }
 0x829   : >> { %v2380_v55 = vadd.f32 %v2372_v34, %v5307_v49 }
 0x82a   : >> { %v6014_v15 = vadd.f32 %v2374_v14, %v5307_v49 }
 0x82b   : >> { %v2388_v46 = vsel %vm6881_vm11, %v2380_v55, -inf  ;;  %vm6894_vm11 = vmmov %vm6791_vm0 }
 0x82c   : >> { %2389 = vmax.xlane.f32.xlu2 %v2388_v46  ;;  %v2394_v47 = vsel %vm6882_vm7, %v6014_v15, -inf  ;;  %vm6895_vm7 = vmmov %vm6791_vm0 }
 0x82d   : >> { %2395 = vmax.xlane.f32.xlu0 %v2394_v47 }
 0x82e   : >> { %v2209_v48 = vpop.f32.mrf.mxu0 }
 0x82f   : >> { %v2255_v54 = vpop.f32.mrf.mxu2 }
 0x836   : >> { %v2299_v37 = vpop.f32.mrf.mxu0 }
 0x837   : >> { %v2376_v28 = vmul.f32 0.35355338, %v2299_v37 }
 0x839   : >> { %v2384_v63 = vadd.f32 %v2376_v28, %v5307_v49 }
 0x83b   : >> { %v2400_v40 = vsel %vm6791_vm0, %v2384_v63, -inf }
 0x83c   : >> { %2401 = vmax.xlane.f32.xlu1 %v2400_v40 }
 0x83e   : >> { %v2301_v21 = vpop.f32.mrf.mxu0 }
 0x84d   : >> { %v6021_v33 = vpop.f32.mrf.mxu3 }
 0x855   : >> { %v2186_v9 = vpop.f32.mrf.mxu3  ;;  %v2345_v26 = vpop.f32.mrf.mxu2 }
 0x856   : >> { %v2378_v53 = vmul.f32 0.35355338, %v2345_v26 }
 0x857   : >> { %v2322_v19 = vpop.f32.mrf.mxu1 }
 0x858   : >> { %v6026_v35 = vadd.f32 %v2378_v53, %v5307_v49  ;;  %v2377_v42 = vmul.f32 0.35355338, %v2322_v19 }
 0x85a   : >> { %v2385_v61 = vadd.f32 %v2377_v42, %v5307_v49  ;;  %v2406_v13 = vsel %vm6883_vm1, %v6026_v35, -inf  ;;  %vm6896_vm1 = vmmov %vm6791_vm0 }
 0x85b   : >> { %2407 = vmax.xlane.f32.xlu0 %v2406_v13  ;;  %v6044_v13 = vpop.permute.xlu2 %2654 }
 0x85c   : >> { %v2403_v24 = vsel %vm6884_vm4, %v2385_v61, -inf  ;;  %vm6897_vm4 = vmmov %vm6791_vm0 }
 0x85d   : >> { %v2276_v34 = vpop.f32.mrf.mxu3  ;;  %v2347_v0 = vpop.f32.mrf.mxu2  ;;  %2404 = vmax.xlane.f32.xlu2 %v2403_v24 }
 0x85e   : >> { %v2375_v14 = vmul.f32 0.35355338, %v2276_v34 }
 0x85f   : >> { %v2324_v46 = vpop.f32.mrf.mxu1 }
 0x860   : >> { %v2383_v47 = vadd.f32 %v2375_v14, %v5307_v49  ;;  %v2678_v46 = vpop.permute.xlu0 %2677 }
 0x862   : >> { %v2397_v48 = vsel %vm6885_vm6, %v2383_v47, -inf  ;;  %vm6898_vm6 = vmmov %vm6791_vm0 }
 0x865   : >> { %v2278_v54 = vpop.f32.mrf.mxu3  ;;  %2398 = vmax.xlane.f32.xlu2 %v2397_v48 }
 0x86d   : >> { %v2368_v37 = vpop.f32.mrf.mxu3 }
 0x86e   : >> { %v2379_v28 = vmul.f32 0.35355338, %v2368_v37 }
 0x86f   : >> { %2652 = vrot.lane.b32.xlu0 %v5573_v3, %s4920_s25 }
 0x870   : >> { %v2387_v40 = vadd.f32 %v2379_v28, %v5307_v49 }
 0x872   : >> { %v2409_v21 = vsel %vm6886_vm12, %v2387_v40, -inf  ;;  %vm6899_vm12 = vmmov %vm6791_vm0 }
 0x873   : >> { %2410 = vmax.xlane.f32.xlu1 %v2409_v21 }
 0x875   : >> { %v2370_v9 = vpop.f32.mrf.mxu3 }
 0x87d   : >> { %2723 = vrot.lane.b32.xlu2 %v5579_v17, %s4919_s24 }
 0x88c   : >> { %v2393_v26 = vpop.xlane.xlu1 %2392  ;;  %2700 = vrot.lane.b32.xlu1 %v5568_v25, %s4919_s24 }
 0x88d   : >> { %v2413_v53 = vsub.f32 %v2381_v36, %v2393_v26 }
 0x88f   : >> { %v2422_v19 = vmul.f32 1.442695, %v2413_v53 }
 0x891   : >> { %4748 = vpow2.f32 %v2422_v19 }
 0x897   : >> { %v6042_v42 = vpop.eup %4748 }
 0x898   : >> { %v2439_v24 = vsel %vm6887_vm5, %v6042_v42, 0.0  ;;  %vm6900_vm5 = vmmov %vm6791_vm0 }
 0x899   : >> { %2440 = vadd.xlane.f32.xlu0 %v2439_v24 }
 0x89f   : >> { %v2390_v34 = vpop.xlane.xlu2 %2389 }
 0x8a0   : >> { %v2412_v0 = vsub.f32 %v2380_v55, %v2390_v34  ;;  %v2396_v54 = vpop.xlane.xlu0 %2395 }
 0x8a1   : >> { %v2414_v21 = vsub.f32 %v6014_v15, %v2396_v54 }
 0x8a2   : >> { %v2420_v14 = vmul.f32 1.442695, %v2412_v0 }
 0x8a3   : >> { %v2424_v26 = vmul.f32 1.442695, %v2414_v21 }
 0x8a4   : >> { %4750 = vpow2.f32 %v2420_v14 }
 0x8aa   : >> { %v6048_v48 = vpop.eup %4750 }
 0x8ab   : >> { %v2436_v36 = vsel %vm6888_vm13, %v6048_v48, 0.0  ;;  %vm6901_vm13 = vmmov %vm6791_vm0 }
 0x8ac   : >> { %2437 = vadd.xlane.f32.xlu2 %v2436_v36 }
 0x8af   : >> { %v2402_v37 = vpop.xlane.xlu1 %2401 }
 0x8b0   : >> { %v2416_v28 = vsub.f32 %v2384_v63, %v2402_v37 }
 0x8b2   : >> { %v2428_v9 = vmul.f32 1.442695, %v2416_v28 }
 0x8b4   : >> { %4752 = vpow2.f32 %v2428_v9 }
 0x8b5   : >> { %4754 = vpow2.f32 %v2424_v26 }
 0x8ba   : >> { %v6053_v53 = vpop.eup %4752 }
 0x8bb   : >> { %v2448_v55 = vsel %vm6889_vm2, %v6053_v53, 0.0  ;;  %v6057_v19 = vpop.eup %4754  ;;  %vm6902_vm2 = vmmov %vm6791_vm0 }
 0x8bc   : >> { %2449 = vadd.xlane.f32.xlu1 %v2448_v55  ;;  %v2442_v24 = vsel %vm6890_vm3, %v6057_v19, 0.0  ;;  %vm6903_vm3 = vmmov %vm6791_vm0 }
 0x8c4   : >> { %2443 = vadd.xlane.f32.xlu1 %v2442_v24 }
 0x8ce   : >> { %v2408_v15 = vpop.xlane.xlu0 %2407 }
 0x8cf   : >> { %v2418_v37 = vsub.f32 %v6026_v35, %v2408_v15 }
 0x8d0   : >> { %v2405_v34 = vpop.xlane.xlu2 %2404 }
 0x8d1   : >> { %v2417_v63 = vsub.f32 %v2385_v61, %v2405_v34  ;;  %v2432_v9 = vmul.f32 1.442695, %v2418_v37 }
 0x8d3   : >> { %v2430_v0 = vmul.f32 1.442695, %v2417_v63 }
 0x8d5   : >> { %4756 = vpow2.f32 %v2430_v0 }
 0x8d8   : >> { %v2399_v14 = vpop.xlane.xlu2 %2398 }
 0x8d9   : >> { %v2415_v36 = vsub.f32 %v2383_v47, %v2399_v14 }
 0x8db   : >> { %v6061_v54 = vpop.eup %4756  ;;  %v2426_v28 = vmul.f32 1.442695, %v2415_v36 }
 0x8dc   : >> { %v2451_v21 = vsel %vm6891_vm15, %v6061_v54, 0.0  ;;  %vm6904_vm15 = vmmov %vm6791_vm0 }
 0x8dd   : >> { %4758 = vpow2.f32 %v2426_v28  ;;  %2452 = vadd.xlane.f32.xlu0 %v2451_v21  ;;  %v2683_v21 = vsel %vm6895_vm7, %v2678_v46, 0  ;;  %v2660_v46 = vsel %vm6896_vm1, %v6044_v13, 0  ;;  %vm6908_vm7 = vmmov %vm6791_vm0 }
 0x8de   : >> { %4760 = vpow2.f32 %v2432_v9  ;;  %vm6909_vm1 = vmmov %vm6791_vm0 }
 0x8e0   : >> { %v2724_v37 = vpop.permute.xlu2 %2723 }
 0x8e3   : >> { %v6066_v26 = vpop.eup %4758 }
 0x8e4   : >> { %v2445_v61 = vsel %vm6892_vm9, %v6066_v26, 0.0  ;;  %v6070_v24 = vpop.eup %4760  ;;  %vm6905_vm9 = vmmov %vm6791_vm0 }
 0x8e5   : >> { %2446 = vadd.xlane.f32.xlu2 %v2445_v61  ;;  %v2454_v35 = vsel %vm6893_vm10, %v6070_v24, 0.0  ;;  %vm6906_vm10 = vmmov %vm6791_vm0 }
 0x8e6   : >> { %v2411_v55 = vpop.xlane.xlu1 %2410 }
 0x8e7   : >> { %v2419_v47 = vsub.f32 %v2387_v40, %v2411_v55  ;;  %v2653_v40 = vpop.permute.xlu0 %2652 }
 0x8e9   : >> { %v2434_v34 = vmul.f32 1.442695, %v2419_v47 }
 0x8eb   : >> { %4762 = vpow2.f32 %v2434_v34 }
 0x8ed   : >> { %2455 = vadd.xlane.f32.xlu2 %v2454_v35 }
 0x8f1   : >> { %v6074_v63 = vpop.eup %4762  ;;  %2721 = vrot.lane.b32.xlu0 %v5579_v17, %s4920_s25 }
 0x8f2   : >> { %v2457_v0 = vsel %vm6894_vm11, %v6074_v63, 0.0  ;;  %vm6907_vm11 = vmmov %vm6791_vm0 }
 0x8f3   : >> { %2458 = vadd.xlane.f32.xlu1 %v2457_v0 }
 0x8f9   : >> { %2792 = vrot.lane.b32.xlu0 %v5602_v30, %s4919_s24 }
 0x8fe   : >> { %v2701_v61 = vpop.permute.xlu1 %2700 }
 0x901   : >> { %2767 = vrot.lane.b32.xlu0 %v5598_v27, %s4920_s25 }
 0x905   : >> { %2698 = vrot.lane.b32.xlu2 %v5568_v25, %s4920_s25 }
 0x90c   : >> { %v2441_v15 = vpop.xlane.xlu0 %2440  ;;  %2675 = vrot.lane.b32.xlu1 %v5584_v51, %s4920_s25 }
 0x90d   : >> { %4764 = vrcp.f32 %v2441_v15  ;;  %2769 = vrot.lane.b32.xlu2 %v5598_v27, %s4919_s24 }
 0x913   : >> { %v4765_v14 = vpop.eup %4764 }
 0x914   : >> { %v2469_v36 = vmul.f32 %v4765_v14, %v6042_v42  ;;  %2746 = vrot.lane.b32.xlu1 %v5591_v60, %s4919_s24 }
 0x915   : >> { %2744 = vrot.lane.b32.xlu2 %v5591_v60, %s4920_s25 }
 0x916   : >> { %v2477_v28 = vpack.c.bf16 %v2469_v36, %v2469_v36 }
 0x918   : >> { %4275 = vmatmul.msk.bf16.vlgmr.msra.gmra.mxu1 %vm6791_vm0, %v2477_v28  ;;  %v2706_v28 = vsel %vm6899_vm12, %v2701_v61, 0  ;;  %vm6912_vm12 = vmmov %vm6791_vm0 }
 0x919   : >> { %2692 = vmatpush.bf16.xpose.msra.mxu1 %v2683_v21 }
 0x91c   : >> { %2815 = vrot.lane.b32.xlu1 %v5610_v32, %s4919_s24  ;;  %s3243_s24 = scalar_lea.vmem %s6741_s8, %s5441_s30 }
 0x91d   : >> { %2813 = vrot.lane.b32.xlu2 %v5610_v32, %s4920_s25 }
 0x91f   : >> { %v2438_v42 = vpop.xlane.xlu2 %2437 }
 0x920   : >> { %4766 = vrcp.f32 %v2438_v42 }
 0x924   : >> { %2790 = vrot.lane.b32.xlu1 %v5602_v30, %s4920_s25 }
 0x926   : >> { %v4767_v9 = vpop.eup %4766 }
 0x927   : >> { %v2468_v55 = vmul.f32 %v4767_v9, %v6048_v48 }
 0x929   : >> { %v2476_v47 = vpack.c.bf16 %v2468_v55, %v2468_v55 }
 0x92b   : >> { %4274 = vmatmul.msk.bf16.vlgmr.msra.gmra.mxu0 %vm6897_vm4, %v2476_v47  ;;  %vm6910_vm4 = vmmov %vm6791_vm0 }
 0x92c   : >> { %2669 = vmatpush.bf16.xpose.msra.mxu0 %v2660_v46  ;;  %2948 = vrot.lane.b32.xlu1 %v5573_v3, %s4921_s26 }
 0x92f   : >> { %v2450_v34 = vpop.xlane.xlu1 %2449 }
 0x930   : >> { %4768 = vrcp.f32 %v2450_v34  ;;  %v2729_v34 = vsel %vm6903_vm3, %v2724_v37, 0  ;;  %vm6916_vm3 = vmmov %vm6791_vm0 }
 0x936   : >> { %v4769_v35 = vpop.eup %4768 }
 0x937   : >> { %v2472_v0 = vmul.f32 %v4769_v35, %v6053_v53  ;;  %v2444_v15 = vpop.xlane.xlu1 %2443 }
 0x938   : >> { %4770 = vrcp.f32 %v2444_v15 }
 0x939   : >> { %v2480_v14 = vpack.c.bf16 %v2472_v0, %v2472_v0 }
 0x93b   : >> { %4278 = vmatmul.msk.bf16.vlgmr.msrb.gmra.mxu0 %vm6898_vm6, %v2480_v14  ;;  %vm6911_vm6 = vmmov %vm6791_vm0 }
 0x93e   : >> { %v4771_v48 = vpop.eup %4770 }
 0x93f   : >> { %v2470_v13 = vmul.f32 %v4771_v48, %v6057_v19 }
 0x941   : >> { %v2478_v36 = vpack.c.bf16 %v2470_v13, %v2470_v13 }
 0x943   : >> { %4276 = vmatmul.msk.bf16.vlgmr.msra.gmra.mxu2 %vm6900_vm5, %v2478_v36  ;;  %vm6913_vm5 = vmmov %vm6791_vm0 }
 0x944   : >> { %2715 = vmatpush.bf16.xpose.msra.mxu2 %v2706_v28 }
 0x94b   : >> { %4282 = vmatmul.msk.bf16.vlgmr.msra.gmra.mxu0 %vm6901_vm13, %v2653_v40  ;;  %vm6914_vm13 = vmmov %vm6791_vm0 }
 0x950   : >> { %v2453_v3 = vpop.xlane.xlu0 %2452 }
 0x951   : >> { %4772 = vrcp.f32 %v2453_v3 }
 0x957   : >> { %v4773_v21 = vpop.eup %4772 }
 0x958   : >> { %v2473_v53 = vmul.f32 %v4773_v21, %v6061_v54  ;;  %v2447_v42 = vpop.xlane.xlu2 %2446 }
 0x959   : >> { %4774 = vrcp.f32 %v2447_v42 }
 0x95a   : >> { %v2481_v9 = vpack.c.bf16 %v2473_v53, %v2473_v53 }
 0x95c   : >> { %4279 = vmatmul.msk.bf16.vlgmr.msrb.gmra.mxu1 %vm6902_vm2, %v2481_v9  ;;  %vm6915_vm2 = vmmov %vm6791_vm0 }
 0x95f   : >> { %v4775_v55 = vpop.eup %4774 }
 0x960   : >> { %v2471_v19 = vmul.f32 %v4775_v55, %v6066_v26  ;;  %v2456_v47 = vpop.xlane.xlu2 %2455 }
 0x961   : >> { %4776 = vrcp.f32 %v2456_v47 }
 0x962   : >> { %v2479_v61 = vpack.c.bf16 %v2471_v19, %v2471_v19 }
 0x963   : >> { %v2722_v46 = vpop.permute.xlu0 %2721 }
 0x964   : >> { %4277 = vmatmul.msk.bf16.vlgmr.msra.gmra.mxu3 %vm6904_vm15, %v2479_v61  ;;  %vm6917_vm15 = vmmov %vm6791_vm0 }
 0x965   : >> { %2738 = vmatpush.bf16.xpose.msra.mxu3 %v2729_v34 }
 0x966   : >> { %v2459_v40 = vpop.xlane.xlu1 %2458 }
 0x967   : >> { %v4777_v35 = vpop.eup %4776  ;;  %4778 = vrcp.f32 %v2459_v40 }
 0x968   : >> { %v2474_v54 = vmul.f32 %v4777_v35, %v6070_v24  ;;  %v2699_v0 = vpop.permute.xlu2 %2698 }
 0x96a   : >> { %v2482_v15 = vpack.c.bf16 %v2474_v54, %v2474_v54 }
 0x96b   : >> { %v2793_v14 = vpop.permute.xlu0 %2792 }
 0x96c   : >> { %v2798_v48 = vsel %vm6905_vm9, %v2793_v14, 0  ;;  %4280 = vmatmul.msk.bf16.vlgmr.msrb.gmra.mxu2 %vm6906_vm10, %v2482_v15  ;;  %vm6918_vm9 = vmmov %vm6791_vm0 }
 0x96d   : >> { %v4779_v26 = vpop.eup %4778  ;;  %2807 = vmatpush.bf16.xpose.msrb.mxu2 %v2798_v48  ;;  %vm6919_vm10 = vmmov %vm6791_vm0 }
 0x96e   : >> { %v2475_v13 = vmul.f32 %v4779_v26, %v6074_v63 }
 0x970   : >> { %v2770_v37 = vpop.permute.xlu2 %2769  ;;  %v2483_v28 = vpack.c.bf16 %v2475_v13, %v2475_v13 }
 0x971   : >> { %v2775_v36 = vsel %vm6907_vm11, %v2770_v37, 0  ;;  %vm6920_vm11 = vmmov %vm6791_vm0 }
 0x972   : >> { %2784 = vmatpush.bf16.xpose.msrb.mxu1 %v2775_v36 }
 0x973   : >> { %v2768_v63 = vpop.permute.xlu0 %2767 }
 0x974   : >> { %4281 = vmatmul.msk.bf16.vlgmr.msrb.gmra.mxu3 %vm6908_vm7, %v2483_v28  ;;  %vm6921_vm7 = vmmov %vm6791_vm0 }
 0x978   : >> { %v2745_v53 = vpop.permute.xlu2 %2744 }
 0x97c   : >> { %4284 = vmatmul.msk.bf16.vlgmr.msra.gmra.mxu2 %vm6791_vm0, %v2699_v0 }
 0x97e   : >> { %v2676_v24 = vpop.permute.xlu1 %2675 }
 0x97f   : >> { %4283 = vmatmul.msk.bf16.vlgmr.msra.gmra.mxu1 %vm6909_vm1, %v2676_v24  ;;  %vm6922_vm1 = vmmov %vm6791_vm0 }
 0x980   : >> { %v2814_v19 = vpop.permute.xlu2 %2813 }
 0x984   : >> { %4285 = vmatmul.msk.bf16.vlgmr.msra.gmra.mxu3 %vm6910_vm4, %v2722_v46  ;;  %vm6923_vm4 = vmmov %vm6791_vm0 }
 0x986   : >> { %v2747_v3 = vpop.permute.xlu1 %2746 }
 0x987   : >> { %v2752_v21 = vsel %vm6911_vm6, %v2747_v3, 0  ;;  %vm6924_vm6 = vmmov %vm6791_vm0 }
 0x988   : >> { %2761 = vmatpush.bf16.xpose.msrb.mxu0 %v2752_v21 }
 0x98e   : >> { %v2816_v42 = vpop.permute.xlu1 %2815 }
 0x98f   : >> { %v2821_v9 = vsel %vm6912_vm12, %v2816_v42, 0  ;;  %4286 = vmatmul.msk.bf16.vlgmr.msrb.gmra.mxu0 %vm6913_vm5, %v2745_v53  ;;  %4287 = vmatmul.msk.bf16.vlgmr.msrb.gmra.mxu1 %vm6914_vm13, %v2768_v63  ;;  %vm6925_vm12 = vmmov %vm6791_vm0 }
 0x990   : >> { %2830 = vmatpush.bf16.xpose.msrb.mxu3 %v2821_v9  ;;  %vm6926_vm5 = vmmov %vm6791_vm0 }
 0x991   : >> { %vm6927_vm13 = vmmov %vm6791_vm0 }
 0x995   : >> { %v6133_v55 = vpop.f32.mrf.mxu1 }
 0x996   : >> { %v2791_v47 = vpop.permute.xlu1 %2790 }
 0x997   : >> { %4288 = vmatmul.msk.bf16.vlgmr.msrb.gmra.mxu2 %vm6915_vm2, %v2791_v47  ;;  %4289 = vmatmul.msk.bf16.vlgmr.msrb.gmra.mxu3 %vm6916_vm3, %v2814_v19  ;;  %vm6928_vm2 = vmmov %vm6791_vm0 }
 0x998   : >> { %vm6929_vm3 = vmmov %vm6791_vm0 }
 0x99d   : >> { %v2524_v61 = vpop.f32.mrf.mxu1 }
 0x99e   : >> { %v2949_v46 = vpop.permute.xlu1 %2948 }
 0x99f   : >> { %v2954_v34 = vsel %vm1560_vm14, %v2949_v46, 0 }
 0x9a0   : >> { %2963 = vmatpush.bf16.msra.mxu0 %v2954_v34 }
 0x9a8   : >> { %v6138_v40 = vpop.f32.mrf.mxu0 }
 0x9a9   : >> { %v4603_v35 = vpack.i.bf16 %v6133_v55, %v6138_v40 }
 0x9b0   : >> { %v2503_v54 = vpop.f32.mrf.mxu0 }
 0x9b8   : >> { %v6142_v0 = vpop.f32.mrf.mxu0 }
 0x9c0   : >> { %v2587_v15 = vpop.f32.mrf.mxu0 }
 0x9c6   : >> { %v6144_v14 = vpop.f32.mrf.mxu2 }
 0x9c8   : >> { %v2671_v48 = vpop.f32.mrf.mxu0 }
 0x9c9   : >> { %v2836_v26 = vmul.f32 0.35355338, %v2671_v48 }
 0x9cb   : >> { %v6147_v13 = vadd.f32 %v2836_v26, %v5307_v49 }
 0x9cd   : >> { %v2852_v37 = vsel %vm6917_vm15, %v6147_v13, -inf  ;;  %vm6930_vm15 = vmmov %vm6791_vm0 }
 0x9ce   : >> { %2853 = vmax.xlane.f32.xlu0 %v2852_v37  ;;  %v2545_v36 = vpop.f32.mrf.mxu2 }
 0x9d0   : >> { %v2673_v28 = vpop.f32.mrf.mxu0 }
 0x9d9   : >> { %v6151_v24 = vpop.f32.mrf.mxu1 }
 0x9e1   : >> { %v2608_v21 = vpop.f32.mrf.mxu1 }
 0x9e2   : >> { %2990 = vrot.lane.b32.xlu0 %v5568_v25, %s4921_s26 }
 0x9e7   : >> { %v6157_v53 = vpop.f32.mrf.mxu3 }
 0x9ef   : >> { %v2566_v42 = vpop.f32.mrf.mxu3  ;;  %v6161_v9 = vpop.f32.mrf.mxu2 }
 0x9f7   : >> { %v2629_v19 = vpop.f32.mrf.mxu2  ;;  %v6163_v47 = vpop.f32.mrf.mxu3 }
 0x9fc   : >> { %v2694_v46 = vpop.f32.mrf.mxu1 }
 0x9fd   : >> { %v2837_v34 = vmul.f32 0.35355338, %v2694_v46 }
 0x9ff   : >> { %v2845_v54 = vadd.f32 %v2837_v34, %v5307_v49  ;;  %v2650_v15 = vpop.f32.mrf.mxu3  ;;  %v2717_v25 = vpop.f32.mrf.mxu2 }
 0xa01   : >> { %v2855_v48 = vsel %vm6918_vm9, %v2845_v54, -inf  ;;  %vm6931_vm9 = vmmov %vm6791_vm0 }
 0xa02   : >> { %2856 = vmax.xlane.f32.xlu1 %v2855_v48 }
 0xa04   : >> { %v2696_v26 = vpop.f32.mrf.mxu1 }
 0xa05   : >> { %v2838_v26 = vmul.f32 0.35355338, %v2717_v25 }
 0xa07   : >> { %v2719_v37 = vpop.f32.mrf.mxu2  ;;  %v2740_v36 = vpop.f32.mrf.mxu3  ;;  %v2846_v61 = vadd.f32 %v2838_v26, %v5307_v49 }
 0xa08   : >> { %v2839_v28 = vmul.f32 0.35355338, %v2740_v36 }
 0xa0a   : >> { %v6170_v21 = vadd.f32 %v2839_v28, %v5307_v49 }
 0xa0c   : >> { %v2763_v42 = vpop.f32.mrf.mxu0  ;;  %v2786_v19 = vpop.f32.mrf.mxu1  ;;  %v2861_v41 = vsel %vm6919_vm10, %v6170_v21, -inf  ;;  %vm6932_vm10 = vmmov %vm6791_vm0 }
 0xa0d   : >> { %v2840_v46 = vmul.f32 0.35355338, %v2763_v42  ;;  %v2841_v38 = vmul.f32 0.35355338, %v2786_v19  ;;  %2862 = vmax.xlane.f32.xlu0 %v2861_v41  ;;  %v2858_v42 = vsel %vm6791_vm0, %v2846_v61, -inf }
 0xa0f   : >> { %v2848_v34 = vadd.f32 %v2840_v46, %v5307_v49  ;;  %v2849_v15 = vadd.f32 %v2841_v38, %v5307_v49  ;;  %v2742_v48 = vpop.f32.mrf.mxu3 }
 0xa11   : >> { %v2867_v37 = vsel %vm6920_vm11, %v2849_v15, -inf  ;;  %v2864_v36 = vsel %vm6921_vm7, %v2848_v34, -inf  ;;  %vm6934_vm11 = vmmov %vm6791_vm0 }
 0xa12   : >> { %2868 = vmax.xlane.f32.xlu2 %v2867_v37  ;;  %2865 = vmax.xlane.f32.xlu1 %v2864_v36  ;;  %vm6936_vm7 = vmmov %vm6791_vm0 }
 0xa14   : >> { %v2765_v28 = vpop.f32.mrf.mxu0  ;;  %v2788_v63 = vpop.f32.mrf.mxu1 }
 0xa1a   : >> { %2859 = vmax.xlane.f32.xlu2 %v2858_v42  ;;  %v2809_v41 = vpop.f32.mrf.mxu2  ;;  %v2832_v19 = vpop.f32.mrf.mxu3 }
 0xa1b   : >> { %v2842_v46 = vmul.f32 0.35355338, %v2809_v41  ;;  %v2843_v3 = vmul.f32 0.35355338, %v2832_v19 }
 0xa1d   : >> { %v6181_v38 = vadd.f32 %v2842_v46, %v5307_v49  ;;  %v2851_v25 = vadd.f32 %v2843_v3, %v5307_v49 }
 0xa1f   : >> { %v2873_v48 = vsel %vm6922_vm1, %v2851_v25, -inf  ;;  %v2870_v37 = vsel %vm6923_vm4, %v6181_v38, -inf  ;;  %vm6937_vm1 = vmmov %vm6791_vm0 }
 0xa20   : >> { %2874 = vmax.xlane.f32.xlu1 %v2873_v48  ;;  %2871 = vmax.xlane.f32.xlu0 %v2870_v37  ;;  %vm6938_vm4 = vmmov %vm6791_vm0 }
 0xa22   : >> { %v2811_v63 = vpop.f32.mrf.mxu2  ;;  %v2834_v26 = vpop.f32.mrf.mxu3 }
 0xa32   : >> { %2969 = vrot.lane.b32.xlu2 %v5584_v51, %s4921_s26 }
 0xa34   : >> { %3032 = vrot.lane.b32.xlu0 %v5591_v60, %s4921_s26 }
 0xa39   : >> { %3011 = vrot.lane.b32.xlu1 %v5579_v17, %s4921_s26 }
 0xa41   : >> { %v2854_v36 = vpop.xlane.xlu0 %2853 }
 0xa42   : >> { %v2876_v3 = vsub.f32 %v6147_v13, %v2854_v36 }
 0xa44   : >> { %v2884_v28 = vmul.f32 1.442695, %v2876_v3 }
 0xa46   : >> { %4780 = vpow2.f32 %v2884_v28 }
 0xa4c   : >> { %v6195_v19 = vpop.eup %4780 }
 0xa4d   : >> { %v2900_v51 = vsel %vm6924_vm6, %v6195_v19, 0.0  ;;  %vm6939_vm6 = vmmov %vm6791_vm0 }
 0xa54   : >> { %v2991_v42 = vpop.permute.xlu0 %2990 }
 0xa55   : >> { %v2996_v41 = vsel %vm1560_vm14, %v2991_v42, 0 }
 0xa56   : >> { %3005 = vmatpush.bf16.msra.mxu2 %v2996_v41 }
 0xa5b   : >> { %2901 = vadd.xlane.f32.xlu2 %v2900_v51 }
 0xa75   : >> { %v2857_v46 = vpop.xlane.xlu1 %2856 }
 0xa76   : >> { %v2877_v60 = vsub.f32 %v2845_v54, %v2857_v46 }
 0xa78   : >> { %v2886_v48 = vmul.f32 1.442695, %v2877_v60 }
 0xa7a   : >> { %4782 = vpow2.f32 %v2886_v48 }
 0xa80   : >> { %v6199_v17 = vpop.eup %4782  ;;  %v2863_v42 = vpop.xlane.xlu0 %2862 }
 0xa81   : >> { %v2903_v13 = vsel %vm6925_vm12, %v6199_v17, 0.0  ;;  %v2879_v46 = vsub.f32 %v6170_v21, %v2863_v42  ;;  %vm6940_vm12 = vmmov %vm6791_vm0 }
 0xa82   : >> { %2904 = vadd.xlane.f32.xlu0 %v2903_v13 }
 0xa85   : >> { %v2869_v37 = vpop.xlane.xlu2 %2868  ;;  %v2866_v63 = vpop.xlane.xlu1 %2865 }
 0xa86   : >> { %v2881_v26 = vsub.f32 %v2849_v15, %v2869_v37  ;;  %v2880_v36 = vsub.f32 %v2848_v34, %v2866_v63  ;;  %v2890_v37 = vmul.f32 1.442695, %v2879_v46 }
 0xa88   : >> { %v2894_v3 = vmul.f32 1.442695, %v2881_v26  ;;  %v2892_v28 = vmul.f32 1.442695, %v2880_v36 }
 0xa8a   : >> { %4784 = vpow2.f32 %v2894_v3 }
 0xa8b   : >> { %4786 = vpow2.f32 %v2892_v28 }
 0xa8d   : >> { %v2860_v41 = vpop.xlane.xlu2 %2859 }
 0xa8e   : >> { %v2878_v51 = vsub.f32 %v2846_v61, %v2860_v41 }
 0xa90   : >> { %v6203_v54 = vpop.eup %4784  ;;  %v2888_v60 = vmul.f32 1.442695, %v2878_v51 }
 0xa91   : >> { %v6206_v48 = vpop.eup %4786  ;;  %v2915_v13 = vsel %vm6926_vm5, %v6203_v54, 0.0  ;;  %vm6944_vm5 = vmmov %vm6791_vm0 }
 0xa92   : >> { %4788 = vpow2.f32 %v2888_v60  ;;  %2916 = vadd.xlane.f32.xlu1 %v2915_v13  ;;  %v2912_v34 = vsel %vm6927_vm13, %v6206_v48, 0.0  ;;  %vm6945_vm13 = vmmov %vm6791_vm0 }
 0xa93   : >> { %2913 = vadd.xlane.f32.xlu2 %v2912_v34  ;;  %v2875_v15 = vpop.xlane.xlu1 %2874  ;;  %4790 = vpow2.f32 %v2890_v37  ;;  %v2872_v42 = vpop.xlane.xlu0 %2871 }
 0xa94   : >> { %v2883_v63 = vsub.f32 %v2851_v25, %v2875_v15 }
 0xa95   : >> { %v2970_v61 = vpop.permute.xlu2 %2969 }
 0xa96   : >> { %v2898_v26 = vmul.f32 1.442695, %v2883_v63  ;;  %v2975_v36 = vsel %vm1560_vm14, %v2970_v61, 0 }
 0xa97   : >> { %2984 = vmatpush.bf16.msra.mxu1 %v2975_v36 }
 0xa98   : >> { %v4789_v21 = vpop.eup %4788  ;;  %4792 = vpow2.f32 %v2898_v26 }
 0xa99   : >> { %v2906_v3 = vsel %vm6928_vm2, %v4789_v21, 0.0  ;;  %v4791_v28 = vpop.eup %4790  ;;  %vm3229_vm2 = vcmask 195584  }
 0xa9a   : >> { %2907 = vadd.xlane.f32.xlu0 %v2906_v3  ;;  %v2909_v25 = vsel %vm6930_vm15, %v4791_v28, 0.0  ;;  %vm6947_vm15 = vmmov %vm6791_vm0 }
 0xa9e   : >> { %v6214_v41 = vpop.eup %4792 }
 0xa9f   : >> { %v2921_v51 = vsel %vm6929_vm3, %v6214_v41, 0.0  ;;  %vm6946_vm3 = vmmov %vm6791_vm0 }
 0xaa0   : >> { %2922 = vadd.xlane.f32.xlu2 %v2921_v51 }
 0xaa2   : >> { %2910 = vadd.xlane.f32.xlu0 %v2909_v25 }
 0xaa6   : >> { %v3033_v46 = vpop.permute.xlu0 %3032 }
 0xaa7   : >> { %v3038_v60 = vsel %vm1560_vm14, %v3033_v46, 0 }
 0xaa8   : >> { %3047 = vmatpush.bf16.msrb.mxu0 %v3038_v60 }
 0xaab   : >> { %3074 = vrot.lane.b32.xlu1 %v5602_v30, %s4921_s26  ;;  %v3012_v13 = vpop.permute.xlu1 %3011  ;;  %v2882_v30 = vsub.f32 %v6181_v38, %v2872_v42 }
 0xaac   : >> { %v3017_v34 = vsel %vm1560_vm14, %v3012_v13, 0 }
 0xaad   : >> { %3026 = vmatpush.bf16.msra.mxu3 %v3017_v34 }
 0xab6   : >> { %3053 = vrot.lane.b32.xlu0 %v5598_v27, %s4921_s26  ;;  %v2896_v27 = vmul.f32 1.442695, %v2882_v30 }
 0xab8   : >> { %3095 = vrot.lane.b32.xlu2 %v5610_v32, %s4921_s26 }
 0xac0   : >> { %4604 = vrot.lane.b32.xlu2 %v4603_v35, %s4922_s28 }
 0xac8   : >> { %4614 = vrot.lane.b32.xlu2 %v4613_v57, %s4923_s29  ;;  %v6933_v57 = vpack.i.bf16 %v6151_v24, %v6142_v0 }
 0xace   : >> { %v2902_v15 = vpop.xlane.xlu2 %2901 }
 0xacf   : >> { %4794 = vrcp.f32 %v2902_v15 }
 0xad0   : >> { %4796 = vpow2.f32 %v2896_v27 }
 0xad5   : >> { %v4795_v37 = vpop.eup %4794 }
 0xad6   : >> { %v2932_v32 = vmul.f32 %v4795_v37, %v6195_v19  ;;  %v4797_v55 = vpop.eup %4796  ;;  %v6935_v19 = vpack.i.bf16 %v6163_v47, %v6161_v9 }
 0xad7   : >> { %v2918_v40 = vsel %vm6932_vm10, %v4797_v55, 0.0  ;;  %vm6949_vm10 = vmmov %vm6791_vm0 }
 0xad8   : >> { %v2940_v63 = vpack.c.bf16 %v2932_v32, %v2932_v32 }
 0xada   : >> { %4290 = vmatmul.msk.bf16.vlgmr.msra.gmra.mxu0 %vm6931_vm9, %v2940_v63  ;;  %vm6948_vm9 = vmmov %vm6791_vm0 }
 0xae0   : >> { %2919 = vadd.xlane.f32.xlu0 %v2918_v40 }
 0xaf4   : >> { %4599 = vrot.lane.b32.xlu0 %v4598_v7, %s4923_s29 }
 0xaf5   : >> { %v2905_v44 = vpop.xlane.xlu0 %2904 }
 0xaf6   : >> { %4798 = vrcp.f32 %v2905_v44 }
 0xafc   : >> { %v4799_v23 = vpop.eup %4798  ;;  %4634 = vrot.lane.b32.xlu0 %v6933_v57, %s4922_s28 }
 0xafd   : >> { %v2933_v35 = vmul.f32 %v4799_v23, %v6199_v17 }
 0xaff   : >> { %v2941_v38 = vpack.c.bf16 %v2933_v35, %v2933_v35 }
 0xb01   : >> { %4291 = vmatmul.msk.bf16.vlgmr.msra.gmra.mxu1 %vm6934_vm11, %v2941_v38  ;;  %vm6950_vm11 = vmmov %vm6791_vm0 }
 0xb04   : >> { %4649 = vrot.lane.b32.xlu0 %v6935_v19, %s4922_s28 }
 0xb05   : >> { %v2917_v17 = vpop.xlane.xlu1 %2916 }
 0xb06   : >> { %v2914_v39 = vpop.xlane.xlu2 %2913 }
 0xb07   : >> { %4800 = vrcp.f32 %v2914_v39  ;;  %v6942_v39 = vpack.i.bf16 %v5998_v12, %v6005_v1 }
 0xb0d   : >> { %v4801_v11 = vpop.eup %4800  ;;  %v2908_v7 = vpop.xlane.xlu0 %2907 }
 0xb0e   : >> { %v2936_v61 = vmul.f32 %v4801_v11, %v6206_v48  ;;  %4802 = vrcp.f32 %v2908_v7  ;;  %v6943_v11 = vpack.i.bf16 %v6021_v33, %v6009_v58  ;;  %v4453_v58 = vld [vmem:[%s3243_s24 + $0x8] sm:$0xff]  ;;  %v4452_v33 = vld [vmem:[%s3243_s24] sm:$0xff]  ;;  %s3521_s24 = scalar_lea.vmem %s6745_s12, %s5441_s30 }
 0xb0f   : >> { %3283 = vmatpush.bf16.msra.mxu0 %v4453_v58 }
 0xb10   : >> { %v2944_v26 = vpack.c.bf16 %v2936_v61, %v2936_v61 }
 0xb12   : >> { %4294 = vmatmul.msk.bf16.vlgmr.msrb.gmra.mxu0 %vm6936_vm7, %v2944_v26  ;;  %vm6951_vm7 = vmmov %vm6791_vm0 }
 0xb13   : >> { %v2923_v24 = vpop.xlane.xlu2 %2922  ;;  %3284 = vmatpush.bf16.msra.mxu0 %v4452_v33 }
 0xb14   : >> { %v4803_v0 = vpop.eup %4802 }
 0xb15   : >> { %v2934_v36 = vmul.f32 %v4803_v0, %v4789_v21  ;;  %v2911_v3 = vpop.xlane.xlu0 %2910 }
 0xb16   : >> { %4804 = vrcp.f32 %v2911_v3 }
 0xb17   : >> { %v2942_v42 = vpack.c.bf16 %v2934_v36, %v2934_v36  ;;  %4806 = vrcp.f32 %v2917_v17 }
 0xb18   : >> { %4808 = vrcp.f32 %v2923_v24 }
 0xb19   : >> { %4292 = vmatmul.msk.bf16.vlgmr.msra.gmra.mxu2 %vm6791_vm0, %v2942_v42 }
 0xb1b   : >> { %v3096_v47 = vpop.permute.xlu2 %3095 }
 0xb1c   : >> { %v4805_v9 = vpop.eup %4804  ;;  %v3101_v25 = vsel %vm1560_vm14, %v3096_v47, 0 }
 0xb1d   : >> { %v2935_v51 = vmul.f32 %v4805_v9, %v4791_v28  ;;  %v3075_v46 = vpop.permute.xlu1 %3074  ;;  %3110 = vmatpush.bf16.msrb.mxu3 %v3101_v25  ;;  %v4807_v21 = vpop.eup %4806 }
 0xb1e   : >> { %v3080_v48 = vsel %vm1560_vm14, %v3075_v46, 0  ;;  %v2937_v13 = vmul.f32 %v4807_v21, %v6203_v54  ;;  %v4809_v34 = vpop.eup %4808 }
 0xb1f   : >> { %v2943_v60 = vpack.c.bf16 %v2935_v51, %v2935_v51  ;;  %3089 = vmatpush.bf16.msrb.mxu2 %v3080_v48  ;;  %v2939_v27 = vmul.f32 %v4809_v34, %v6214_v41  ;;  %v6941_v41 = vpack.i.bf16 %v6157_v53, %v6144_v14 }
 0xb20   : >> { %v2945_v28 = vpack.c.bf16 %v2937_v13, %v2937_v13 }
 0xb21   : >> { %4293 = vmatmul.msk.bf16.vlgmr.msra.gmra.mxu3 %vm6937_vm1, %v2943_v60  ;;  %v2947_v37 = vpack.c.bf16 %v2939_v27, %v2939_v27 }
 0xb23   : >> { %v4605_v25 = vpop.permute.xlu2 %4604 }
 0xb24   : >> { %v4607_v60 = vunpack.i.h.bf16 %v4605_v25  ;;  %v4606_v21 = vunpack.i.l.bf16 %v4605_v25 }
 0xb28   : >> { %v3054_v30 = vpop.permute.xlu0 %3053 }
 0xb29   : >> { %v3059_v15 = vsel %vm1560_vm14, %v3054_v30, 0  ;;  %vm3220_vm14 = vcmask 130048  }
 0xb2a   : >> { %3068 = vmatpush.bf16.msrb.mxu1 %v3059_v15 }
 0xb2d   : >> { %4295 = vmatmul.msk.bf16.vlgmr.msrb.gmra.mxu1 %vm6938_vm4, %v2945_v28 }
 0xb31   : >> { %4297 = vmatmul.msk.bf16.vlgmr.msrb.gmra.mxu3 %vm6939_vm6, %v2947_v37 }
 0xb53   : >> { %v2920_v32 = vpop.xlane.xlu0 %2919 }
 0xb54   : >> { %4810 = vrcp.f32 %v2920_v32 }
 0xb57   : >> { %v2965_v63 = vpop.f32.mrf.mxu0 }
 0xb5a   : >> { %v4811_v40 = vpop.eup %4810 }
 0xb5b   : >> { %v2938_v44 = vmul.f32 %v4811_v40, %v4797_v55 }
 0xb5d   : >> { %v2946_v23 = vpack.c.bf16 %v2938_v44, %v2938_v44 }
 0xb5f   : >> { %v2967_v54 = vpop.f32.mrf.mxu0  ;;  %4296 = vmatmul.msk.bf16.vlgmr.msrb.gmra.mxu2 %vm6940_vm12, %v2946_v23 }
 0xb66   : >> { %v4600_v9 = vpop.permute.xlu0 %4599 }
 0xb67   : >> { %v4602_v47 = vunpack.i.h.bf16 %v4600_v9  ;;  %v4601_v51 = vunpack.i.l.bf16 %v4600_v9 }
 0xb69   : >> { %v3213_v46 = vsel %vm6944_vm5, %v5827_v22, %v4602_v47  ;;  %v3212_v48 = vsel %vm6945_vm13, %v5825_v8, %v4601_v51 }
 0xb6a   : >> { %v3221_v15 = vsel %vm3220_vm14, %v3212_v48, %v4606_v21  ;;  %v3222_v28 = vsel %vm3220_vm14, %v3213_v46, %v4607_v60 }
 0xb7e   : >> { %v2986_v57 = vpop.f32.mrf.mxu1 }
 0xb7f   : >> { %v4608_v35 = vpack.i.bf16 %v2986_v57, %v2965_v63  ;;  %v4615_v63 = vpop.permute.xlu2 %4614 }
 0xb80   : >> { %v4617_v8 = vunpack.i.h.bf16 %v4615_v63  ;;  %v4616_v40 = vunpack.i.l.bf16 %v4615_v63 }
 0xb81   : >> { %4609 = vrot.lane.b32.xlu1 %v4608_v35, %s4924_s0 }
 0xb82   : >> { %v3215_v57 = vsel %vm6946_vm3, %v5829_v43, %v4617_v8  ;;  %v3214_v35 = vsel %vm6947_vm15, %v5819_v20, %v4616_v40 }
 0xb86   : >> { %v2988_v38 = vpop.f32.mrf.mxu1 }
 0xb89   : >> { %4619 = vrot.lane.b32.xlu1 %v6941_v41, %s4922_s28  ;;  %s3607_s28 = scalar_lea.vmem %s6748_s15, %s4907_s1 }
 0xb8f   : >> { %v3049_v19 = vpop.f32.mrf.mxu0 }
 0xb91   : >> { %4629 = vrot.lane.b32.xlu1 %v6942_v39, %s4923_s29 }
 0xb97   : >> { %v3051_v55 = vpop.f32.mrf.mxu0 }
 0xb99   : >> { %4644 = vrot.lane.b32.xlu1 %v6943_v11, %s4923_s29 }
 0xb9c   : >> { %v3007_v7 = vpop.f32.mrf.mxu2 }
 0xba4   : >> { %v3009_v61 = vpop.f32.mrf.mxu2  ;;  %v3028_v26 = vpop.f32.mrf.mxu3 }
 0xba5   : >> { %v4623_v0 = vpack.i.bf16 %v3028_v26, %v3007_v7 }
 0xba7   : >> { %4624 = vrot.lane.b32.xlu2 %v4623_v0, %s4924_s0 }
 0xbaa   : >> { %v3070_v14 = vpop.f32.mrf.mxu1 }
 0xbab   : >> { %v4638_v24 = vpack.i.bf16 %v3070_v14, %v3049_v19  ;;  %v4635_v14 = vpop.permute.xlu0 %4634 }
 0xbac   : >> { %v3030_v53 = vpop.f32.mrf.mxu3 }
 0xbaf   : >> { %4639 = vrot.lane.b32.xlu2 %v4638_v24, %s4924_s0 }
 0xbb2   : >> { %v3072_v17 = vpop.f32.mrf.mxu1 }
 0xbb4   : >> { %v3112_v12 = vpop.f32.mrf.mxu3 }
 0xbbc   : >> { %v3114_v1 = vpop.f32.mrf.mxu3 }
 0xbbd   : >> { %v4636_v1 = vunpack.i.l.bf16 %v4635_v14 }
 0xbe2   : >> { %v3091_v36 = vpop.f32.mrf.mxu2 }
 0xbe3   : >> { %v4653_v3 = vpack.i.bf16 %v3112_v12, %v3091_v36  ;;  %v4637_v12 = vunpack.i.h.bf16 %v4635_v14 }
 0xbe5   : >> { %4654 = vrot.lane.b32.xlu2 %v4653_v3, %s4924_s0  ;;  %s3314_s0 = scalar_lea.vmem %s6743_s10, %s4907_s1 }
 0xbea   : >> { %v3093_v42 = vpop.f32.mrf.mxu2 }
 0xbf3   : >> { %v4610_v13 = vpop.permute.xlu1 %4609 }
 0xbf4   : >> { %v4612_v34 = vunpack.i.h.bf16 %v4610_v13  ;;  %v4611_v30 = vunpack.i.l.bf16 %v4610_v13 }
 0xbf6   : >> { %v3231_v27 = vsel %vm3229_vm2, %v3222_v28, %v4612_v34  ;;  %v3230_v37 = vsel %vm3229_vm2, %v3221_v15, %v4611_v30 }
 0xbf7   : >> { %v3238_v32 = vpack.c.bf16 %v3231_v27, %v3230_v37 }
 0xbf9   : >> { %4307 = vmatmul.msk.bf16.vlgmr.msra.gmra.mxu0 %vm968_vm8, %v3238_v32 }
 0xbfb   : >> { %v4620_v22 = vpop.permute.xlu1 %4619 }
 0xbfc   : >> { %v4622_v44 = vunpack.i.h.bf16 %v4620_v22  ;;  %v4621_v23 = vunpack.i.l.bf16 %v4620_v22 }
 0xbfe   : >> { %v3224_v19 = vsel %vm3220_vm14, %v3215_v57, %v4622_v44  ;;  %v3223_v39 = vsel %vm3220_vm14, %v3214_v35, %v4621_v23 }
 0xc01   : >> { %v4625_v54 = vpop.permute.xlu2 %4624 }
 0xc02   : >> { %v4627_v38 = vunpack.i.h.bf16 %v4625_v54  ;;  %v4626_v41 = vunpack.i.l.bf16 %v4625_v54 }
 0xc03   : >> { %v4630_v61 = vpop.permute.xlu1 %4629 }
 0xc04   : >> { %v3232_v55 = vsel %vm3229_vm2, %v3223_v39, %v4626_v41  ;;  %v3233_v11 = vsel %vm3229_vm2, %v3224_v19, %v4627_v38  ;;  %v4632_v26 = vunpack.i.h.bf16 %v4630_v61  ;;  %v4631_v0 = vunpack.i.l.bf16 %v4630_v61 }
 0xc05   : >> { %v3239_v7 = vpack.c.bf16 %v3233_v11, %v3232_v55 }
 0xc06   : >> { %v3217_v20 = vsel %vm6948_vm9, %v5831_v4, %v4632_v26  ;;  %v3216_v53 = vsel %vm6949_vm10, %v5839_v31, %v4631_v0  ;;  %v4650_v31 = vpop.permute.xlu0 %4649 }
 0xc07   : >> { %v3226_v58 = vsel %vm3220_vm14, %v3217_v20, %v4637_v12  ;;  %v3225_v33 = vsel %vm3220_vm14, %v3216_v53, %v4636_v1  ;;  %v4652_v46 = vunpack.i.h.bf16 %v4650_v31  ;;  %v4651_v48 = vunpack.i.l.bf16 %v4650_v31 }
 0xc09   : >> { %4308 = vmatmul.msk.bf16.gmra.mxu0 %vm968_vm8, %v3239_v7  ;;  %v4640_v43 = vpop.permute.xlu2 %4639 }
 0xc0a   : >> { %v4642_v24 = vunpack.i.h.bf16 %v4640_v43  ;;  %v4641_v17 = vunpack.i.l.bf16 %v4640_v43 }
 0xc0b   : >> { %v4645_v9 = vpop.permute.xlu1 %4644 }
 0xc0c   : >> { %v3234_v36 = vsel %vm3229_vm2, %v3225_v33, %v4641_v17  ;;  %v3235_v3 = vsel %vm3229_vm2, %v3226_v58, %v4642_v24  ;;  %v4647_v4 = vunpack.i.h.bf16 %v4645_v9  ;;  %v4646_v47 = vunpack.i.l.bf16 %v4645_v9 }
 0xc0d   : >> { %v3240_v42 = vpack.c.bf16 %v3235_v3, %v3234_v36 }
 0xc0e   : >> { %v3219_v51 = vsel %vm6950_vm11, %v5841_v62, %v4647_v4  ;;  %v3218_v25 = vsel %vm6951_vm7, %v5833_v10, %v4646_v47  ;;  %v4661_v10 = vld [vmem:[%s3248_s21] ss:$0 sm:$0xff]  ;;  %s3316_s21 = scalar_lea.vmem %s6744_s11, %s4907_s1  ;;  %s955_s1 = sadd.s32 1, %s4907_s1  }
 0xc0f   : >> { %v3228_v34 = vsel %vm3220_vm14, %v3219_v51, %v4652_v46  ;;  %v3227_v30 = vsel %vm3220_vm14, %v3218_v25, %v4651_v48  ;;  %p952_p5 = scmp.ge.s32.totalorder %s955_s1, 2  }
 0xc19   : >> { %4309 = vmatmul.msk.bf16.gmra.mxu0 %vm968_vm8, %v3240_v42 }
 0xc3f   : >> { %v4655_v60 = vpop.permute.xlu2 %4654 }
 0xc40   : >> { %v4657_v21 = vunpack.i.h.bf16 %v4655_v60  ;;  %v4656_v13 = vunpack.i.l.bf16 %v4655_v60 }
 0xc42   : >> { %v3236_v15 = vsel %vm3229_vm2, %v3227_v30, %v4656_v13  ;;  %v3237_v28 = vsel %vm3229_vm2, %v3228_v34, %v4657_v21 }
 0xc43   : >> { %v3241_v27 = vpack.c.bf16 %v3237_v28, %v3236_v15 }
 0xc45   : >> { %4310 = vmatmul.msk.bf16.gmra.mxu0 %vm968_vm8, %v3241_v27 }
 0xc76   : >> { %v3286_v62 = vpop.f32.mrf.mxu0 }
 0xc77   : >> { %v3287_v37 = vadd.f32 %v4661_v10, %v3286_v62 }
 0xc79   : >> { %v6327_v32 = vadd.f32 %v4903_v59, %v3287_v37 }
 0xc7b   : >> { %v3318_v63 = vsel %vm968_vm8, %v6327_v32, 0.0 }
 0xc7c   : >> { %3319 = vadd.xlane.f32.xlu1 %v3318_v63 }
 0xc7e   : >> { %v3288_v22 = vpop.f32.mrf.mxu0 }
 0xc7f   : >> { %v3289_v8 = vadd.f32 %v4661_v10, %v3288_v22 }
 0xc81   : >> { %v6332_v40 = vadd.f32 %v4899_v50, %v3289_v8 }
 0xc83   : >> { %v3321_v44 = vsel %vm968_vm8, %v6332_v40, 0.0 }
 0xc84   : >> { %3322 = vadd.xlane.f32.xlu0 %v3321_v44 }
 0xc86   : >> { %v3291_v23 = vpop.f32.mrf.mxu0 }
 0xc87   : >> { %v3292_v54 = vadd.f32 %v4661_v10, %v3291_v23 }
 0xc89   : >> { %v6337_v57 = vadd.f32 %v4895_v2, %v3292_v54 }
 0xc8b   : >> { %v3324_v59 = vsel %vm968_vm8, %v6337_v57, 0.0 }
 0xc8c   : >> { %3325 = vadd.xlane.f32.xlu2 %v3324_v59 }
 0xc8e   : >> { %v3293_v35 = vpop.f32.mrf.mxu0 }
 0xc8f   : >> { %v3294_v38 = vadd.f32 %v4661_v10, %v3293_v35  ;;  %v4456_v35 = vld [vmem:[%s3521_s24 + $0x8] sm:$0xff] }
 0xc90   : >> { %3561 = vmatpush.bf16.msra.mxu1 %v4456_v35 }
 0xc91   : >> { %v6342_v41 = vadd.f32 %v4891_v52, %v3294_v38 }
 0xc93   : >> { %v3327_v50 = vsel %vm968_vm8, %v6342_v41, 0.0 }
 0xc94   : >> { %3328 = vadd.xlane.f32.xlu1 %v3327_v50  ;;  %v4455_v50 = vld [vmem:[%s3521_s24] sm:$0xff] }
 0xc95   : >> { %3562 = vmatpush.bf16.msra.mxu1 %v4455_v50 }
 0xc96   : >> { %v3296_v19 = vpop.f32.mrf.mxu0 }
 0xc97   : >> { %v3297_v39 = vadd.f32 %v4661_v10, %v3296_v19 }
 0xc99   : >> { %v6347_v2 = vadd.f32 %v4887_v6, %v3297_v39 }
 0xc9b   : >> { %v3330_v55 = vsel %vm968_vm8, %v6347_v2, 0.0 }
 0xc9c   : >> { %3331 = vadd.xlane.f32.xlu0 %v3330_v55 }
 0xc9e   : >> { %v3298_v11 = vpop.f32.mrf.mxu0 }
 0xc9f   : >> { %v3299_v7 = vadd.f32 %v4661_v10, %v3298_v11 }
 0xca1   : >> { %v6352_v61 = vadd.f32 %v4883_v56, %v3299_v7 }
 0xca3   : >> { %v3333_v52 = vsel %vm968_vm8, %v6352_v61, 0.0 }
 0xca4   : >> { %3334 = vadd.xlane.f32.xlu2 %v3333_v52 }
 0xcc2   : >> { %v3301_v26 = vpop.f32.mrf.mxu0 }
 0xcc3   : >> { %v3302_v0 = vadd.f32 %v4661_v10, %v3301_v26 }
 0xcc5   : >> { %v6365_v6 = vadd.f32 %v4879_v16, %v3302_v0 }
 0xcc7   : >> { %v3336_v56 = vsel %vm968_vm8, %v6365_v6, 0.0 }
 0xcc8   : >> { %3337 = vadd.xlane.f32.xlu2 %v3336_v56 }
 0xcca   : >> { %v3303_v53 = vpop.f32.mrf.mxu0 }
 0xccb   : >> { %v3304_v17 = vadd.f32 %v4661_v10, %v3303_v53 }
 0xccd   : >> { %v6378_v58 = vadd.f32 %v4875_v18, %v3304_v17 }
 0xccf   : >> { %v3339_v42 = vsel %vm968_vm8, %v6378_v58, 0.0 }
 0xcef   : >> { %v3320_v43 = vpop.xlane.xlu1 %3319 }
 0xcf0   : >> { %v3342_v14 = vmul.f32 %v3320_v43, %v5370_v5 }
 0xcf2   : >> { %v6371_v20 = vsub.f32 %v6327_v32, %v3342_v14 }
 0xcf4   : >> { %v3358_v24 = vmul.f32 %v6371_v20, %v6371_v20 }
 0xcf6   : >> { %v3366_v12 = vsel %vm968_vm8, %v3358_v24, 0.0 }
 0xcf7   : >> { %v3323_v1 = vpop.xlane.xlu0 %3322  ;;  %3367 = vadd.xlane.f32.xlu1 %v3366_v12 }
 0xcf8   : >> { %v3343_v16 = vmul.f32 %v3323_v1, %v5370_v5 }
 0xcfa   : >> { %v6381_v33 = vsub.f32 %v6332_v40, %v3343_v16 }
 0xcfc   : >> { %v3359_v36 = vmul.f32 %v6381_v33, %v6381_v33 }
 0xcfe   : >> { %v3369_v3 = vsel %vm968_vm8, %v3359_v36, 0.0 }
 0xcff   : >> { %v3326_v9 = vpop.xlane.xlu2 %3325  ;;  %3370 = vadd.xlane.f32.xlu0 %v3369_v3  ;;  %3340 = vadd.xlane.f32.xlu1 %v3339_v42 }
 0xd00   : >> { %v3344_v4 = vmul.f32 %v3326_v9, %v5370_v5 }
 0xd02   : >> { %v6390_v47 = vsub.f32 %v6337_v57, %v3344_v4 }
 0xd04   : >> { %v3360_v18 = vmul.f32 %v6390_v47, %v6390_v47 }
 0xd06   : >> { %v3372_v31 = vsel %vm968_vm8, %v3360_v18, 0.0 }
 0xd07   : >> { %3373 = vadd.xlane.f32.xlu0 %v3372_v31  ;;  %v3329_v51 = vpop.xlane.xlu1 %3328 }
 0xd08   : >> { %v3345_v25 = vmul.f32 %v3329_v51, %v5370_v5 }
 0xd0a   : >> { %v6397_v46 = vsub.f32 %v6342_v41, %v3345_v25 }
 0xd0c   : >> { %v3361_v48 = vmul.f32 %v6397_v46, %v6397_v46 }
 0xd0e   : >> { %v3375_v60 = vsel %vm968_vm8, %v3361_v48, 0.0  ;;  %v6443_v48 = vld [vmem:[%s3314_s0] ss:$0 sm:$0xff] }
 0xd0f   : >> { %v3332_v21 = vpop.xlane.xlu0 %3331  ;;  %3376 = vadd.xlane.f32.xlu2 %v3375_v60 }
 0xd10   : >> { %v3346_v13 = vmul.f32 %v3332_v21, %v5370_v5 }
 0xd12   : >> { %v6404_v34 = vsub.f32 %v6347_v2, %v3346_v13 }
 0xd14   : >> { %v3362_v30 = vmul.f32 %v6404_v34, %v6404_v34 }
 0xd16   : >> { %v3378_v15 = vsel %vm968_vm8, %v3362_v30, 0.0 }
 0xd17   : >> { %v3335_v28 = vpop.xlane.xlu2 %3334  ;;  %3379 = vadd.xlane.f32.xlu1 %v3378_v15 }
 0xd18   : >> { %v3347_v27 = vmul.f32 %v3335_v28, %v5370_v5 }
 0xd1a   : >> { %v6411_v10 = vsub.f32 %v6352_v61, %v3347_v27  ;;  %v6451_v27 = vld [vmem:[%s3316_s21] ss:$0 sm:$0xff] }
 0xd1c   : >> { %v3363_v62 = vmul.f32 %v6411_v10, %v6411_v10 }
 0xd1e   : >> { %v3381_v37 = vsel %vm968_vm8, %v3363_v62, 0.0 }
 0xd1f   : >> { %3382 = vadd.xlane.f32.xlu0 %v3381_v37 }
 0xd3b   : >> { %v3338_v63 = vpop.xlane.xlu2 %3337 }
 0xd3c   : >> { %v3348_v22 = vmul.f32 %v3338_v63, %v5370_v5 }
 0xd3e   : >> { %v6418_v8 = vsub.f32 %v6365_v6, %v3348_v22 }
 0xd40   : >> { %v3364_v44 = vmul.f32 %v6418_v8, %v6418_v8 }
 0xd42   : >> { %v3384_v23 = vsel %vm968_vm8, %v3364_v44, 0.0 }
 0xd43   : >> { %3385 = vadd.xlane.f32.xlu2 %v3384_v23 }
 0xd6a   : >> { %v3368_v54 = vpop.xlane.xlu1 %3367 }
 0xd6b   : >> { %v3390_v59 = vmul.f32 %v3368_v54, %v5370_v5 }
 0xd6d   : >> { %v3398_v38 = vadd.f32 1e-05, %v3390_v59 }
 0xd6f   : >> { %4812 = vrsqrt.f32 %v3398_v38  ;;  %vm3412_vm1 = vweird.f32 %v3398_v38 }
 0xd72   : >> { %v3371_v19 = vpop.xlane.xlu0 %3370  ;;  %v3341_v39 = vpop.xlane.xlu1 %3340 }
 0xd73   : >> { %v3391_v55 = vmul.f32 %v3371_v19, %v5370_v5  ;;  %v3349_v11 = vmul.f32 %v3341_v39, %v5370_v5 }
 0xd75   : >> { %v4813_v7 = vpop.eup %4812  ;;  %v3399_v52 = vadd.f32 1e-05, %v3391_v55  ;;  %v6431_v26 = vsub.f32 %v6378_v58, %v3349_v11 }
 0xd76   : >> { %v3407_v0 = vmul.f32 %v4813_v7, %v3398_v38  ;;  %vm3413_vm0 = vweird.f32 %v4813_v7 }
 0xd77   : >> { %4814 = vrsqrt.f32 %v3399_v52  ;;  %v3365_v56 = vmul.f32 %v6431_v26, %v6431_v26  ;;  %vm3414_vm4 = vmor %vm3412_vm1, %vm3413_vm0  ;;  %vm3422_vm12 = vweird.f32 %v3399_v52 }
 0xd78   : >> { %v3408_v43 = vmul.f32 %v4813_v7, %v3407_v0 }
 0xd79   : >> { %v3387_v14 = vsel %vm968_vm8, %v3365_v56, 0.0 }
 0xd7a   : >> { %v3409_v53 = vmul.f32 0.5, %v3408_v43  ;;  %v3374_v24 = vpop.xlane.xlu0 %3373  ;;  %3388 = vadd.xlane.f32.xlu1 %v3387_v14 }
 0xd7b   : >> { %v3392_v17 = vmul.f32 %v3374_v24, %v5370_v5 }
 0xd7c   : >> { %v3410_v12 = vsub.f32 1.5, %v3409_v53 }
 0xd7d   : >> { %v4815_v1 = vpop.eup %4814  ;;  %v3400_v16 = vadd.f32 1e-05, %v3392_v17 }
 0xd7e   : >> { %v3411_v36 = vmul.f32 %v4813_v7, %v3410_v12  ;;  %v3417_v3 = vmul.f32 %v4815_v1, %v3399_v52  ;;  %vm3423_vm6 = vweird.f32 %v4815_v1 }
 0xd7f   : >> { %4816 = vrsqrt.f32 %v3400_v16  ;;  %vm3424_vm14 = vmor %vm3422_vm12, %vm3423_vm6  ;;  %vm3432_vm13 = vweird.f32 %v3400_v16 }
 0xd80   : >> { %v3418_v42 = vmul.f32 %v4815_v1, %v3417_v3  ;;  %v3415_v9 = vsel %vm3414_vm4, %v4813_v7, %v3411_v36 }
 0xd81   : >> { %v3486_v60 = vmul.f32 %v3415_v9, %v6371_v20 }
 0xd82   : >> { %v3419_v4 = vmul.f32 0.5, %v3418_v42  ;;  %v3377_v18 = vpop.xlane.xlu2 %3376 }
 0xd83   : >> { %v3393_v31 = vmul.f32 %v3377_v18, %v5370_v5  ;;  %v3497_v62 = vmul.f32 %v6443_v48, %v3486_v60 }
 0xd84   : >> { %v3420_v51 = vsub.f32 1.5, %v3419_v4 }
 0xd85   : >> { %v4817_v25 = vpop.eup %4816  ;;  %v3401_v21 = vadd.f32 1e-05, %v3393_v31  ;;  %v3508_v59 = vadd.f32 %v6451_v27, %v3497_v62 }
 0xd86   : >> { %v3421_v13 = vmul.f32 %v4815_v1, %v3420_v51  ;;  %v3427_v30 = vmul.f32 %v4817_v25, %v3400_v16  ;;  %vm3433_vm5 = vweird.f32 %v4817_v25 }
 0xd87   : >> { %4818 = vrsqrt.f32 %v3401_v21  ;;  %vm3434_vm2 = vmor %vm3432_vm13, %vm3433_vm5  ;;  %vm3442_vm15 = vweird.f32 %v3401_v21 }
 0xd88   : >> { %v3425_v15 = vsel %vm3424_vm14, %v4815_v1, %v3421_v13  ;;  %v3428_v28 = vmul.f32 %v4817_v25, %v3427_v30 }
 0xd89   : >> { %v3487_v37 = vmul.f32 %v3425_v15, %v6381_v33 }
 0xd8a   : >> { %v3429_v20 = vmul.f32 0.5, %v3428_v28  ;;  %v3380_v63 = vpop.xlane.xlu1 %3379 }
 0xd8b   : >> { %v3498_v22 = vmul.f32 %v6443_v48, %v3487_v37  ;;  %v3394_v44 = vmul.f32 %v3380_v63, %v5370_v5 }
 0xd8c   : >> { %v3430_v23 = vsub.f32 1.5, %v3429_v20 }
 0xd8d   : >> { %v4819_v54 = vpop.eup %4818  ;;  %v3509_v35 = vadd.f32 %v6451_v27, %v3498_v22  ;;  %v3402_v38 = vadd.f32 1e-05, %v3394_v44 }
 0xd8e   : >> { %v3431_v50 = vmul.f32 %v4817_v25, %v3430_v23  ;;  %v3437_v33 = vmul.f32 %v4819_v54, %v3401_v21  ;;  %vm3443_vm3 = vweird.f32 %v4819_v54 }
 0xd8f   : >> { %v3516_v19 = vpack.c.bf16 %v3509_v35, %v3508_v59  ;;  %4820 = vrsqrt.f32 %v3402_v38  ;;  %vm3444_vm9 = vmor %vm3442_vm15, %vm3443_vm3  ;;  %vm3452_vm11 = vweird.f32 %v3402_v38  ;;  %vm3636_vm3 = vcmask 523264  }
 0xd90   : >> { %v3438_v39 = vmul.f32 %v4819_v54, %v3437_v33  ;;  %v3435_v55 = vsel %vm3434_vm2, %v4817_v25, %v3431_v50  ;;  %v4461_v50 = vld [vmem:[%s3598_s22 + $0x18] sm:$0xff]  ;;  %vm6960_vm15 = vcmask (%p952_p5), 1041409  }
 0xd91   : >> { %4320 = vmatmul.msk.bf16.vlgmr.msra.gmra.mxu1 %vm968_vm8, %v3516_v19  ;;  %v3488_v43 = vmul.f32 %v3435_v55, %v6390_v47  ;;  %3653 = vmatpush.bf16.msra.mxu2 %v4461_v50 }
 0xd92   : >> { %v3439_v11 = vmul.f32 0.5, %v3438_v39  ;;  %v3383_v7 = vpop.xlane.xlu0 %3382  ;;  %v4460_v39 = vld [vmem:[%s3598_s22 + $0x10] sm:$0xff] }
 0xd93   : >> { %v3395_v52 = vmul.f32 %v3383_v7, %v5370_v5  ;;  %v3499_v16 = vmul.f32 %v6443_v48, %v3488_v43  ;;  %v4458_v43 = vld [vmem:[%s3598_s22] sm:$0xff] }
 0xd94   : >> { %v3440_v0 = vsub.f32 1.5, %v3439_v11  ;;  %v4459_v11 = vld [vmem:[%s3598_s22 + $0x8] sm:$0xff] }
 0xd95   : >> { %v4821_v56 = vpop.eup %4820  ;;  %v3403_v14 = vadd.f32 1e-05, %v3395_v52  ;;  %v3510_v4 = vadd.f32 %v6451_v27, %v3499_v16  ;;  %3654 = vmatpush.bf16.msra.mxu2 %v4460_v39 }
 0xd96   : >> { %v3441_v53 = vmul.f32 %v4819_v54, %v3440_v0  ;;  %v3447_v24 = vmul.f32 %v4821_v56, %v3402_v38  ;;  %vm3453_vm10 = vweird.f32 %v4821_v56 }
 0xd97   : >> { %4822 = vrsqrt.f32 %v3403_v14  ;;  %vm3454_vm7 = vmor %vm3452_vm11, %vm3453_vm10  ;;  %vm3462_vm1 = vweird.f32 %v3403_v14  ;;  %vm6962_vm10 = vcmask (%p952_p5), 1042434   ;;  %vm6963_vm11 = vcmask (%p952_p5), 1043459  }
 0xd98   : >> { %v3445_v17 = vsel %vm3444_vm9, %v4819_v54, %v3441_v53  ;;  %v3448_v12 = vmul.f32 %v4821_v56, %v3447_v24  ;;  %vm6961_vm9 = vmmov (%p952_p5), %vm6960_vm15 }
 0xd99   : >> { %v3489_v1 = vmul.f32 %v3445_v17, %v6397_v46  ;;  %3655 = vmatpush.bf16.msra.mxu2 %v4459_v11 }
 0xd9a   : >> { %v3449_v36 = vmul.f32 0.5, %v3448_v12 }
 0xd9b   : >> { %v3500_v3 = vmul.f32 %v6443_v48, %v3489_v1 }
 0xd9c   : >> { %v3450_v42 = vsub.f32 1.5, %v3449_v36 }
 0xd9d   : >> { %v4823_v9 = vpop.eup %4822  ;;  %v3511_v47 = vadd.f32 %v6451_v27, %v3500_v3  ;;  %3656 = vmatpush.bf16.msra.mxu2 %v4458_v43 }
 0xd9e   : >> { %v3451_v18 = vmul.f32 %v4821_v56, %v3450_v42  ;;  %v3457_v31 = vmul.f32 %v4823_v9, %v3403_v14  ;;  %vm3463_vm0 = vweird.f32 %v4823_v9 }
 0xd9f   : >> { %v3517_v51 = vpack.c.bf16 %v3511_v47, %v3510_v4  ;;  %vm3464_vm4 = vmor %vm3462_vm1, %vm3463_vm0  ;;  %vm6965_vm0 = vcmask (%p952_p5), 1044484  }
 0xda0   : >> { %v3458_v25 = vmul.f32 %v4823_v9, %v3457_v31  ;;  %v3455_v46 = vsel %vm3454_vm7, %v4821_v56, %v3451_v18  ;;  %vm6964_vm7 = vmmov (%p952_p5), %vm6962_vm10 }
 0xda1   : >> { %4321 = vmatmul.msk.bf16.gmra.mxu1 %vm968_vm8, %v3517_v51  ;;  %v3490_v13 = vmul.f32 %v3455_v46, %v6404_v34  ;;  %vm6966_vm1 = vmmov (%p952_p5), %vm6963_vm11 }
 0xda2   : >> { %v3459_v60 = vmul.f32 0.5, %v3458_v25 }
 0xda3   : >> { %v3501_v62 = vmul.f32 %v6443_v48, %v3490_v13 }
 0xda4   : >> { %v3460_v21 = vsub.f32 1.5, %v3459_v60 }
 0xda5   : >> { %v3512_v20 = vadd.f32 %v6451_v27, %v3501_v62 }
 0xda6   : >> { %v3461_v30 = vmul.f32 %v4823_v9, %v3460_v21 }
 0xda8   : >> { %v3465_v15 = vsel %vm3464_vm4, %v4823_v9, %v3461_v30  ;;  %vm6967_vm4 = vcmask (%p952_p5), 1045509  }
 0xda9   : >> { %v3491_v28 = vmul.f32 %v3465_v15, %v6411_v10 }
 0xdab   : >> { %v3502_v37 = vmul.f32 %v6443_v48, %v3491_v28 }
 0xdad   : >> { %v3513_v63 = vadd.f32 %v6451_v27, %v3502_v37 }
 0xdaf   : >> { %v3518_v22 = vpack.c.bf16 %v3513_v63, %v3512_v20 }
 0xdb1   : >> { %4322 = vmatmul.msk.bf16.gmra.mxu1 %vm968_vm8, %v3518_v22 }
 0xdb6   : >> { %v3386_v44 = vpop.xlane.xlu2 %3385 }
 0xdb7   : >> { %v3396_v34 = vmul.f32 %v3386_v44, %v5370_v5 }
 0xdb9   : >> { %v3404_v23 = vadd.f32 1e-05, %v3396_v34 }
 0xdbb   : >> { %4824 = vrsqrt.f32 %v3404_v23  ;;  %vm3472_vm12 = vweird.f32 %v3404_v23 }
 0xdc1   : >> { %v4825_v54 = vpop.eup %4824 }
 0xdc2   : >> { %v3467_v59 = vmul.f32 %v4825_v54, %v3404_v23  ;;  %vm3473_vm6 = vweird.f32 %v4825_v54 }
 0xdc3   : >> { %vm3474_vm14 = vmor %vm3472_vm12, %vm3473_vm6  ;;  %vm6969_vm12 = vcmask (%p952_p5), 1046534  }
 0xdc4   : >> { %v3468_v10 = vmul.f32 %v4825_v54, %v3467_v59  ;;  %vm6968_vm6 = vmmov (%p952_p5), %vm6965_vm0 }
 0xdc6   : >> { %v3469_v19 = vmul.f32 0.5, %v3468_v10 }
 0xdc8   : >> { %v3470_v55 = vsub.f32 1.5, %v3469_v19 }
 0xdca   : >> { %v3471_v52 = vmul.f32 %v4825_v54, %v3470_v55 }
 0xdcc   : >> { %v3475_v14 = vsel %vm3474_vm14, %v4825_v54, %v3471_v52  ;;  %vm6970_vm14 = vmmov (%p952_p5), %vm6967_vm4 }
 0xdcd   : >> { %v3492_v24 = vmul.f32 %v3475_v14, %v6418_v8  ;;  %v4664_v8 = vld [vmem:[%s3526_s19] ss:$0 sm:$0xff] }
 0xdcf   : >> { %v3503_v16 = vmul.f32 %v6443_v48, %v3492_v24 }
 0xdd1   : >> { %v3514_v3 = vadd.f32 %v6451_v27, %v3503_v16 }
 0xded   : >> { %v3389_v35 = vpop.xlane.xlu1 %3388 }
 0xdee   : >> { %v3397_v38 = vmul.f32 %v3389_v35, %v5370_v5 }
 0xdf0   : >> { %v3405_v33 = vadd.f32 1e-05, %v3397_v38  ;;  %v4665_v38 = vld [vmem:[%s3607_s28] ss:$0 sm:$0xff] }
 0xdf2   : >> { %4826 = vrsqrt.f32 %v3405_v33  ;;  %vm3482_vm13 = vweird.f32 %v3405_v33 }
 0xdf8   : >> { %v4827_v7 = vpop.eup %4826 }
 0xdf9   : >> { %v3477_v0 = vmul.f32 %v4827_v7, %v3405_v33  ;;  %vm3483_vm5 = vweird.f32 %v4827_v7 }
 0xdfa   : >> { %vm3484_vm2 = vmor %vm3482_vm13, %vm3483_vm5  ;;  %vm6972_vm13 = vcmask (%p952_p5), 1047559  }
 0xdfb   : >> { %v3478_v56 = vmul.f32 %v4827_v7, %v3477_v0  ;;  %vm6971_vm5 = vmmov (%p952_p5), %vm6961_vm9 }
 0xdfd   : >> { %v3479_v5 = vmul.f32 0.5, %v3478_v56 }
 0xdff   : >> { %v3480_v53 = vsub.f32 1.5, %v3479_v5 }
 0xe01   : >> { %v3481_v17 = vmul.f32 %v4827_v7, %v3480_v53 }
 0xe03   : >> { %v3485_v12 = vsel %vm3484_vm2, %v4827_v7, %v3481_v17  ;;  %vm6973_vm2 = vmmov (%p952_p5), %vm6969_vm12 }
 0xe04   : >> { %v3493_v1 = vmul.f32 %v3485_v12, %v6431_v26 }
 0xe06   : >> { %v3504_v36 = vmul.f32 %v6443_v48, %v3493_v1 }
 0xe08   : >> { %v3515_v42 = vadd.f32 %v6451_v27, %v3504_v36 }
 0xe0a   : >> { %v3519_v9 = vpack.c.bf16 %v3515_v42, %v3514_v3 }
 0xe0c   : >> { %4323 = vmatmul.msk.bf16.gmra.mxu1 %vm968_vm8, %v3519_v9 }
 0xe0e   : >> { %v3564_v4 = vpop.f32.mrf.mxu1 }
 0xe0f   : >> { %v3565_v47 = vadd.f32 %v4664_v8, %v3564_v4 }
 0xe11   : >> { %v3584_v48 = vmax.f32 %v3565_v47, 0.0  ;;  %v4469_v47 = vld [vmem:[%s6749_s16 + $0x38] sm:$0xff] (%p952_p5) }
 0xe12   : > { %3903 = vmatpush.bf16.msra.mxu3 (%p952_p5), %v4469_v47 }
 0xe16   : >> { %v3566_v18 = vpop.f32.mrf.mxu1 }
 0xe17   : >> { %v3567_v26 = vadd.f32 %v4664_v8, %v3566_v18 }
 0xe19   : >> { %v3585_v31 = vmax.f32 %v3567_v26, 0.0  ;;  %v4462_v26 = vld [vmem:[%s6749_s16] sm:$0xff] (%p952_p5) }
 0xe1b   : >> { %v3592_v27 = vpack.c.bf16 %v3585_v31, %v3584_v48  ;;  %v4464_v48 = vld [vmem:[%s6749_s16 + $0x10] sm:$0xff] (%p952_p5) }
 0xe1d   : >> { %4342 = vmatmul.msk.bf16.vlgmr.msra.gmra.mxu2 %vm3636_vm3, %v3592_v27 }
 0xe1e   : >> { %v3569_v51 = vpop.f32.mrf.mxu1 }
 0xe1f   : >> { %v3570_v25 = vadd.f32 %v4664_v8, %v3569_v51 }
 0xe21   : >> { %v3586_v21 = vmax.f32 %v3570_v25, 0.0 }
 0xe26   : >> { %v3571_v46 = vpop.f32.mrf.mxu1 }
 0xe27   : >> { %v3572_v60 = vadd.f32 %v4664_v8, %v3571_v46  ;;  %v4466_v46 = vld [vmem:[%s6749_s16 + $0x20] sm:$0xff] (%p952_p5) }
 0xe29   : >> { %v3587_v13 = vmax.f32 %v3572_v60, 0.0  ;;  %v4468_v60 = vld [vmem:[%s6749_s16 + $0x30] sm:$0xff] (%p952_p5) }
 0xe2a   : > { %3904 = vmatpush.bf16.msra.mxu3 (%p952_p5), %v4468_v60 }
 0xe2b   : >> { %v3593_v30 = vpack.c.bf16 %v3587_v13, %v3586_v21 }
 0xe2d   : >> { %4343 = vmatmul.msk.bf16.gmra.mxu2 %vm3636_vm3, %v3593_v30 }
 0xe2e   : >> { %v3574_v15 = vpop.f32.mrf.mxu1 }
 0xe2f   : >> { %v3575_v28 = vadd.f32 %v4664_v8, %v3574_v15 }
 0xe31   : >> { %v3588_v20 = vmax.f32 %v3575_v28, 0.0 }
 0xe36   : >> { %v3576_v62 = vpop.f32.mrf.mxu1 }
 0xe37   : >> { %v3577_v37 = vadd.f32 %v4664_v8, %v3576_v62 }
 0xe39   : >> { %v3589_v63 = vmax.f32 %v3577_v37, 0.0 }
 0xe3b   : >> { %v3594_v22 = vpack.c.bf16 %v3589_v63, %v3588_v20  ;;  %v4475_v63 = vld [vmem:[%s6749_s16 + $0x68] sm:$0xff] (%p952_p5) }
 0xe3d   : >> { %4344 = vmatmul.msk.bf16.gmra.mxu2 %vm3636_vm3, %v3594_v22  ;;  %v4477_v22 = vld [vmem:[%s6749_s16 + $0x78] sm:$0xff] (%p952_p5) }
 0xe3e   : > { %4099 = vmatpush.bf16.msrb.mxu3 (%p952_p5), %v4477_v22 }
 0xe89   : >> { %v3579_v44 = vpop.f32.mrf.mxu1 }
 0xe8a   : >> { %v3580_v34 = vadd.f32 %v4664_v8, %v3579_v44 }
 0xe8c   : >> { %v3590_v59 = vmax.f32 %v3580_v34, 0.0 }
 0xe91   : >> { %v3581_v23 = vpop.f32.mrf.mxu1 }
 0xe92   : >> { %v3582_v54 = vadd.f32 %v4664_v8, %v3581_v23 }
 0xe94   : >> { %v3591_v10 = vmax.f32 %v3582_v54, 0.0 }
 0xe96   : >> { %v3595_v35 = vpack.c.bf16 %v3591_v10, %v3590_v59  ;;  %v4473_v10 = vld [vmem:[%s6749_s16 + $0x58] sm:$0xff] (%p952_p5) }
 0xe98   : >> { %4345 = vmatmul.msk.bf16.gmra.mxu2 %vm3636_vm3, %v3595_v35  ;;  %vm6974_vm3 = vmmov (%p952_p5), %vm6964_vm7 }
 0xea0   : >> { %v3658_v50 = vpop.f32.mrf.mxu2 }
 0xea1   : >> { %v3659_v33 = vadd.f32 %v4665_v38, %v3658_v50 }
 0xea3   : >> { %v3678_v19 = vadd.f32 %v3659_v33, %v6327_v32  }
 0xea5   : >> { %v6959_v59 = vmov %v3678_v19  ;;  %v3691_v42 = vpack.c.bf16 (%p952_p5), %v3678_v19, %v3678_v19 }
 0xea6   : > { %v4471_v59 = vld [vmem:[%s6749_s16 + $0x48] sm:$0xff] (%p952_p5) }
 0xea7   : > { %v6550_v31 = vunpack.c.l.b16 (%p952_p5), %v3691_v42 }
 0xea8   : >> { %v3660_v39 = vpop.f32.mrf.mxu2 }
 0xea9   : >> { %v3661_v55 = vadd.f32 %v4665_v38, %v3660_v39  ;;  %v3769_v20 = vrot.slane (%p952_p5), %v6550_v31, 1  ;;  %v3916_v22 = vrot.slane (%p952_p5), %v6550_v31, 4 }
 0xeab   : >> { %v3679_v11 = vadd.f32 %v3661_v55, %v6332_v40  }
 0xead   : >> { %v6958_v50 = vmov %v3679_v11  ;;  %v3692_v9 = vpack.c.bf16 (%p952_p5), %v3679_v11, %v3679_v11 }
 0xeaf   : > { %v6552_v27 = vunpack.c.l.b16 (%p952_p5), %v3692_v9 }
 0xeb0   : >> { %v3663_v7 = vpop.f32.mrf.mxu2 }
 0xeb1   : >> { %v3664_v52 = vadd.f32 %v4665_v38, %v3663_v7  ;;  %v3719_v28 = vrot.slane (%p952_p5), %v6552_v27, 7 }
 0xeb3   : >> { %v3680_v0 = vadd.f32 %v3664_v52, %v6337_v57   ;;  %v3720_v35 = vsel (%p952_p5), %vm6960_vm15, %v3719_v28, %v6550_v31  ;;  %vm6975_vm15 = vmmov (%p952_p5), %vm6972_vm13 }
 0xeb5   : > { %v3693_v4 = vpack.c.bf16 (%p952_p5), %v3680_v0, %v3680_v0 }
 0xeb7   : > { %v6554_v51 = vunpack.c.l.b16 (%p952_p5), %v3693_v4 }
 0xeb8   : >> { %v3665_v56 = vpop.f32.mrf.mxu2 }
 0xeb9   : >> { %v3666_v43 = vadd.f32 %v4665_v38, %v3665_v56  ;;  %v3721_v62 = vrot.slane (%p952_p5), %v6554_v51, 6  ;;  %v3771_v50 = vrot.slane (%p952_p5), %v6554_v51, 7 }
 0xebb   : >> { %v3681_v14 = vadd.f32 %v3666_v43, %v6342_v41   ;;  %v4463_v41 = vld [vmem:[%s6749_s16 + $0x8] sm:$0xff] (%p952_p5)  ;;  %v3722_v19 = vsel (%p952_p5), %vm6962_vm10, %v3721_v62, %v3720_v35  ;;  %v4474_v43 = vld [vmem:[%s6749_s16 + $0x60] sm:$0xff] (%p952_p5)  ;;  %vm6977_vm10 = vmmov (%p952_p5), %vm6965_vm0 }
 0xebc   : > { %3756 = vmatpush.bf16.msra.mxu0 (%p952_p5), %v4463_v41 }
 0xebd   : >> { %v6956_v52 = vmov %v3681_v14  ;;  %v3694_v8 = vpack.c.bf16 (%p952_p5), %v3681_v14, %v3681_v14  ;;  %v4476_v14 = vld [vmem:[%s6749_s16 + $0x70] sm:$0xff] (%p952_p5) }
 0xebe   : > { %4100 = vmatpush.bf16.msrb.mxu3 (%p952_p5), %v4476_v14 }
 0xebf   : > { %v6556_v25 = vunpack.c.l.b16 (%p952_p5), %v3694_v8 }
 0xec0   : >> { %v3668_v5 = vpop.f32.mrf.mxu2  ;;  %3757 = vmatpush.bf16.msra.mxu0 (%p952_p5), %v4462_v26  ;;  %v3868_v26 = vrot.slane (%p952_p5), %v6552_v27, 2 }
 0xec1   : >> { %v3669_v53 = vadd.f32 %v4665_v38, %v3668_v5  ;;  %v3723_v37 = vrot.slane (%p952_p5), %v6556_v25, 5  ;;  %v3773_v33 = vrot.slane (%p952_p5), %v6556_v25, 6  ;;  %v3921_v35 = vrot.slane (%p952_p5), %v6556_v25, 1 }
 0xec2   : > { %v3970_v14 = vrot.slane (%p952_p5), %v6556_v25, 2 }
 0xec3   : >> { %v3682_v24 = vadd.f32 %v3669_v53, %v6347_v2   ;;  %v6957_v2 = vmov %v3680_v0  ;;  %v3724_v7 = vsel (%p952_p5), %vm6963_vm11, %v3723_v37, %v3722_v19  ;;  %vm6978_vm11 = vmmov (%p952_p5), %vm6967_vm4 }
 0xec4   : > { %3952 = vmatpush.bf16.msrb.mxu0 (%p952_p5), %v4471_v59 }
 0xec5   : > { %v3695_v49 = vpack.c.bf16 (%p952_p5), %v3682_v24, %v3682_v24 }
 0xec7   : > { %v6564_v21 = vunpack.c.l.b16 (%p952_p5), %v3695_v49 }
 0xec8   : >> { %v3670_v17 = vpop.f32.mrf.mxu2 }
 0xec9   : >> { %v3671_v12 = vadd.f32 %v4665_v38, %v3670_v17  ;;  %v3725_v44 = vrot.slane (%p952_p5), %v6564_v21, 4  ;;  %v3775_v39 = vrot.slane (%p952_p5), %v6564_v21, 5  ;;  %v3822_v17 = vrot.slane (%p952_p5), %v6556_v25, 7 }
 0xeca   : > { %v3873_v60 = vrot.slane (%p952_p5), %v6564_v21, 7 }
 0xecb   : >> { %v3683_v32 = vadd.f32 %v3671_v12, %v6352_v61   ;;  %v4465_v61 = vld [vmem:[%s6749_s16 + $0x18] sm:$0xff] (%p952_p5)  ;;  %v3726_v5 = vsel (%p952_p5), %vm6965_vm0, %v3725_v44, %v3724_v7  ;;  %v4470_v12 = vld [vmem:[%s6749_s16 + $0x40] sm:$0xff] (%p952_p5)  ;;  %vm6980_vm0 = vmmov (%p952_p5), %vm6971_vm5  ;;  %v3965_v7 = vrot.slane (%p952_p5), %v6550_v31, 5 }
 0xecc   : > { %3805 = vmatpush.bf16.msra.mxu1 (%p952_p5), %v4465_v61  ;;  %3953 = vmatpush.bf16.msrb.mxu0 (%p952_p5), %v4470_v12 }
 0xecd   : >> { %v6954_v56 = vmov %v3683_v32  ;;  %v3696_v2 = vpack.c.bf16 (%p952_p5), %v3683_v32, %v3683_v32  ;;  %v4472_v32 = vld [vmem:[%s6749_s16 + $0x50] sm:$0xff] (%p952_p5) }
 0xece   : > { %v3818_v56 = vrot.slane (%p952_p5), %v6550_v31, 2 }
 0xecf   : > { %v6566_v13 = vunpack.c.l.b16 (%p952_p5), %v3696_v2  ;;  %v3867_v2 = vrot.slane (%p952_p5), %v6550_v31, 3 }
 0xed0   : > { %3806 = vmatpush.bf16.msra.mxu1 (%p952_p5), %v4464_v48  ;;  %v3870_v48 = vrot.slane (%p952_p5), %v6554_v51, 1 }
 0xed1   : > { %v3727_v34 = vrot.slane (%p952_p5), %v6566_v13, 3  ;;  %v3777_v55 = vrot.slane (%p952_p5), %v6566_v13, 4  ;;  %v3875_v28 = vrot.slane (%p952_p5), %v6566_v13, 6 }
 0xed4   : > { %4001 = vmatpush.bf16.msrb.mxu1 (%p952_p5), %v4473_v10 }
 0xed8   : > { %4002 = vmatpush.bf16.msrb.mxu1 (%p952_p5), %v4472_v32 }
 0xf1b   : >> { %v3673_v1 = vpop.f32.mrf.mxu2 }
 0xf1c   : >> { %v3674_v16 = vadd.f32 %v4665_v38, %v3673_v1  ;;  %v3728_v1 = vsel (%p952_p5), %vm6967_vm4, %v3727_v34, %v3726_v5  ;;  %vm6982_vm4 = vmmov (%p952_p5), %vm6974_vm3 }
 0xf1e   : >> { %v3684_v40 = vadd.f32 %v3674_v16, %v6365_v6   ;;  %v6955_v6 = vmov %v3682_v24  ;;  %v3819_v24 = vrot.slane (%p952_p5), %v6552_v27, 1 }
 0xf20   : >> { %v6953_v16 = vmov %v3684_v40  ;;  %v3697_v6 = vpack.c.bf16 (%p952_p5), %v3684_v40, %v3684_v40  ;;  %v3824_v40 = vrot.slane (%p952_p5), %v6564_v21, 6  ;;  %v3820_v41 = vsel (%p952_p5), %vm6971_vm5, %v3819_v24, %v3818_v56  ;;  %vm6986_vm5 = vmmov (%p952_p5), %vm6978_vm11 }
 0xf21   : > { %v3821_v9 = vsel (%p952_p5), %vm6974_vm3, %v6554_v51, %v3820_v41 }
 0xf22   : > { %v6568_v30 = vunpack.c.l.b16 (%p952_p5), %v3697_v6 }
 0xf23   : >> { %v3675_v36 = vpop.f32.mrf.mxu2 }
 0xf24   : >> { %v3676_v3 = vadd.f32 %v4665_v38, %v3675_v36  ;;  %954 = sbr.rel (!%p952_p5) target bundleno = 504 (0x1f8), region = 148  ;;  %v3729_v23 = vrot.slane (%p952_p5), %v6568_v30, 2  ;;  %v3770_v38 = vsel (%p952_p5), %vm6961_vm9, %v6552_v27, %v3769_v20  ;;  %v3779_v11 = vrot.slane (%p952_p5), %v6568_v30, 3  ;;  %vm6976_vm9 = vmmov (%p952_p5), %vm6966_vm1 }
 0xf25   : > { %v3772_v52 = vsel (%p952_p5), %vm6964_vm7, %v3771_v50, %v3770_v38  ;;  %v3826_v36 = vrot.slane (%p952_p5), %v6566_v13, 5  ;;  %v3828_v61 = vrot.slane (%p952_p5), %v6568_v30, 4  ;;  %v3823_v49 = vsel (%p952_p5), %vm6976_vm9, %v3822_v17, %v3821_v9  ;;  %vm6979_vm7 = vmmov (%p952_p5), %vm6973_vm2 }
 0xf26   : >> { %v3685_v57 = vadd.f32 %v3676_v3, %v6378_v58   ;;  %v4467_v58 = vld [vmem:[%s6749_s16 + $0x28] sm:$0xff] (%p952_p5)  ;;  %v3774_v53 = vsel (%p952_p5), %vm6966_vm1, %v3773_v33, %v3772_v52  ;;  %v3730_v3 = vsel (%p952_p5), %vm6969_vm12, %v3729_v23, %v3728_v1  ;;  %v3877_v62 = vrot.slane (%p952_p5), %v6568_v30, 5  ;;  %vm6981_vm1 = vmmov (%p952_p5), %vm6972_vm13 }
 0xf27   : > { %3854 = vmatpush.bf16.msra.mxu2 (%p952_p5), %v4467_v58  ;;  %v3776_v16 = vsel (%p952_p5), %vm6968_vm6, %v3775_v39, %v3774_v53  ;;  %v3869_v20 = vsel (%p952_p5), %vm6980_vm0, %v3868_v26, %v3867_v2  ;;  %v3917_v23 = vrot.slane (%p952_p5), %v6552_v27, 3  ;;  %vm6983_vm6 = vmmov (%p952_p5), %vm6976_vm9  ;;  %v3924_v38 = vrot.slane (%p952_p5), %v6566_v13, 7 }
 0xf28   : >> { %v6952_v18 = vmov %v3685_v57  ;;  %v3871_v34 = vsel (%p952_p5), %vm6982_vm4, %v3870_v48, %v3869_v20  ;;  %vm6984_vm12 = vmmov (%p952_p5), %vm6977_vm10  ;;  %v3926_v19 = vrot.slane (%p952_p5), %v6568_v30, 6  ;;  %v3966_v52 = vrot.slane (%p952_p5), %v6552_v27, 4 }
 0xf29   : > { %v3698_v18 = vpack.c.bf16 %v3685_v57, %v3685_v57  ;;  %v3778_v57 = vsel %vm6970_vm14, %v3777_v55, %v3776_v16  ;;  %v3872_v10 = vsel %vm6983_vm6, %v6556_v25, %v3871_v34  ;;  %vm6985_vm14 = vmmov %vm6980_vm0  ;;  %v3972_v17 = vrot.slane %v6564_v21, 1 }
 0xf2a   : > { %v3780_v42 = vsel %vm6973_vm2, %v3779_v11, %v3778_v57  ;;  %v3874_v50 = vsel %vm6984_vm12, %v3873_v60, %v3872_v10  ;;  %v3918_v33 = vsel %vm6985_vm14, %v3917_v23, %v3916_v22  ;;  %vm6990_vm9 = vmmov %vm6977_vm10  ;;  %v3975_v16 = vrot.slane %v6568_v30, 7 }
 0xf2b   : > { %v6570_v15 = vunpack.c.l.b16 %v3698_v18  ;;  %3855 = vmatpush.bf16.msra.mxu2 %v4466_v46  ;;  %v3825_v18 = vsel %vm6977_vm10, %v3824_v40, %v3823_v49  ;;  %v3876_v55 = vsel %vm6986_vm5, %v3875_v28, %v3874_v50  ;;  %vm6991_vm10 = vmmov %vm6980_vm0  ;;  %v4014_v57 = vrot.slane %v6550_v31, 6 }
 0xf2c   : > { %v3827_v46 = vsel %vm6978_vm11, %v3826_v36, %v3825_v18  ;;  %v3967_v24 = vsel %vm6991_vm10, %v3966_v52, %v3965_v7  ;;  %vm6992_vm11 = vmmov %vm6986_vm5  ;;  %v4064_v60 = vrot.slane %v6552_v27, 6  ;;  %v4068_v20 = vrot.slane %v6556_v25, 4 }
 0xf2d   : > { %v3731_v54 = vrot.slane %v6570_v15, 1  ;;  %v3781_v0 = vrot.slane %v6570_v15, 2  ;;  %v3830_v4 = vrot.slane %v6570_v15, 3  ;;  %v3829_v37 = vsel %vm6979_vm7, %v3828_v61, %v3827_v46  ;;  %vm6993_vm7 = vmmov %vm6982_vm4 }
 0xf2e   : > { %v3928_v39 = vrot.slane %v6570_v15, 5  ;;  %vm6994_vm0 = vmmov %vm6973_vm2  ;;  %v4026_v18 = vrot.slane %v6570_v15, 7  ;;  %v4063_v46 = vrot.slane %v6550_v31, 7  ;;  %v4072_v34 = vrot.slane %v6566_v13, 2 }
 0xf2f   : > { %4050 = vmatpush.bf16.msrb.mxu2 %v4475_v63  ;;  %v3732_v58 = vsel %vm6972_vm13, %v3731_v54, %v3730_v3  ;;  %v3782_v47 = vsel %vm6975_vm15, %v3781_v0, %v3780_v42  ;;  %v3879_v63 = vrot.slane %v6570_v15, 4  ;;  %v3831_v44 = vsel %vm6981_vm1, %v3830_v4, %v3829_v37  ;;  %vm6987_vm13 = vmmov %vm6974_vm3 }
 0xf30   : > { %v3733_v8 = vpack.c.b16 %v3732_v58, %v3732_v58  ;;  %v3783_v6 = vpack.c.b16 %v3782_v47, %v3782_v47  ;;  %v3919_v54 = vrot.slane %v6554_v51, 2  ;;  %v3832_v59 = vpack.c.b16 %v3831_v44, %v3831_v44  ;;  %vm6988_vm3 = vmmov %vm6983_vm6 }
 0xf31   : > { %v3878_v0 = vsel %vm6973_vm2, %v3877_v62, %v3876_v55  ;;  %vm6989_vm15 = vmmov %vm6981_vm1  ;;  %v3977_v3 = vrot.slane %v6570_v15, 6  ;;  %v4015_v58 = vrot.slane %v6552_v27, 5  ;;  %v4017_v42 = vrot.slane %v6554_v51, 4 }
 0xf32   : > { %4354 = vmatmul.msk.bf16.vlgmr.msra.gmra.mxu0 %vm968_vm8, %v3733_v8  ;;  %4367 = vmatmul.msk.bf16.vlgmr.msra.gmra.mxu1 %vm968_vm8, %v3783_v6  ;;  %v3920_v11 = vsel %vm6987_vm13, %v3919_v54, %v3918_v33  ;;  %v3880_v5 = vsel %vm6989_vm15, %v3879_v63, %v3878_v0  ;;  %vm6995_vm1 = vmmov %vm6988_vm3  ;;  %v4019_v8 = vrot.slane %v6556_v25, 3  ;;  %v4021_v47 = vrot.slane %v6564_v21, 2  ;;  %v4828_v33 = vld [vmem:[%s6750_s17] ss:$0 sm:$0xff] }
 0xf33   : > { %4051 = vmatpush.bf16.msrb.mxu2 %v4474_v43  ;;  %v3922_v56 = vsel %vm6988_vm3, %v3921_v35, %v3920_v11  ;;  %v3968_v43 = vrot.slane %v6554_v51, 3  ;;  %v3881_v12 = vpack.c.b16 %v3880_v5, %v3880_v5  ;;  %vm6996_vm4 = vmmov %vm6989_vm15  ;;  %v4023_v6 = vrot.slane %v6566_v13, 1 }
 0xf34   : > { %4380 = vmatmul.msk.bf16.vlgmr.msra.gmra.mxu2 %vm968_vm8, %v3832_v59  ;;  %v3923_v53 = vsel %vm6990_vm9, %v6564_v21, %v3922_v56  ;;  %vm6997_vm6 = vmmov %vm6990_vm9  ;;  %v4066_v37 = vrot.slane %v6554_v51, 5  ;;  %v4070_v44 = vrot.slane %v6564_v21, 3  ;;  %v4074_v23 = vrot.slane %v6568_v30, 1 }
 0xf35   : > { %v3925_v32 = vsel %vm6992_vm11, %v3924_v38, %v3923_v53  ;;  %v3969_v1 = vsel %vm6993_vm7, %v3968_v43, %v3967_v24  ;;  %4393 = vmatmul.msk.bf16.vlgmr.msra.gmra.mxu3 %vm968_vm8, %v3881_v12  ;;  %vm6998_vm12 = vmmov %vm6986_vm5 }
 0xf36   : > { %v3927_v40 = vsel %vm6994_vm0, %v3926_v19, %v3925_v32  ;;  %v3971_v36 = vsel %vm6995_vm1, %v3970_v14, %v3969_v1  ;;  %vm6999_vm14 = vmmov %vm6994_vm0 }
 0xf37   : > { %v3929_v41 = vsel %vm6996_vm4, %v3928_v39, %v3927_v40  ;;  %v3973_v61 = vsel %vm6997_vm6, %v3972_v17, %v3971_v36  ;;  %vm7000_vm5 = vmmov %vm6991_vm10 }
 0xf38   : > { %v3930_v9 = vpack.c.b16 %v3929_v41, %v3929_v41  ;;  %v3974_v4 = vsel %vm6998_vm12, %v6566_v13, %v3973_v61  ;;  %v4016_v2 = vsel %vm7000_vm5, %v4015_v58, %v4014_v57  ;;  %vm7001_vm13 = vmmov %vm6996_vm4 }
 0xf39   : > { %v3976_v49 = vsel %vm6999_vm14, %v3975_v16, %v3974_v4  ;;  %vm7002_vm2 = vmmov %vm6993_vm7 }
 0xf3a   : > { %v3978_v26 = vsel %vm7001_vm13, %v3977_v3, %v3976_v49  ;;  %v4018_v48 = vsel %vm7002_vm2, %v4017_v42, %v4016_v2  ;;  %vm7003_vm3 = vmmov %vm6995_vm1 }
 0xf3b   : > { %v3979_v28 = vpack.c.b16 %v3978_v26, %v3978_v26  ;;  %v4020_v62 = vsel %vm7003_vm3, %v4019_v8, %v4018_v48  ;;  %vm7004_vm15 = vmmov %vm6997_vm6 }
 0xf3c   : > { %v4022_v63 = vsel %vm7004_vm15, %v4021_v47, %v4020_v62  ;;  %vm7005_vm9 = vmmov %vm7000_vm5 }
 0xf3d   : > { %v4065_v22 = vsel %vm7005_vm9, %v4064_v60, %v4063_v46  ;;  %vm7006_vm10 = vmmov %vm6992_vm11 }
 0xf3e   : > { %v4024_v31 = vsel %vm7006_vm10, %v4023_v6, %v4022_v63  ;;  %vm7007_vm11 = vmmov %vm7002_vm2 }
 0xf3f   : > { %v4067_v27 = vsel %vm7007_vm11, %v4066_v37, %v4065_v22  ;;  %vm7008_vm7 = vmmov %vm6994_vm0 }
 0xf40   : > { %v4025_v51 = vsel %vm7008_vm7, %v6568_v30, %v4024_v31  ;;  %vm7009_vm0 = vmmov %vm6995_vm1 }
 0xf41   : > { %v4069_v25 = vsel %vm7009_vm0, %v4068_v20, %v4067_v27  ;;  %vm7010_vm1 = vmmov %vm6996_vm4 }
 0xf42   : > { %4406 = vmatmul.msk.bf16.vlgmr.msrb.gmra.mxu0 %vm968_vm8, %v3930_v9  ;;  %4419 = vmatmul.msk.bf16.vlgmr.msrb.gmra.mxu1 %vm968_vm8, %v3979_v28  ;;  %v4027_v54 = vsel %vm7010_vm1, %v4026_v18, %v4025_v51  ;;  %vm7011_vm4 = vmmov %vm6997_vm6 }
 0xf43   : > { %v4071_v21 = vsel %vm7011_vm4, %v4070_v44, %v4069_v25  ;;  %v4028_v13 = vpack.c.b16 %v4027_v54, %v4027_v54  ;;  %vm7012_vm6 = vmmov %vm7006_vm10 }
 0xf44   : > { %v4073_v59 = vsel %vm7012_vm6, %v4072_v34, %v4071_v21  ;;  %vm7013_vm12 = vmmov %vm7008_vm7 }
 0xf45   : > { %v4075_v10 = vsel %vm7013_vm12, %v4074_v23, %v4073_v59  ;;  %4432 = vmatmul.msk.bf16.vlgmr.msrb.gmra.mxu2 %vm968_vm8, %v4028_v13  ;;  %vm7014_vm14 = vmmov %vm7010_vm1 }
 0xf46   : > { %v4076_v35 = vsel %vm7014_vm14, %v6570_v15, %v4075_v10 }
 0xf47   : > { %v4077_v38 = vpack.c.b16 %v4076_v35, %v4076_v35 }
 0xf49   : > { %4445 = vmatmul.msk.bf16.vlgmr.msrb.gmra.mxu3 %vm968_vm8, %v4077_v38 }
 0xfaf   : > { %v3759_v30 = vpop.f32.mrf.mxu0  ;;  %v3808_v50 = vpop.f32.mrf.mxu1 }
 0xfb0   : > { %v3763_v39 = vadd.f32 %v4828_v33, %v3759_v30 }
 0xfb2   : > { %v3812_v7 = vadd.f32 %v3808_v50, %v3763_v39 }
 0xfb7   : > { %v3761_v19 = vpop.f32.mrf.mxu0  ;;  %v3810_v55 = vpop.f32.mrf.mxu1 }
 0xfb8   : > { %v3857_v11 = vpop.f32.mrf.mxu2  ;;  %v3906_v52 = vpop.f32.mrf.mxu3 }
 0xfb9   : > { %v3861_v56 = vadd.f32 %v3857_v11, %v3812_v7 }
 0xfbb   : > { %v3910_v14 = vadd.f32 %v3906_v52, %v3861_v56 }
 0xfbf   : > { %v3955_v0 = vpop.f32.mrf.mxu0  ;;  %v4004_v43 = vpop.f32.mrf.mxu1 }
 0xfc0   : > { %v3859_v15 = vpop.f32.mrf.mxu2  ;;  %v3959_v5 = vadd.f32 %v3955_v0, %v3910_v14  ;;  %v3908_v53 = vpop.f32.mrf.mxu3 }
 0xfc2   : > { %v4008_v12 = vadd.f32 %v4004_v43, %v3959_v5 }
 0xfc7   : > { %v3957_v24 = vpop.f32.mrf.mxu0  ;;  %v4006_v17 = vpop.f32.mrf.mxu1 }
 0xfc8   : > { %v4053_v32 = vpop.f32.mrf.mxu2 }
 0xfc9   : > { %v4057_v1 = vadd.f32 %v4053_v32, %v4008_v12 }
 0xfcc   : > { %v4102_v16 = vpop.f32.mrf.mxu3 }
 0xfcd   : > { %v4106_v40 = vadd.f32 %v4102_v16, %v4057_v1 }
 0xfcf   : > { %v4107_v36 = vmul.f32 %v4106_v40, %v5148_v45 }
 0xfd0   : > { %v4055_v3 = vpop.f32.mrf.mxu2 }
 0xfd1   : > { %v4108_v57 = vadd.f32 %v4107_v36, %v5144_v29 }
 0xfd3   : > { %4109 = vst [vmem:[%s5139_s23] sm:$0xff] %v4108_v57 }
 0xfd4   : > { %v4104_v41 = vpop.f32.mrf.mxu3 }
 0xfd5 PF: > { %s28_s27 = sadd.s32 1, %s4871_s27  }
 0xfd6   : > { %p25_p6 = scmp.ge.s32.totalorder %s28_s27, 4  }
 0xfd8   :  { %27 = sbr.rel (!%p25_p6) target bundleno = 4 (0x4), region = 159 }

</bundles_post_ra>
